<compile_context>
chip_gen: v6e
topology: v6e:2x2x1
jax: 0.10.0
libtpu: 0.0.40
codegen_flags: <defaults>
</compile_context>

<pallas_src>
import functools

import jax
import jax.numpy as jnp
from jax.experimental import pallas as pl
from jax.experimental.pallas import tpu as pltpu


# ----------------------------------------------------------------------------
# Pallas kernels
# ----------------------------------------------------------------------------

def _s2d_conv_kernel(x_ref, w_ref, s_ref, t_ref, o_ref, *, ho, wo, pool):
    """3x3 / stride-2 / pad-1 conv as 4 stride-1 taps on a space-to-depth
    input, fused with folded BN (scale/shift) + ReLU.  If `pool`, also fuses
    AdaptiveAvgPool2d((1,1)) and emits the pooled [1,1,1,C] feature.

      x_ref: [1, ho+1, wo+1, 4*cin]  bf16 (one batch element per grid step)
      w_ref: [4, 4*cin, cout]        bf16 (rearranged conv weight taps)
      s_ref, t_ref: [1, cout]        f32  (folded BN scale / shift)
      o_ref: [1, ho, wo, cout] bf16, or [1, 1, 1, cout] f32 when pool=True
    """
    c4 = x_ref.shape[-1]
    cout = w_ref.shape[-1]
    xv = x_ref[0]                                   # [ho+1, wo+1, 4*cin]
    acc = jnp.zeros((ho * wo, cout), jnp.float32)
    for t in range(4):                              # unrolled: 4 MXU pushes
        di, dj = t // 2, t % 2
        win = xv[di:di + ho, dj:dj + wo, :].reshape(ho * wo, c4)
        acc = acc + jnp.dot(win, w_ref[t], preferred_element_type=jnp.float32)
    acc = jnp.maximum(acc * s_ref[...] + t_ref[...], 0.0)   # BN+ReLU in f32
    if pool:
        o_ref[...] = jnp.mean(acc, axis=0, keepdims=True).reshape(1, 1, 1, cout)
    else:
        o_ref[...] = acc.reshape(1, ho, wo, cout).astype(o_ref.dtype)


def _head_kernel(f_ref, w1_ref, b1_ref, g1_ref, be1_ref,
                 w2_ref, b2_ref, g2_ref, be2_ref,
                 w3_ref, b3_ref, wa_ref, ba_ref, o_ref):
    """BinaryMLP (Linear->BN1d->GELU x2 -> Linear) + agg Linear(2,1), fused."""
    eps = 1e-5

    def bn(h, g, b):
        # BatchNorm1d in (default) training mode: batch statistics, biased var.
        mu = jnp.mean(h, axis=0, keepdims=True)
        var = jnp.mean((h - mu) ** 2, axis=0, keepdims=True)
        return (h - mu) * jax.lax.rsqrt(var + eps) * g + b

    def gelu(x):
        # TODO(synk): nn.GELU() default is exact erf; tanh approximation used.
        c = 0.7978845608028654  # sqrt(2/pi)
        return 0.5 * x * (1.0 + jnp.tanh(c * (x + 0.044715 * x * x * x)))

    # cat([sep(=0), in_feat, sep(=0), exp_feat]) @ W1 == [B,2F] @ W1[rows!=sep]
    h = jnp.dot(f_ref[...], w1_ref[...], preferred_element_type=jnp.float32) + b1_ref[...]
    h = gelu(bn(h, g1_ref[...], be1_ref[...]))          # dropout(p=0) == identity
    h = jnp.dot(h, w2_ref[...], preferred_element_type=jnp.float32) + b2_ref[...]
    h = gelu(bn(h, g2_ref[...], be2_ref[...]))
    logits = jnp.dot(h, w3_ref[...], preferred_element_type=jnp.float32) + b3_ref[...]
    # agg_branch Linear(2,1): broadcast-mul + lane reduce
    o_ref[...] = jnp.sum(logits * wa_ref[...], axis=1, keepdims=True) + ba_ref[...]


# ----------------------------------------------------------------------------
# Wrappers (layout plumbing only: pad, space-to-depth, weight rearrangement)
# ----------------------------------------------------------------------------

def _space_to_depth(xp):
    """[B, Hp, Wp, C] (Hp, Wp even) -> [B, Hp/2, Wp/2, 4C], ch = (u*2+v)*C + c."""
    B, Hp, Wp, C = xp.shape
    z = xp.reshape(B, Hp // 2, 2, Wp // 2, 2, C)
    z = jnp.transpose(z, (0, 1, 3, 2, 4, 5))
    return z.reshape(B, Hp // 2, Wp // 2, 4 * C)


def _rearrange_weight(w):
    """[3,3,cin,cout] -> [4 taps, 4*cin, cout] matching the s2d channel layout."""
    kh, kw, cin, cout = w.shape
    wp = jnp.pad(w, ((0, 4 - kh), (0, 4 - kw), (0, 0), (0, 0)))
    wr = wp.reshape(2, 2, 2, 2, cin, cout)          # [di, u, dj, v, cin, cout]
    wr = jnp.transpose(wr, (0, 2, 1, 3, 4, 5))      # [di, dj, u, v, cin, cout]
    return wr.reshape(4, 4 * cin, cout)


def conv_bn_relu(x, w, gamma, beta, *, pool=False):
    """x: [B,H,W,Cin] NHWC (H,W even). w: [3,3,Cin,Cout]; stride 2, pad 1.
    Eval-mode BN folded with running_mean=0 / running_var=1 placeholders."""
    B, H, W, cin = x.shape
    kh, kw, _, cout = w.shape
    assert kh == 3 and kw == 3 and H % 2 == 0 and W % 2 == 0
    ho, wo = H // 2, W // 2

    xp = jnp.pad(x, ((0, 0), (1, 1), (1, 1), (0, 0)))
    z = _space_to_depth(xp).astype(jnp.bfloat16)        # lossless; no im2col blowup
    wt = _rearrange_weight(w).astype(jnp.bfloat16)
    eps = 1e-5
    scale = (gamma / jnp.sqrt(1.0 + eps)).reshape(1, cout).astype(jnp.float32)
    shift = beta.reshape(1, cout).astype(jnp.float32)

    if pool:
        out_shape = jax.ShapeDtypeStruct((B, 1, 1, cout), jnp.float32)
        out_spec = pl.BlockSpec((1, 1, 1, cout), lambda b: (b, 0, 0, 0))
    else:
        out_shape = jax.ShapeDtypeStruct((B, ho, wo, cout), jnp.bfloat16)
        out_spec = pl.BlockSpec((1, ho, wo, cout), lambda b: (b, 0, 0, 0))

    kernel = functools.partial(_s2d_conv_kernel, ho=ho, wo=wo, pool=pool)
    # TODO(synk): for the real ResNet-50 stages (K up to 4608, cout 512/2048),
    # add a K-reduction grid axis and set vmem_limit_bytes for v7x (64 MiB VMEM).
    return pl.pallas_call(
        kernel,
        out_shape=out_shape,
        grid=(B,),
        in_specs=[
            pl.BlockSpec((1, ho + 1, wo + 1, 4 * cin), lambda b: (b, 0, 0, 0)),
            pl.BlockSpec((4, 4 * cin, cout), lambda b: (0, 0, 0)),   # weight stays resident
            pl.BlockSpec((1, cout), lambda b: (0, 0)),
            pl.BlockSpec((1, cout), lambda b: (0, 0)),
        ],
        out_specs=out_spec,
        compiler_params=pltpu.CompilerParams(dimension_semantics=("parallel",)),
    )(z, wt, scale, shift)


def binary_head(feat_cat, p):
    """feat_cat: [B, 2F] = concat(input_feat, exp_feat).  Whole head in one kernel."""
    B, twoF = feat_cat.shape
    F = twoF // 2
    w1 = p["w1"]                                   # [2F+2, 192]
    # rows 0 and F+1 multiply the zero sep tokens -> dropping them is exact.
    w1_cat = jnp.concatenate([w1[1:1 + F], w1[F + 2:2 * F + 2]], axis=0)  # [2F, 192]
    args = [feat_cat, w1_cat, p["b1"], p["g1"], p["be1"],
            p["w2"], p["b2"], p["g2"], p["be2"],
            p["w3"], p["b3"], p["wa"], p["ba"]]
    return pl.pallas_call(
        _head_kernel,
        out_shape=jax.ShapeDtypeStruct((B, 1), jnp.float32),
        grid=(1,),
        in_specs=[pl.BlockSpec(tuple(a.shape), lambda i, _nd=a.ndim: (0,) * _nd)
                  for a in args],
        out_specs=pl.BlockSpec((B, 1), lambda i: (0, 0)),
    )(*args)


def cnn_finernetwork_forward(params, images, explanations):
    # images, explanations: NCHW float32 (PyTorch convention).
    # Mirrors `explanations.squeeze()` (note: would also drop batch dim if B==1,
    # exactly like the PyTorch reference).
    explanations = jnp.squeeze(explanations)
    img = jnp.transpose(images, (0, 2, 3, 1))          # NCHW -> NHWC
    exp = jnp.transpose(explanations, (0, 2, 3, 1))
    B = img.shape[0]

    # One backbone pass over the concatenated batch (images + explanations).
    x = jnp.concatenate([img, exp], axis=0)
    h = conv_bn_relu(x, params["c1_w"], params["c1_g"], params["c1_b"])
    h = conv_bn_relu(h, params["c2_w"], params["c2_g"], params["c2_b"])
    feats = conv_bn_relu(h, params["c3_w"], params["c3_g"], params["c3_b"],
                         pool=True)                    # fused global avg pool
    feats = feats.reshape(2 * B, -1)                   # [2B, feature_dim] f32

    input_feat, exp_feat = feats[:B], feats[B:]
    output = binary_head(jnp.concatenate([input_feat, exp_feat], axis=1), params)
    return output, input_feat, exp_feat, None


# ----------------------------------------------------------------------------
# Deterministic parameter init (shapes follow the module's __init__)
# ----------------------------------------------------------------------------

def init_params(key, feature_dim):
    ks = jax.random.split(key, 12)

    def xavier(k, shape):                       # xavier_normal_, gain=1
        std = (2.0 / (shape[0] + shape[1])) ** 0.5
        return std * jax.random.normal(k, shape, jnp.float32)

    def conv_w(k, kh, kw, cin, cout):
        std = (2.0 / (kh * kw * cin)) ** 0.5
        return std * jax.random.normal(k, (kh, kw, cin, cout), jnp.float32)

    F = feature_dim
    p = {}
    # Compact stand-in backbone; every cout == feature_dim (lane-dense = 128).
    p["c1_w"] = conv_w(ks[0], 3, 3, 3, F)
    p["c1_g"], p["c1_b"] = jnp.ones((F,), jnp.float32), jnp.zeros((F,), jnp.float32)
    p["c2_w"] = conv_w(ks[1], 3, 3, F, F)
    p["c2_g"], p["c2_b"] = jnp.ones((F,), jnp.float32), jnp.zeros((F,), jnp.float32)
    p["c3_w"] = conv_w(ks[2], 3, 3, F, F)
    p["c3_g"], p["c3_b"] = jnp.ones((F,), jnp.float32), jnp.zeros((F,), jnp.float32)

    # BinaryMLP(2*F + 2, 32): (2F+2) -> 192 -> 32 -> 2
    in_dim, proj, hid = 2 * F + 2, 192, 32
    p["w1"] = xavier(ks[3], (in_dim, proj))
    p["b1"] = 0.01 * jax.random.normal(ks[4], (1, proj), jnp.float32)
    p["g1"], p["be1"] = jnp.ones((1, proj), jnp.float32), jnp.zeros((1, proj), jnp.float32)
    p["w2"] = xavier(ks[5], (proj, hid))
    p["b2"] = 0.01 * jax.random.normal(ks[6], (1, hid), jnp.float32)
    p["g2"], p["be2"] = jnp.ones((1, hid), jnp.float32), jnp.zeros((1, hid), jnp.float32)
    p["w3"] = xavier(ks[7], (hid, 2))
    p["b3"] = 0.01 * jax.random.normal(ks[8], (1, 2), jnp.float32)
    # agg_branch Linear(2, 1) stored as a [1,2] row for the in-kernel lane reduce
    p["wa"] = xavier(ks[9], (2, 1)).reshape(1, 2)
    p["ba"] = 0.01 * jax.random.normal(ks[10], (1, 1), jnp.float32)
    return p


# ----------------------------------------------------------------------------
# Main
# ----------------------------------------------------------------------------

if __name__ == "__main__":
    key = jax.random.PRNGKey(0)
    k_par, k_img, k_exp = jax.random.split(key, 3)
    feature_dim = 128  # small lane-dense stand-in for the 2048-dim ResNet-50 feature

    params = init_params(k_par, feature_dim)
    images = jax.random.normal(k_img, (2, 3, 32, 32), jnp.float32)        # NCHW
    explanations = jax.random.normal(k_exp, (2, 3, 32, 32), jnp.float32)  # NCHW

    fwd = jax.jit(cnn_finernetwork_forward)
    output, input_feat, exp_feat, extra = fwd(params, images, explanations)
    jax.block_until_ready((output, input_feat, exp_feat))

    assert output.shape == (2, 1)
    assert input_feat.shape == (2, feature_dim)
    assert exp_feat.shape == (2, feature_dim)
    assert extra is None
    print("KERNEL_OK")
</pallas_src>

<mosaic_0001>
module attributes {stable_mosaic.version = 11 : i64} {
  func.func @_s2d_conv_kernel(%arg0: i32, %arg1: memref<1x17x17x12xbf16, #tpu.memory_space<vmem>>, %arg2: memref<4x12x128xbf16, #tpu.memory_space<vmem>>, %arg3: memref<1x128xf32, #tpu.memory_space<vmem>>, %arg4: memref<1x128xf32, #tpu.memory_space<vmem>>, %arg5: memref<1x16x16x128xbf16, #tpu.memory_space<vmem>>) attributes {dimension_semantics = [#tpu.dimension_semantics<parallel>], iteration_bounds = array<i64: 4>, scalar_prefetch = 0 : i64, scratch_operands = 0 : i64, tpu.core_type = #tpu.core_type<tc>, window_params = [{transform_indices = @transform_0, window_bounds = array<i64: 1, 17, 17, 12>}, {pipeline_mode = #tpu.pipeline_mode<synchronous>, transform_indices = @transform_1, window_bounds = array<i64: 4, 12, 128>}, {pipeline_mode = #tpu.pipeline_mode<synchronous>, transform_indices = @transform_2, window_bounds = array<i64: 1, 128>}, {pipeline_mode = #tpu.pipeline_mode<synchronous>, transform_indices = @transform_3, window_bounds = array<i64: 1, 128>}, {transform_indices = @transform_4, window_bounds = array<i64: 1, 16, 16, 128>}]} {
    %c0 = arith.constant 0 : index
    %c0_0 = arith.constant 0 : index
    %c0_1 = arith.constant 0 : index
    %c0_2 = arith.constant 0 : index
    %0 = vector.load %arg1[%c0, %c0_0, %c0_1, %c0_2] : memref<1x17x17x12xbf16, #tpu.memory_space<vmem>>, vector<1x17x17x12xbf16>
    %1 = vector.shape_cast %0 : vector<1x17x17x12xbf16> to vector<17x17x12xbf16>
    %cst = arith.constant 0.000000e+00 : f32
    %2 = vector.broadcast %cst : f32 to vector<256x128xf32>
    %3 = vector.extract_strided_slice %1 {offsets = [0, 0, 0], sizes = [16, 16, 12], strides = [1, 1, 1]} : vector<17x17x12xbf16> to vector<16x16x12xbf16>
    %4 = vector.shape_cast %3 : vector<16x16x12xbf16> to vector<256x12xbf16>
    %c0_3 = arith.constant 0 : index
    %c0_4 = arith.constant 0 : index
    %c0_5 = arith.constant 0 : index
    %5 = vector.load %arg2[%c0_3, %c0_4, %c0_5] : memref<4x12x128xbf16, #tpu.memory_space<vmem>>, vector<1x12x128xbf16>
    %6 = vector.shape_cast %5 : vector<1x12x128xbf16> to vector<12x128xbf16>
    %cst_6 = arith.constant dense<0.000000e+00> : vector<256x128xf32>
    %7 = tpu.matmul %4, %6, %cst_6 {dimension_numbers = #tpu.dot_dimension_numbers<[1], [0], [0], [1], [0, 0, 1, 1], [], []>} : vector<256x12xbf16>, vector<12x128xbf16>, vector<256x128xf32> -> vector<256x128xf32>
    %8 = arith.addf %2, %7 : vector<256x128xf32>
    %9 = vector.extract_strided_slice %1 {offsets = [0, 1, 0], sizes = [16, 16, 12], strides = [1, 1, 1]} : vector<17x17x12xbf16> to vector<16x16x12xbf16>
    %10 = vector.shape_cast %9 : vector<16x16x12xbf16> to vector<256x12xbf16>
    %c1 = arith.constant 1 : index
    %c0_7 = arith.constant 0 : index
    %c0_8 = arith.constant 0 : index
    %11 = vector.load %arg2[%c1, %c0_7, %c0_8] : memref<4x12x128xbf16, #tpu.memory_space<vmem>>, vector<1x12x128xbf16>
    %12 = vector.shape_cast %11 : vector<1x12x128xbf16> to vector<12x128xbf16>
    %cst_9 = arith.constant dense<0.000000e+00> : vector<256x128xf32>
    %13 = tpu.matmul %10, %12, %cst_9 {dimension_numbers = #tpu.dot_dimension_numbers<[1], [0], [0], [1], [0, 0, 1, 1], [], []>} : vector<256x12xbf16>, vector<12x128xbf16>, vector<256x128xf32> -> vector<256x128xf32>
    %14 = arith.addf %8, %13 : vector<256x128xf32>
    %15 = vector.extract_strided_slice %1 {offsets = [1, 0, 0], sizes = [16, 16, 12], strides = [1, 1, 1]} : vector<17x17x12xbf16> to vector<16x16x12xbf16>
    %16 = vector.shape_cast %15 : vector<16x16x12xbf16> to vector<256x12xbf16>
    %c2 = arith.constant 2 : index
    %c0_10 = arith.constant 0 : index
    %c0_11 = arith.constant 0 : index
    %17 = vector.load %arg2[%c2, %c0_10, %c0_11] : memref<4x12x128xbf16, #tpu.memory_space<vmem>>, vector<1x12x128xbf16>
    %18 = vector.shape_cast %17 : vector<1x12x128xbf16> to vector<12x128xbf16>
    %cst_12 = arith.constant dense<0.000000e+00> : vector<256x128xf32>
    %19 = tpu.matmul %16, %18, %cst_12 {dimension_numbers = #tpu.dot_dimension_numbers<[1], [0], [0], [1], [0, 0, 1, 1], [], []>} : vector<256x12xbf16>, vector<12x128xbf16>, vector<256x128xf32> -> vector<256x128xf32>
    %20 = arith.addf %14, %19 : vector<256x128xf32>
    %21 = vector.extract_strided_slice %1 {offsets = [1, 1, 0], sizes = [16, 16, 12], strides = [1, 1, 1]} : vector<17x17x12xbf16> to vector<16x16x12xbf16>
    %22 = vector.shape_cast %21 : vector<16x16x12xbf16> to vector<256x12xbf16>
    %c3 = arith.constant 3 : index
    %c0_13 = arith.constant 0 : index
    %c0_14 = arith.constant 0 : index
    %23 = vector.load %arg2[%c3, %c0_13, %c0_14] : memref<4x12x128xbf16, #tpu.memory_space<vmem>>, vector<1x12x128xbf16>
    %24 = vector.shape_cast %23 : vector<1x12x128xbf16> to vector<12x128xbf16>
    %cst_15 = arith.constant dense<0.000000e+00> : vector<256x128xf32>
    %25 = tpu.matmul %22, %24, %cst_15 {dimension_numbers = #tpu.dot_dimension_numbers<[1], [0], [0], [1], [0, 0, 1, 1], [], []>} : vector<256x12xbf16>, vector<12x128xbf16>, vector<256x128xf32> -> vector<256x128xf32>
    %26 = arith.addf %20, %25 : vector<256x128xf32>
    %c0_16 = arith.constant 0 : index
    %c0_17 = arith.constant 0 : index
    %27 = vector.load %arg3[%c0_16, %c0_17] : memref<1x128xf32, #tpu.memory_space<vmem>>, vector<1x128xf32>
    %28 = vector.broadcast %27 : vector<1x128xf32> to vector<256x128xf32>
    %29 = arith.mulf %26, %28 : vector<256x128xf32>
    %c0_18 = arith.constant 0 : index
    %c0_19 = arith.constant 0 : index
    %30 = vector.load %arg4[%c0_18, %c0_19] : memref<1x128xf32, #tpu.memory_space<vmem>>, vector<1x128xf32>
    %31 = vector.broadcast %30 : vector<1x128xf32> to vector<256x128xf32>
    %32 = arith.addf %29, %31 : vector<256x128xf32>
    %cst_20 = arith.constant 0.000000e+00 : f32
    %33 = vector.broadcast %cst_20 : f32 to vector<256x128xf32>
    %34 = arith.maximumf %32, %33 : vector<256x128xf32>
    %35 = vector.shape_cast %34 : vector<256x128xf32> to vector<1x16x16x128xf32>
    %36 = arith.truncf %35 : vector<1x16x16x128xf32> to vector<1x16x16x128xbf16>
    %c0_21 = arith.constant 0 : index
    %c0_22 = arith.constant 0 : index
    %c0_23 = arith.constant 0 : index
    %c0_24 = arith.constant 0 : index
    %37 = vector.load %arg5[%c0_21, %c0_22, %c0_23, %c0_24] : memref<1x16x16x128xbf16, #tpu.memory_space<vmem>>, vector<1x16x16x128xbf16>
    tpu.vector_store %arg5[%c0_21, %c0_22, %c0_23, %c0_24], %36 {strides = array<i32>} : memref<1x16x16x128xbf16, #tpu.memory_space<vmem>>, vector<1x16x16x128xbf16>,
    return
  }
  func.func @transform_0(%arg0: i32) -> (i32, i32, i32, i32) {
    %c0_i32 = arith.constant 0 : i32
    %c0_i32_0 = arith.constant 0 : i32
    %c0_i32_1 = arith.constant 0 : i32
    %c0_i32_2 = arith.constant 0 : i32
    return %arg0, %c0_i32, %c0_i32_0, %c0_i32_1 : i32, i32, i32, i32
  }
  func.func @transform_1(%arg0: i32) -> (i32, i32, i32) {
    %c0_i32 = arith.constant 0 : i32
    %c0_i32_0 = arith.constant 0 : i32
    %c0_i32_1 = arith.constant 0 : i32
    %c0_i32_2 = arith.constant 0 : i32
    return %c0_i32, %c0_i32_0, %c0_i32_1 : i32, i32, i32
  }
  func.func @transform_2(%arg0: i32) -> (i32, i32) {
    %c0_i32 = arith.constant 0 : i32
    %c0_i32_0 = arith.constant 0 : i32
    %c0_i32_1 = arith.constant 0 : i32
    return %c0_i32, %c0_i32_0 : i32, i32
  }
  func.func @transform_3(%arg0: i32) -> (i32, i32) {
    %c0_i32 = arith.constant 0 : i32
    %c0_i32_0 = arith.constant 0 : i32
    %c0_i32_1 = arith.constant 0 : i32
    return %c0_i32, %c0_i32_0 : i32, i32
  }
  func.func @transform_4(%arg0: i32) -> (i32, i32, i32, i32) {
    %c0_i32 = arith.constant 0 : i32
    %c0_i32_0 = arith.constant 0 : i32
    %c0_i32_1 = arith.constant 0 : i32
    %c0_i32_2 = arith.constant 0 : i32
    return %arg0, %c0_i32, %c0_i32_0, %c0_i32_1 : i32, i32, i32, i32
  }
}

module attributes {stable_mosaic.version = 11 : i64} {
  func.func @_s2d_conv_kernel(%arg0: i32, %arg1: memref<1x9x9x512xbf16, #tpu.memory_space<vmem>>, %arg2: memref<4x512x128xbf16, #tpu.memory_space<vmem>>, %arg3: memref<1x128xf32, #tpu.memory_space<vmem>>, %arg4: memref<1x128xf32, #tpu.memory_space<vmem>>, %arg5: memref<1x8x8x128xbf16, #tpu.memory_space<vmem>>) attributes {dimension_semantics = [#tpu.dimension_semantics<parallel>], iteration_bounds = array<i64: 4>, scalar_prefetch = 0 : i64, scratch_operands = 0 : i64, tpu.core_type = #tpu.core_type<tc>, window_params = [{transform_indices = @transform_0, window_bounds = array<i64: 1, 9, 9, 512>}, {pipeline_mode = #tpu.pipeline_mode<synchronous>, transform_indices = @transform_1, window_bounds = array<i64: 4, 512, 128>}, {pipeline_mode = #tpu.pipeline_mode<synchronous>, transform_indices = @transform_2, window_bounds = array<i64: 1, 128>}, {pipeline_mode = #tpu.pipeline_mode<synchronous>, transform_indices = @transform_3, window_bounds = array<i64: 1, 128>}, {transform_indices = @transform_4, window_bounds = array<i64: 1, 8, 8, 128>}]} {
    %c0 = arith.constant 0 : index
    %c0_0 = arith.constant 0 : index
    %c0_1 = arith.constant 0 : index
    %c0_2 = arith.constant 0 : index
    %0 = vector.load %arg1[%c0, %c0_0, %c0_1, %c0_2] : memref<1x9x9x512xbf16, #tpu.memory_space<vmem>>, vector<1x9x9x512xbf16>
    %1 = vector.shape_cast %0 : vector<1x9x9x512xbf16> to vector<9x9x512xbf16>
    %cst = arith.constant 0.000000e+00 : f32
    %2 = vector.broadcast %cst : f32 to vector<64x128xf32>
    %3 = vector.extract_strided_slice %1 {offsets = [0, 0, 0], sizes = [8, 8, 512], strides = [1, 1, 1]} : vector<9x9x512xbf16> to vector<8x8x512xbf16>
    %4 = vector.shape_cast %3 : vector<8x8x512xbf16> to vector<64x512xbf16>
    %c0_3 = arith.constant 0 : index
    %c0_4 = arith.constant 0 : index
    %c0_5 = arith.constant 0 : index
    %5 = vector.load %arg2[%c0_3, %c0_4, %c0_5] : memref<4x512x128xbf16, #tpu.memory_space<vmem>>, vector<1x512x128xbf16>
    %6 = vector.shape_cast %5 : vector<1x512x128xbf16> to vector<512x128xbf16>
    %cst_6 = arith.constant dense<0.000000e+00> : vector<64x128xf32>
    %7 = tpu.matmul %4, %6, %cst_6 {dimension_numbers = #tpu.dot_dimension_numbers<[1], [0], [0], [1], [0, 0, 1, 1], [], []>} : vector<64x512xbf16>, vector<512x128xbf16>, vector<64x128xf32> -> vector<64x128xf32>
    %8 = arith.addf %2, %7 : vector<64x128xf32>
    %9 = vector.extract_strided_slice %1 {offsets = [0, 1, 0], sizes = [8, 8, 512], strides = [1, 1, 1]} : vector<9x9x512xbf16> to vector<8x8x512xbf16>
    %10 = vector.shape_cast %9 : vector<8x8x512xbf16> to vector<64x512xbf16>
    %c1 = arith.constant 1 : index
    %c0_7 = arith.constant 0 : index
    %c0_8 = arith.constant 0 : index
    %11 = vector.load %arg2[%c1, %c0_7, %c0_8] : memref<4x512x128xbf16, #tpu.memory_space<vmem>>, vector<1x512x128xbf16>
    %12 = vector.shape_cast %11 : vector<1x512x128xbf16> to vector<512x128xbf16>
    %cst_9 = arith.constant dense<0.000000e+00> : vector<64x128xf32>
    %13 = tpu.matmul %10, %12, %cst_9 {dimension_numbers = #tpu.dot_dimension_numbers<[1], [0], [0], [1], [0, 0, 1, 1], [], []>} : vector<64x512xbf16>, vector<512x128xbf16>, vector<64x128xf32> -> vector<64x128xf32>
    %14 = arith.addf %8, %13 : vector<64x128xf32>
    %15 = vector.extract_strided_slice %1 {offsets = [1, 0, 0], sizes = [8, 8, 512], strides = [1, 1, 1]} : vector<9x9x512xbf16> to vector<8x8x512xbf16>
    %16 = vector.shape_cast %15 : vector<8x8x512xbf16> to vector<64x512xbf16>
    %c2 = arith.constant 2 : index
    %c0_10 = arith.constant 0 : index
    %c0_11 = arith.constant 0 : index
    %17 = vector.load %arg2[%c2, %c0_10, %c0_11] : memref<4x512x128xbf16, #tpu.memory_space<vmem>>, vector<1x512x128xbf16>
    %18 = vector.shape_cast %17 : vector<1x512x128xbf16> to vector<512x128xbf16>
    %cst_12 = arith.constant dense<0.000000e+00> : vector<64x128xf32>
    %19 = tpu.matmul %16, %18, %cst_12 {dimension_numbers = #tpu.dot_dimension_numbers<[1], [0], [0], [1], [0, 0, 1, 1], [], []>} : vector<64x512xbf16>, vector<512x128xbf16>, vector<64x128xf32> -> vector<64x128xf32>
    %20 = arith.addf %14, %19 : vector<64x128xf32>
    %21 = vector.extract_strided_slice %1 {offsets = [1, 1, 0], sizes = [8, 8, 512], strides = [1, 1, 1]} : vector<9x9x512xbf16> to vector<8x8x512xbf16>
    %22 = vector.shape_cast %21 : vector<8x8x512xbf16> to vector<64x512xbf16>
    %c3 = arith.constant 3 : index
    %c0_13 = arith.constant 0 : index
    %c0_14 = arith.constant 0 : index
    %23 = vector.load %arg2[%c3, %c0_13, %c0_14] : memref<4x512x128xbf16, #tpu.memory_space<vmem>>, vector<1x512x128xbf16>
    %24 = vector.shape_cast %23 : vector<1x512x128xbf16> to vector<512x128xbf16>
    %cst_15 = arith.constant dense<0.000000e+00> : vector<64x128xf32>
    %25 = tpu.matmul %22, %24, %cst_15 {dimension_numbers = #tpu.dot_dimension_numbers<[1], [0], [0], [1], [0, 0, 1, 1], [], []>} : vector<64x512xbf16>, vector<512x128xbf16>, vector<64x128xf32> -> vector<64x128xf32>
    %26 = arith.addf %20, %25 : vector<64x128xf32>
    %c0_16 = arith.constant 0 : index
    %c0_17 = arith.constant 0 : index
    %27 = vector.load %arg3[%c0_16, %c0_17] : memref<1x128xf32, #tpu.memory_space<vmem>>, vector<1x128xf32>
    %28 = vector.broadcast %27 : vector<1x128xf32> to vector<64x128xf32>
    %29 = arith.mulf %26, %28 : vector<64x128xf32>
    %c0_18 = arith.constant 0 : index
    %c0_19 = arith.constant 0 : index
    %30 = vector.load %arg4[%c0_18, %c0_19] : memref<1x128xf32, #tpu.memory_space<vmem>>, vector<1x128xf32>
    %31 = vector.broadcast %30 : vector<1x128xf32> to vector<64x128xf32>
    %32 = arith.addf %29, %31 : vector<64x128xf32>
    %cst_20 = arith.constant 0.000000e+00 : f32
    %33 = vector.broadcast %cst_20 : f32 to vector<64x128xf32>
    %34 = arith.maximumf %32, %33 : vector<64x128xf32>
    %35 = vector.shape_cast %34 : vector<64x128xf32> to vector<1x8x8x128xf32>
    %36 = arith.truncf %35 : vector<1x8x8x128xf32> to vector<1x8x8x128xbf16>
    %c0_21 = arith.constant 0 : index
    %c0_22 = arith.constant 0 : index
    %c0_23 = arith.constant 0 : index
    %c0_24 = arith.constant 0 : index
    %37 = vector.load %arg5[%c0_21, %c0_22, %c0_23, %c0_24] : memref<1x8x8x128xbf16, #tpu.memory_space<vmem>>, vector<1x8x8x128xbf16>
    tpu.vector_store %arg5[%c0_21, %c0_22, %c0_23, %c0_24], %36 {strides = array<i32>} : memref<1x8x8x128xbf16, #tpu.memory_space<vmem>>, vector<1x8x8x128xbf16>,
    return
  }
  func.func @transform_0(%arg0: i32) -> (i32, i32, i32, i32) {
    %c0_i32 = arith.constant 0 : i32
    %c0_i32_0 = arith.constant 0 : i32
    %c0_i32_1 = arith.constant 0 : i32
    %c0_i32_2 = arith.constant 0 : i32
    return %arg0, %c0_i32, %c0_i32_0, %c0_i32_1 : i32, i32, i32, i32
  }
  func.func @transform_1(%arg0: i32) -> (i32, i32, i32) {
    %c0_i32 = arith.constant 0 : i32
    %c0_i32_0 = arith.constant 0 : i32
    %c0_i32_1 = arith.constant 0 : i32
    %c0_i32_2 = arith.constant 0 : i32
    return %c0_i32, %c0_i32_0, %c0_i32_1 : i32, i32, i32
  }
  func.func @transform_2(%arg0: i32) -> (i32, i32) {
    %c0_i32 = arith.constant 0 : i32
    %c0_i32_0 = arith.constant 0 : i32
    %c0_i32_1 = arith.constant 0 : i32
    return %c0_i32, %c0_i32_0 : i32, i32
  }
  func.func @transform_3(%arg0: i32) -> (i32, i32) {
    %c0_i32 = arith.constant 0 : i32
    %c0_i32_0 = arith.constant 0 : i32
    %c0_i32_1 = arith.constant 0 : i32
    return %c0_i32, %c0_i32_0 : i32, i32
  }
  func.func @transform_4(%arg0: i32) -> (i32, i32, i32, i32) {
    %c0_i32 = arith.constant 0 : i32
    %c0_i32_0 = arith.constant 0 : i32
    %c0_i32_1 = arith.constant 0 : i32
    %c0_i32_2 = arith.constant 0 : i32
    return %arg0, %c0_i32, %c0_i32_0, %c0_i32_1 : i32, i32, i32, i32
  }
}

module attributes {stable_mosaic.version = 11 : i64} {
  func.func @_s2d_conv_kernel(%arg0: i32, %arg1: memref<1x5x5x512xbf16, #tpu.memory_space<vmem>>, %arg2: memref<4x512x128xbf16, #tpu.memory_space<vmem>>, %arg3: memref<1x128xf32, #tpu.memory_space<vmem>>, %arg4: memref<1x128xf32, #tpu.memory_space<vmem>>, %arg5: memref<1x1x1x128xf32, #tpu.memory_space<vmem>>) attributes {dimension_semantics = [#tpu.dimension_semantics<parallel>], iteration_bounds = array<i64: 4>, scalar_prefetch = 0 : i64, scratch_operands = 0 : i64, tpu.core_type = #tpu.core_type<tc>, window_params = [{transform_indices = @transform_0, window_bounds = array<i64: 1, 5, 5, 512>}, {pipeline_mode = #tpu.pipeline_mode<synchronous>, transform_indices = @transform_1, window_bounds = array<i64: 4, 512, 128>}, {pipeline_mode = #tpu.pipeline_mode<synchronous>, transform_indices = @transform_2, window_bounds = array<i64: 1, 128>}, {pipeline_mode = #tpu.pipeline_mode<synchronous>, transform_indices = @transform_3, window_bounds = array<i64: 1, 128>}, {transform_indices = @transform_4, window_bounds = array<i64: 1, 1, 1, 128>}]} {
    %c0 = arith.constant 0 : index
    %c0_0 = arith.constant 0 : index
    %c0_1 = arith.constant 0 : index
    %c0_2 = arith.constant 0 : index
    %0 = vector.load %arg1[%c0, %c0_0, %c0_1, %c0_2] : memref<1x5x5x512xbf16, #tpu.memory_space<vmem>>, vector<1x5x5x512xbf16>
    %1 = vector.shape_cast %0 : vector<1x5x5x512xbf16> to vector<5x5x512xbf16>
    %cst = arith.constant 0.000000e+00 : f32
    %2 = vector.broadcast %cst : f32 to vector<16x128xf32>
    %3 = vector.extract_strided_slice %1 {offsets = [0, 0, 0], sizes = [4, 4, 512], strides = [1, 1, 1]} : vector<5x5x512xbf16> to vector<4x4x512xbf16>
    %4 = vector.shape_cast %3 : vector<4x4x512xbf16> to vector<16x512xbf16>
    %c0_3 = arith.constant 0 : index
    %c0_4 = arith.constant 0 : index
    %c0_5 = arith.constant 0 : index
    %5 = vector.load %arg2[%c0_3, %c0_4, %c0_5] : memref<4x512x128xbf16, #tpu.memory_space<vmem>>, vector<1x512x128xbf16>
    %6 = vector.shape_cast %5 : vector<1x512x128xbf16> to vector<512x128xbf16>
    %cst_6 = arith.constant dense<0.000000e+00> : vector<16x128xf32>
    %7 = tpu.matmul %4, %6, %cst_6 {dimension_numbers = #tpu.dot_dimension_numbers<[1], [0], [0], [1], [0, 0, 1, 1], [], []>} : vector<16x512xbf16>, vector<512x128xbf16>, vector<16x128xf32> -> vector<16x128xf32>
    %8 = arith.addf %2, %7 : vector<16x128xf32>
    %9 = vector.extract_strided_slice %1 {offsets = [0, 1, 0], sizes = [4, 4, 512], strides = [1, 1, 1]} : vector<5x5x512xbf16> to vector<4x4x512xbf16>
    %10 = vector.shape_cast %9 : vector<4x4x512xbf16> to vector<16x512xbf16>
    %c1 = arith.constant 1 : index
    %c0_7 = arith.constant 0 : index
    %c0_8 = arith.constant 0 : index
    %11 = vector.load %arg2[%c1, %c0_7, %c0_8] : memref<4x512x128xbf16, #tpu.memory_space<vmem>>, vector<1x512x128xbf16>
    %12 = vector.shape_cast %11 : vector<1x512x128xbf16> to vector<512x128xbf16>
    %cst_9 = arith.constant dense<0.000000e+00> : vector<16x128xf32>
    %13 = tpu.matmul %10, %12, %cst_9 {dimension_numbers = #tpu.dot_dimension_numbers<[1], [0], [0], [1], [0, 0, 1, 1], [], []>} : vector<16x512xbf16>, vector<512x128xbf16>, vector<16x128xf32> -> vector<16x128xf32>
    %14 = arith.addf %8, %13 : vector<16x128xf32>
    %15 = vector.extract_strided_slice %1 {offsets = [1, 0, 0], sizes = [4, 4, 512], strides = [1, 1, 1]} : vector<5x5x512xbf16> to vector<4x4x512xbf16>
    %16 = vector.shape_cast %15 : vector<4x4x512xbf16> to vector<16x512xbf16>
    %c2 = arith.constant 2 : index
    %c0_10 = arith.constant 0 : index
    %c0_11 = arith.constant 0 : index
    %17 = vector.load %arg2[%c2, %c0_10, %c0_11] : memref<4x512x128xbf16, #tpu.memory_space<vmem>>, vector<1x512x128xbf16>
    %18 = vector.shape_cast %17 : vector<1x512x128xbf16> to vector<512x128xbf16>
    %cst_12 = arith.constant dense<0.000000e+00> : vector<16x128xf32>
    %19 = tpu.matmul %16, %18, %cst_12 {dimension_numbers = #tpu.dot_dimension_numbers<[1], [0], [0], [1], [0, 0, 1, 1], [], []>} : vector<16x512xbf16>, vector<512x128xbf16>, vector<16x128xf32> -> vector<16x128xf32>
    %20 = arith.addf %14, %19 : vector<16x128xf32>
    %21 = vector.extract_strided_slice %1 {offsets = [1, 1, 0], sizes = [4, 4, 512], strides = [1, 1, 1]} : vector<5x5x512xbf16> to vector<4x4x512xbf16>
    %22 = vector.shape_cast %21 : vector<4x4x512xbf16> to vector<16x512xbf16>
    %c3 = arith.constant 3 : index
    %c0_13 = arith.constant 0 : index
    %c0_14 = arith.constant 0 : index
    %23 = vector.load %arg2[%c3, %c0_13, %c0_14] : memref<4x512x128xbf16, #tpu.memory_space<vmem>>, vector<1x512x128xbf16>
    %24 = vector.shape_cast %23 : vector<1x512x128xbf16> to vector<512x128xbf16>
    %cst_15 = arith.constant dense<0.000000e+00> : vector<16x128xf32>
    %25 = tpu.matmul %22, %24, %cst_15 {dimension_numbers = #tpu.dot_dimension_numbers<[1], [0], [0], [1], [0, 0, 1, 1], [], []>} : vector<16x512xbf16>, vector<512x128xbf16>, vector<16x128xf32> -> vector<16x128xf32>
    %26 = arith.addf %20, %25 : vector<16x128xf32>
    %c0_16 = arith.constant 0 : index
    %c0_17 = arith.constant 0 : index
    %27 = vector.load %arg3[%c0_16, %c0_17] : memref<1x128xf32, #tpu.memory_space<vmem>>, vector<1x128xf32>
    %28 = vector.broadcast %27 : vector<1x128xf32> to vector<16x128xf32>
    %29 = arith.mulf %26, %28 : vector<16x128xf32>
    %c0_18 = arith.constant 0 : index
    %c0_19 = arith.constant 0 : index
    %30 = vector.load %arg4[%c0_18, %c0_19] : memref<1x128xf32, #tpu.memory_space<vmem>>, vector<1x128xf32>
    %31 = vector.broadcast %30 : vector<1x128xf32> to vector<16x128xf32>
    %32 = arith.addf %29, %31 : vector<16x128xf32>
    %cst_20 = arith.constant 0.000000e+00 : f32
    %33 = vector.broadcast %cst_20 : f32 to vector<16x128xf32>
    %34 = arith.maximumf %32, %33 : vector<16x128xf32>
    %cst_21 = arith.constant dense<0.000000e+00> : vector<128xf32>
    %35 = vector.multi_reduction <add>, %34, %cst_21 [0] : vector<16x128xf32> to vector<128xf32>
    %36 = vector.shape_cast %35 : vector<128xf32> to vector<1x128xf32>
    %cst_22 = arith.constant 1.600000e+01 : f32
    %37 = vector.broadcast %cst_22 : f32 to vector<1x128xf32>
    %38 = arith.divf %36, %37 : vector<1x128xf32>
    %39 = vector.shape_cast %38 : vector<1x128xf32> to vector<1x1x1x128xf32>
    %c0_23 = arith.constant 0 : index
    %c0_24 = arith.constant 0 : index
    %c0_25 = arith.constant 0 : index
    %c0_26 = arith.constant 0 : index
    %40 = vector.load %arg5[%c0_23, %c0_24, %c0_25, %c0_26] : memref<1x1x1x128xf32, #tpu.memory_space<vmem>>, vector<1x1x1x128xf32>
    tpu.vector_store %arg5[%c0_23, %c0_24, %c0_25, %c0_26], %39 {strides = array<i32>} : memref<1x1x1x128xf32, #tpu.memory_space<vmem>>, vector<1x1x1x128xf32>,
    return
  }
  func.func @transform_0(%arg0: i32) -> (i32, i32, i32, i32) {
    %c0_i32 = arith.constant 0 : i32
    %c0_i32_0 = arith.constant 0 : i32
    %c0_i32_1 = arith.constant 0 : i32
    %c0_i32_2 = arith.constant 0 : i32
    return %arg0, %c0_i32, %c0_i32_0, %c0_i32_1 : i32, i32, i32, i32
  }
  func.func @transform_1(%arg0: i32) -> (i32, i32, i32) {
    %c0_i32 = arith.constant 0 : i32
    %c0_i32_0 = arith.constant 0 : i32
    %c0_i32_1 = arith.constant 0 : i32
    %c0_i32_2 = arith.constant 0 : i32
    return %c0_i32, %c0_i32_0, %c0_i32_1 : i32, i32, i32
  }
  func.func @transform_2(%arg0: i32) -> (i32, i32) {
    %c0_i32 = arith.constant 0 : i32
    %c0_i32_0 = arith.constant 0 : i32
    %c0_i32_1 = arith.constant 0 : i32
    return %c0_i32, %c0_i32_0 : i32, i32
  }
  func.func @transform_3(%arg0: i32) -> (i32, i32) {
    %c0_i32 = arith.constant 0 : i32
    %c0_i32_0 = arith.constant 0 : i32
    %c0_i32_1 = arith.constant 0 : i32
    return %c0_i32, %c0_i32_0 : i32, i32
  }
  func.func @transform_4(%arg0: i32) -> (i32, i32, i32, i32) {
    %c0_i32 = arith.constant 0 : i32
    %c0_i32_0 = arith.constant 0 : i32
    %c0_i32_1 = arith.constant 0 : i32
    %c0_i32_2 = arith.constant 0 : i32
    return %arg0, %c0_i32, %c0_i32_0, %c0_i32_1 : i32, i32, i32, i32
  }
}

module attributes {stable_mosaic.version = 11 : i64} {
  func.func @_head_kernel(%arg0: i32, %arg1: memref<2x256xf32, #tpu.memory_space<vmem>>, %arg2: memref<256x192xf32, #tpu.memory_space<vmem>>, %arg3: memref<1x192xf32, #tpu.memory_space<vmem>>, %arg4: memref<1x192xf32, #tpu.memory_space<vmem>>, %arg5: memref<1x192xf32, #tpu.memory_space<vmem>>, %arg6: memref<192x32xf32, #tpu.memory_space<vmem>>, %arg7: memref<1x32xf32, #tpu.memory_space<vmem>>, %arg8: memref<1x32xf32, #tpu.memory_space<vmem>>, %arg9: memref<1x32xf32, #tpu.memory_space<vmem>>, %arg10: memref<32x2xf32, #tpu.memory_space<vmem>>, %arg11: memref<1x2xf32, #tpu.memory_space<vmem>>, %arg12: memref<1x2xf32, #tpu.memory_space<vmem>>, %arg13: memref<1x1xf32, #tpu.memory_space<vmem>>, %arg14: memref<2x1xf32, #tpu.memory_space<vmem>>) attributes {dimension_semantics = [#tpu.dimension_semantics<arbitrary>], iteration_bounds = array<i64: 1>, scalar_prefetch = 0 : i64, scratch_operands = 0 : i64, tpu.core_type = #tpu.core_type<tc>, window_params = [{pipeline_mode = #tpu.pipeline_mode<synchronous>, transform_indices = @transform_0, window_bounds = array<i64: 2, 256>}, {pipeline_mode = #tpu.pipeline_mode<synchronous>, transform_indices = @transform_1, window_bounds = array<i64: 256, 192>}, {pipeline_mode = #tpu.pipeline_mode<synchronous>, transform_indices = @transform_2, window_bounds = array<i64: 1, 192>}, {pipeline_mode = #tpu.pipeline_mode<synchronous>, transform_indices = @transform_3, window_bounds = array<i64: 1, 192>}, {pipeline_mode = #tpu.pipeline_mode<synchronous>, transform_indices = @transform_4, window_bounds = array<i64: 1, 192>}, {pipeline_mode = #tpu.pipeline_mode<synchronous>, transform_indices = @transform_5, window_bounds = array<i64: 192, 32>}, {pipeline_mode = #tpu.pipeline_mode<synchronous>, transform_indices = @transform_6, window_bounds = array<i64: 1, 32>}, {pipeline_mode = #tpu.pipeline_mode<synchronous>, transform_indices = @transform_7, window_bounds = array<i64: 1, 32>}, {pipeline_mode = #tpu.pipeline_mode<synchronous>, transform_indices = @transform_8, window_bounds = array<i64: 1, 32>}, {pipeline_mode = #tpu.pipeline_mode<synchronous>, transform_indices = @transform_9, window_bounds = array<i64: 32, 2>}, {pipeline_mode = #tpu.pipeline_mode<synchronous>, transform_indices = @transform_10, window_bounds = array<i64: 1, 2>}, {pipeline_mode = #tpu.pipeline_mode<synchronous>, transform_indices = @transform_11, window_bounds = array<i64: 1, 2>}, {pipeline_mode = #tpu.pipeline_mode<synchronous>, transform_indices = @transform_12, window_bounds = array<i64: 1, 1>}, {pipeline_mode = #tpu.pipeline_mode<synchronous>, transform_indices = @transform_13, window_bounds = array<i64: 2, 1>}]} {
    %c0 = arith.constant 0 : index
    %c0_0 = arith.constant 0 : index
    %0 = vector.load %arg1[%c0, %c0_0] : memref<2x256xf32, #tpu.memory_space<vmem>>, vector<2x256xf32>
    %c0_1 = arith.constant 0 : index
    %c0_2 = arith.constant 0 : index
    %1 = vector.load %arg2[%c0_1, %c0_2] : memref<256x192xf32, #tpu.memory_space<vmem>>, vector<256x192xf32>
    %cst = arith.constant dense<0.000000e+00> : vector<2x192xf32>
    %2 = tpu.matmul %0, %1, %cst {dimension_numbers = #tpu.dot_dimension_numbers<[1], [0], [0], [1], [0, 0, 1, 1], [], []>} : vector<2x256xf32>, vector<256x192xf32>, vector<2x192xf32> -> vector<2x192xf32>
    %c0_3 = arith.constant 0 : index
    %c0_4 = arith.constant 0 : index
    %3 = vector.load %arg3[%c0_3, %c0_4] : memref<1x192xf32, #tpu.memory_space<vmem>>, vector<1x192xf32>
    %4 = vector.broadcast %3 : vector<1x192xf32> to vector<2x192xf32>
    %5 = arith.addf %2, %4 : vector<2x192xf32>
    %c0_5 = arith.constant 0 : index
    %c0_6 = arith.constant 0 : index
    %6 = vector.load %arg4[%c0_5, %c0_6] : memref<1x192xf32, #tpu.memory_space<vmem>>, vector<1x192xf32>
    %c0_7 = arith.constant 0 : index
    %c0_8 = arith.constant 0 : index
    %7 = vector.load %arg5[%c0_7, %c0_8] : memref<1x192xf32, #tpu.memory_space<vmem>>, vector<1x192xf32>
    %cst_9 = arith.constant dense<0.000000e+00> : vector<192xf32>
    %8 = vector.multi_reduction <add>, %5, %cst_9 [0] : vector<2x192xf32> to vector<192xf32>
    %9 = vector.shape_cast %8 : vector<192xf32> to vector<1x192xf32>
    %cst_10 = arith.constant 2.000000e+00 : f32
    %10 = vector.broadcast %cst_10 : f32 to vector<1x192xf32>
    %11 = arith.divf %9, %10 : vector<1x192xf32>
    %12 = vector.broadcast %11 : vector<1x192xf32> to vector<2x192xf32>
    %13 = arith.subf %5, %12 : vector<2x192xf32>
    %14 = arith.mulf %13, %13 : vector<2x192xf32>
    %cst_11 = arith.constant dense<0.000000e+00> : vector<192xf32>
    %15 = vector.multi_reduction <add>, %14, %cst_11 [0] : vector<2x192xf32> to vector<192xf32>
    %16 = vector.shape_cast %15 : vector<192xf32> to vector<1x192xf32>
    %cst_12 = arith.constant 2.000000e+00 : f32
    %17 = vector.broadcast %cst_12 : f32 to vector<1x192xf32>
    %18 = arith.divf %16, %17 : vector<1x192xf32>
    %19 = vector.broadcast %11 : vector<1x192xf32> to vector<2x192xf32>
    %20 = arith.subf %5, %19 : vector<2x192xf32>
    %cst_13 = arith.constant 9.99999974E-6 : f32
    %21 = vector.broadcast %cst_13 : f32 to vector<1x192xf32>
    %22 = arith.addf %18, %21 : vector<1x192xf32>
    %23 = math.rsqrt %22 : vector<1x192xf32>
    %24 = vector.broadcast %23 : vector<1x192xf32> to vector<2x192xf32>
    %25 = arith.mulf %20, %24 : vector<2x192xf32>
    %26 = vector.broadcast %6 : vector<1x192xf32> to vector<2x192xf32>
    %27 = arith.mulf %25, %26 : vector<2x192xf32>
    %28 = vector.broadcast %7 : vector<1x192xf32> to vector<2x192xf32>
    %29 = arith.addf %27, %28 : vector<2x192xf32>
    %cst_14 = arith.constant 5.000000e-01 : f32
    %30 = vector.broadcast %cst_14 : f32 to vector<2x192xf32>
    %31 = arith.mulf %30, %29 : vector<2x192xf32>
    %cst_15 = arith.constant 4.471500e-02 : f32
    %32 = vector.broadcast %cst_15 : f32 to vector<2x192xf32>
    %33 = arith.mulf %32, %29 : vector<2x192xf32>
    %34 = arith.mulf %33, %29 : vector<2x192xf32>
    %35 = arith.mulf %34, %29 : vector<2x192xf32>
    %36 = arith.addf %29, %35 : vector<2x192xf32>
    %cst_16 = arith.constant 0.797884583 : f32
    %37 = vector.broadcast %cst_16 : f32 to vector<2x192xf32>
    %38 = arith.mulf %37, %36 : vector<2x192xf32>
    %39 = math.tanh %38 : vector<2x192xf32>
    %cst_17 = arith.constant 1.000000e+00 : f32
    %40 = vector.broadcast %cst_17 : f32 to vector<2x192xf32>
    %41 = arith.addf %40, %39 : vector<2x192xf32>
    %42 = arith.mulf %31, %41 : vector<2x192xf32>
    %c0_18 = arith.constant 0 : index
    %c0_19 = arith.constant 0 : index
    %43 = vector.load %arg6[%c0_18, %c0_19] : memref<192x32xf32, #tpu.memory_space<vmem>>, vector<192x32xf32>
    %cst_20 = arith.constant dense<0.000000e+00> : vector<2x32xf32>
    %44 = tpu.matmul %42, %43, %cst_20 {dimension_numbers = #tpu.dot_dimension_numbers<[1], [0], [0], [1], [0, 0, 1, 1], [], []>} : vector<2x192xf32>, vector<192x32xf32>, vector<2x32xf32> -> vector<2x32xf32>
    %c0_21 = arith.constant 0 : index
    %c0_22 = arith.constant 0 : index
    %45 = vector.load %arg7[%c0_21, %c0_22] : memref<1x32xf32, #tpu.memory_space<vmem>>, vector<1x32xf32>
    %46 = vector.broadcast %45 : vector<1x32xf32> to vector<2x32xf32>
    %47 = arith.addf %44, %46 : vector<2x32xf32>
    %c0_23 = arith.constant 0 : index
    %c0_24 = arith.constant 0 : index
    %48 = vector.load %arg8[%c0_23, %c0_24] : memref<1x32xf32, #tpu.memory_space<vmem>>, vector<1x32xf32>
    %c0_25 = arith.constant 0 : index
    %c0_26 = arith.constant 0 : index
    %49 = vector.load %arg9[%c0_25, %c0_26] : memref<1x32xf32, #tpu.memory_space<vmem>>, vector<1x32xf32>
    %cst_27 = arith.constant dense<0.000000e+00> : vector<32xf32>
    %50 = vector.multi_reduction <add>, %47, %cst_27 [0] : vector<2x32xf32> to vector<32xf32>
    %51 = vector.shape_cast %50 : vector<32xf32> to vector<1x32xf32>
    %cst_28 = arith.constant 2.000000e+00 : f32
    %52 = vector.broadcast %cst_28 : f32 to vector<1x32xf32>
    %53 = arith.divf %51, %52 : vector<1x32xf32>
    %54 = vector.broadcast %53 : vector<1x32xf32> to vector<2x32xf32>
    %55 = arith.subf %47, %54 : vector<2x32xf32>
    %56 = arith.mulf %55, %55 : vector<2x32xf32>
    %cst_29 = arith.constant dense<0.000000e+00> : vector<32xf32>
    %57 = vector.multi_reduction <add>, %56, %cst_29 [0] : vector<2x32xf32> to vector<32xf32>
    %58 = vector.shape_cast %57 : vector<32xf32> to vector<1x32xf32>
    %cst_30 = arith.constant 2.000000e+00 : f32
    %59 = vector.broadcast %cst_30 : f32 to vector<1x32xf32>
    %60 = arith.divf %58, %59 : vector<1x32xf32>
    %61 = vector.broadcast %53 : vector<1x32xf32> to vector<2x32xf32>
    %62 = arith.subf %47, %61 : vector<2x32xf32>
    %cst_31 = arith.constant 9.99999974E-6 : f32
    %63 = vector.broadcast %cst_31 : f32 to vector<1x32xf32>
    %64 = arith.addf %60, %63 : vector<1x32xf32>
    %65 = math.rsqrt %64 : vector<1x32xf32>
    %66 = vector.broadcast %65 : vector<1x32xf32> to vector<2x32xf32>
    %67 = arith.mulf %62, %66 : vector<2x32xf32>
    %68 = vector.broadcast %48 : vector<1x32xf32> to vector<2x32xf32>
    %69 = arith.mulf %67, %68 : vector<2x32xf32>
    %70 = vector.broadcast %49 : vector<1x32xf32> to vector<2x32xf32>
    %71 = arith.addf %69, %70 : vector<2x32xf32>
    %cst_32 = arith.constant 5.000000e-01 : f32
    %72 = vector.broadcast %cst_32 : f32 to vector<2x32xf32>
    %73 = arith.mulf %72, %71 : vector<2x32xf32>
    %cst_33 = arith.constant 4.471500e-02 : f32
    %74 = vector.broadcast %cst_33 : f32 to vector<2x32xf32>
    %75 = arith.mulf %74, %71 : vector<2x32xf32>
    %76 = arith.mulf %75, %71 : vector<2x32xf32>
    %77 = arith.mulf %76, %71 : vector<2x32xf32>
    %78 = arith.addf %71, %77 : vector<2x32xf32>
    %cst_34 = arith.constant 0.797884583 : f32
    %79 = vector.broadcast %cst_34 : f32 to vector<2x32xf32>
    %80 = arith.mulf %79, %78 : vector<2x32xf32>
    %81 = math.tanh %80 : vector<2x32xf32>
    %cst_35 = arith.constant 1.000000e+00 : f32
    %82 = vector.broadcast %cst_35 : f32 to vector<2x32xf32>
    %83 = arith.addf %82, %81 : vector<2x32xf32>
    %84 = arith.mulf %73, %83 : vector<2x32xf32>
    %c0_36 = arith.constant 0 : index
    %c0_37 = arith.constant 0 : index
    %85 = vector.load %arg10[%c0_36, %c0_37] : memref<32x2xf32, #tpu.memory_space<vmem>>, vector<32x2xf32>
    %cst_38 = arith.constant dense<0.000000e+00> : vector<2x2xf32>
    %86 = tpu.matmul %84, %85, %cst_38 {dimension_numbers = #tpu.dot_dimension_numbers<[1], [0], [0], [1], [0, 0, 1, 1], [], []>} : vector<2x32xf32>, vector<32x2xf32>, vector<2x2xf32> -> vector<2x2xf32>
    %c0_39 = arith.constant 0 : index
    %c0_40 = arith.constant 0 : index
    %87 = vector.load %arg11[%c0_39, %c0_40] : memref<1x2xf32, #tpu.memory_space<vmem>>, vector<1x2xf32>
    %88 = vector.broadcast %87 : vector<1x2xf32> to vector<2x2xf32>
    %89 = arith.addf %86, %88 : vector<2x2xf32>
    %c0_41 = arith.constant 0 : index
    %c0_42 = arith.constant 0 : index
    %90 = vector.load %arg12[%c0_41, %c0_42] : memref<1x2xf32, #tpu.memory_space<vmem>>, vector<1x2xf32>
    %91 = vector.broadcast %90 : vector<1x2xf32> to vector<2x2xf32>
    %92 = arith.mulf %89, %91 : vector<2x2xf32>
    %cst_43 = arith.constant dense<0.000000e+00> : vector<2xf32>
    %93 = vector.multi_reduction <add>, %92, %cst_43 [1] : vector<2x2xf32> to vector<2xf32>
    %94 = vector.shape_cast %93 : vector<2xf32> to vector<2x1xf32>
    %c0_44 = arith.constant 0 : index
    %c0_45 = arith.constant 0 : index
    %95 = vector.load %arg13[%c0_44, %c0_45] : memref<1x1xf32, #tpu.memory_space<vmem>>, vector<1x1xf32>
    %96 = vector.broadcast %95 : vector<1x1xf32> to vector<2x1xf32>
    %97 = arith.addf %94, %96 : vector<2x1xf32>
    %c0_46 = arith.constant 0 : index
    %c0_47 = arith.constant 0 : index
    %98 = vector.load %arg14[%c0_46, %c0_47] : memref<2x1xf32, #tpu.memory_space<vmem>>, vector<2x1xf32>
    tpu.vector_store %arg14[%c0_46, %c0_47], %97 {strides = array<i32>} : memref<2x1xf32, #tpu.memory_space<vmem>>, vector<2x1xf32>,
    return
  }
  func.func @transform_0(%arg0: i32) -> (i32, i32) {
    %c0_i32 = arith.constant 0 : i32
    %c0_i32_0 = arith.constant 0 : i32
    %c0_i32_1 = arith.constant 0 : i32
    return %c0_i32, %c0_i32_0 : i32, i32
  }
  func.func @transform_1(%arg0: i32) -> (i32, i32) {
    %c0_i32 = arith.constant 0 : i32
    %c0_i32_0 = arith.constant 0 : i32
    %c0_i32_1 = arith.constant 0 : i32
    return %c0_i32, %c0_i32_0 : i32, i32
  }
  func.func @transform_2(%arg0: i32) -> (i32, i32) {
    %c0_i32 = arith.constant 0 : i32
    %c0_i32_0 = arith.constant 0 : i32
    %c0_i32_1 = arith.constant 0 : i32
    return %c0_i32, %c0_i32_0 : i32, i32
  }
  func.func @transform_3(%arg0: i32) -> (i32, i32) {
    %c0_i32 = arith.constant 0 : i32
    %c0_i32_0 = arith.constant 0 : i32
    %c0_i32_1 = arith.constant 0 : i32
    return %c0_i32, %c0_i32_0 : i32, i32
  }
  func.func @transform_4(%arg0: i32) -> (i32, i32) {
    %c0_i32 = arith.constant 0 : i32
    %c0_i32_0 = arith.constant 0 : i32
    %c0_i32_1 = arith.constant 0 : i32
    return %c0_i32, %c0_i32_0 : i32, i32
  }
  func.func @transform_5(%arg0: i32) -> (i32, i32) {
    %c0_i32 = arith.constant 0 : i32
    %c0_i32_0 = arith.constant 0 : i32
    %c0_i32_1 = arith.constant 0 : i32
    return %c0_i32, %c0_i32_0 : i32, i32
  }
  func.func @transform_6(%arg0: i32) -> (i32, i32) {
    %c0_i32 = arith.constant 0 : i32
    %c0_i32_0 = arith.constant 0 : i32
    %c0_i32_1 = arith.constant 0 : i32
    return %c0_i32, %c0_i32_0 : i32, i32
  }
  func.func @transform_7(%arg0: i32) -> (i32, i32) {
    %c0_i32 = arith.constant 0 : i32
    %c0_i32_0 = arith.constant 0 : i32
    %c0_i32_1 = arith.constant 0 : i32
    return %c0_i32, %c0_i32_0 : i32, i32
  }
  func.func @transform_8(%arg0: i32) -> (i32, i32) {
    %c0_i32 = arith.constant 0 : i32
    %c0_i32_0 = arith.constant 0 : i32
    %c0_i32_1 = arith.constant 0 : i32
    return %c0_i32, %c0_i32_0 : i32, i32
  }
  func.func @transform_9(%arg0: i32) -> (i32, i32) {
    %c0_i32 = arith.constant 0 : i32
    %c0_i32_0 = arith.constant 0 : i32
    %c0_i32_1 = arith.constant 0 : i32
    return %c0_i32, %c0_i32_0 : i32, i32
  }
  func.func @transform_10(%arg0: i32) -> (i32, i32) {
    %c0_i32 = arith.constant 0 : i32
    %c0_i32_0 = arith.constant 0 : i32
    %c0_i32_1 = arith.constant 0 : i32
    return %c0_i32, %c0_i32_0 : i32, i32
  }
  func.func @transform_11(%arg0: i32) -> (i32, i32) {
    %c0_i32 = arith.constant 0 : i32
    %c0_i32_0 = arith.constant 0 : i32
    %c0_i32_1 = arith.constant 0 : i32
    return %c0_i32, %c0_i32_0 : i32, i32
  }
  func.func @transform_12(%arg0: i32) -> (i32, i32) {
    %c0_i32 = arith.constant 0 : i32
    %c0_i32_0 = arith.constant 0 : i32
    %c0_i32_1 = arith.constant 0 : i32
    return %c0_i32, %c0_i32_0 : i32, i32
  }
  func.func @transform_13(%arg0: i32) -> (i32, i32) {
    %c0_i32 = arith.constant 0 : i32
    %c0_i32_0 = arith.constant 0 : i32
    %c0_i32_1 = arith.constant 0 : i32
    return %c0_i32, %c0_i32_0 : i32, i32
  }
}

</mosaic_0001>

<bundles_post_ra>
// kernel: cnn_finernetwork_forward.4
= control target key start
LH: loop header
LB: loop body
LE: loop exit
PB: predicated region body
PF: predicated region fallthrough
CT: control target
= control target key end

     0   :  { %s2528_s15 = smov 0   ;;  %s3107_s0 = inlined_call_operand.vmem [shape: bf16[4,17,17,12], index: 0, kind: input, shape index: {}]   ;;  %s3108_s1 = inlined_call_operand.vmem [shape: bf16[4,12,128], index: 1, kind: input, shape index: {}]   ;;  %s3109_s2 = inlined_call_operand.vmem [shape: f32[1,128], index: 2, kind: input, shape index: {}]   ;;  %s3110_s3 = inlined_call_operand.vmem [shape: f32[1,128], index: 3, kind: input, shape index: {}]   ;;  %s3111_s4 = inlined_call_operand.vmem [shape: bf16[4,16,16,128], index: 4, kind: output, shape index: {}]  }
   0x1 LB: > { %s1977_s16 = sadd.s32 4294967295, %s2501_s15   ;;  %p1981_p0 = scmp.ge.s32.totalorder %s2501_s15, 1  ;;  %s2501_s15 = sphi %s2528_s15, %s14_s15  }
   0x2   : > { %p162_p1 = scmp.lt.s32.totalorder %s2501_s15, 5 }
   0x4   : > { %p163_p2 = pnand %p1981_p0, %p162_p1 }
   0x6   : > { %166 = sbr.rel (%p163_p2) target bundleno = 370 (0x172), region = 36 }
   0xb   : > { %vm744_vm0 = vcmask 1045504   ;;  %p188_p3 = scmp.lt.s32.totalorder %s1977_s16, 3  ;;  %v2474_v0 = vld [vmem:[%s3108_s1] sm:$0x3f]   ;;  %v2475_v1 = vld [vmem:[%s3108_s1 + $0x8] sm:$0x3f]  }
   0xc   : > { %2462 = vmatprep.subr.msk.bf16.mxu1 %vm744_vm0, %v2474_v0  ;;  %v1043_v2 = vsel %vm744_vm0, %v2474_v0, 0  ;;  %2461 = vmatprep.subr.msk.bf16.mxu0 %vm744_vm0, %v2475_v1  ;;  %v746_v3 = vsel %vm744_vm0, %v2475_v1, 0  ;;  %v2478_v4 = vld [vmem:[%s3108_s1 + $0x10] sm:$0x3f]   ;;  %v2479_v5 = vld [vmem:[%s3108_s1 + $0x18] sm:$0x3f]  }
   0xd   : > { %s3125_s16 = smov (!%p188_p3, %s1977_s16), 3  ;;  %2360 = vmatpush3.bf16.msra.mxu1 %v1043_v2  ;;  %2326 = vmatpush3.bf16.msra.mxu0 %v746_v3  ;;  %vm695_vm1 = vcmask 97280   ;;  %vm252_vm2 = vsmask.f32 3328  ;;  %vm253_vm3 = vsmask.f32 7440 }
   0xe   : > { %s2465_s21 = smul.u32 204, %s3125_s16  ;;  %2463 = vmatprep.subr.msk.bf16.mxu0 %vm744_vm0, %v2478_v4  ;;  %v2562_v6 = vsel %vm744_vm0, %v2478_v4, 0  ;;  %2464 = vmatprep.subr.msk.bf16.mxu1 %vm744_vm0, %v2479_v5  ;;  %vm2577_vm4 = vmor %vm252_vm2, %vm253_vm3  ;;  %v1457_v38 = vsel %vm744_vm0, %v2479_v5, 0  ;;  %s2129_s7 = sshll.u32 %s3125_s16, 7 }
   0xf   : > { %s2994_s10 = scalar_lea.vmem %s3111_s4, %s2129_s7 }
  0x10   : > { %s2558_s28 = scalar_lea.vmem %s3107_s0, %s2465_s21 }
  0x11   : > { %v199_v7 = vld [vmem:[%s2558_s28] sm:$0xf]  ;;  %v200_v8 = vld [vmem:[%s2558_s28 + $0x4] sm:$0xf]  ;;  %v202_v9 = vld [vmem:[%s2558_s28 + $0xc] sm:$0xf] }
  0x12   : > { %v256_v10 = vshrl.u32 %v199_v7, 16  ;;  %v259_v11 = vshll.u32 %v199_v7, 16  ;;  %v265_v12 = vshll.u32 %v200_v8, 16  ;;  %v269_v13 = vshrl.u32 %v200_v8, 16  ;;  %v203_v14 = vld [vmem:[%s2558_s28 + $0x10] sm:$0xf] }
  0x13   : > { %v2020_v15 = vcombine.low %v199_v7, %v200_v8  ;;  %v280_v16 = vshrl.u32 %v202_v9, 16  ;;  %v283_v17 = vshll.u32 %v202_v9, 16  ;;  %v289_v18 = vshll.u32 %v203_v14, 16  ;;  %v201_v19 = vld [vmem:[%s2558_s28 + $0x8] sm:$0x1] }
  0x14   : > { %v258_v20 = vrot.slane %v256_v10, 4  ;;  %v261_v21 = vrot.slane %v259_v11, 5  ;;  %v267_v22 = vrot.slane %v265_v12, 5  ;;  %v271_v23 = vrot.slane %v269_v13, 4  ;;  %v204_v24 = vld [vmem:[%s2558_s28 + $0x14] sm:$0x1] }
  0x15   : > { %2361 = vmatprep.mubr.msk.bf16.mxu1 %vm695_vm1, %v2020_v15  ;;  %v282_v25 = vrot.slane %v280_v16, 4  ;;  %v285_v26 = vrot.slane %v283_v17, 5  ;;  %v291_v27 = vrot.slane %v289_v18, 5  ;;  %v293_v28 = vshrl.u32 %v203_v14, 16  ;;  %v205_v29 = vld [vmem:[%s2558_s28 + $0x18] sm:$0xf] }
  0x16   : > { %v2573_v30 = vcombine.low %v202_v9, %v203_v14  ;;  %v262_v31 = vor.u32 %v261_v21, %v258_v20  ;;  %v272_v32 = vor.u32 %v271_v23, %v267_v22  ;;  %v275_v33 = vshll.u32 %v201_v19, 16  ;;  %v206_v39 = vld [vmem:[%s2558_s28 + $0x1c] sm:$0xf]  ;;  %v208_v48 = vld [vmem:[%s2558_s28 + $0x24] sm:$0xf] }
  0x17   : > { %v295_v34 = vrot.slane %v293_v28, 4  ;;  %v286_v36 = vor.u32 %v285_v26, %v282_v25  ;;  %v299_v37 = vshll.u32 %v204_v24, 16  ;;  %v304_v43 = vshrl.u32 %v205_v29, 16  ;;  %v209_v53 = vld [vmem:[%s2558_s28 + $0x28] sm:$0xf] }
  0x18   : > { %2362 = vmatmul.mubr.msk.bf16.vlgmr.msra.gmra.mxu1 %vm695_vm1, %v2573_v30  ;;  %v263_v40 = vrot.slane %v262_v31, 4  ;;  %v273_v41 = vrot.slane %v272_v32, 4  ;;  %v277_v42 = vrot.slane %v275_v33, 5  ;;  %v307_v47 = vshll.u32 %v205_v29, 16  ;;  %v207_v58 = vld [vmem:[%s2558_s28 + $0x20] sm:$0x1] }
  0x19   : > { %v287_v44 = vrot.slane %v286_v36, 4  ;;  %v296_v45 = vor.u32 %v295_v34, %v291_v27  ;;  %v301_v46 = vrot.slane %v299_v37, 5  ;;  %2428 = vmatpush3.bf16.msra.mxu1 %v1457_v38  ;;  %v306_v51 = vrot.slane %v304_v43, 4  ;;  %v210_v63 = vld [vmem:[%s2558_s28 + $0x2c] sm:$0x1] }
  0x1a   : > { %v268_v49 = vsel %vm2577_vm4, %v263_v40, %v267_v22  ;;  %v278_v50 = vsel %vm2577_vm4, %v273_v41, %v277_v42  ;;  %v313_v52 = vshll.u32 %v206_v39, 16  ;;  %v309_v57 = vrot.slane %v307_v47, 5  ;;  %v211_v4 = vld [vmem:[%s2558_s28 + $0x30] sm:$0xf]  ;;  %v212_v21 = vld [vmem:[%s2558_s28 + $0x34] sm:$0xf] }
  0x1b   : > { %v1987_v54 = vcombine.low %v268_v49, %v278_v50  ;;  %v292_v55 = vsel %vm2577_vm4, %v287_v44, %v291_v27  ;;  %v297_v56 = vrot.slane %v296_v45, 4  ;;  %v317_v60 = vshrl.u32 %v206_v39, 16  ;;  %v214_v27 = vld [vmem:[%s2558_s28 + $0x3c] sm:$0xf]  ;;  %v215_v37 = vld [vmem:[%s2558_s28 + $0x40] sm:$0xf] }
  0x1c   : > { %v315_v59 = vrot.slane %v313_v52, 5  ;;  %v2594_v61 = vcombine.low %v205_v29, %v206_v39  ;;  %v328_v62 = vshrl.u32 %v208_v48, 16  ;;  %v331_v1 = vshll.u32 %v208_v48, 16  ;;  %v213_v42 = vld [vmem:[%s2558_s28 + $0x38] sm:$0x1] }
  0x1d   : > { %2327 = vmatprep.mubr.msk.bf16.mxu0 %vm695_vm1, %v1987_v54  ;;  %v302_v0 = vsel %vm2577_vm4, %v297_v56, %v301_v46  ;;  %v337_v2 = vshll.u32 %v209_v53, 16  ;;  %v341_v3 = vshrl.u32 %v209_v53, 16  ;;  %v319_v7 = vrot.slane %v317_v60, 4  ;;  %v216_v43 = vld [vmem:[%s2558_s28 + $0x44] sm:$0x1] }
  0x1e   : > { %v2601_v5 = vcombine.low %v292_v55, %v302_v0  ;;  %2365 = vmatprep.mubr.msk.bf16.mxu1 %vm695_vm1, %v2594_v61  ;;  %v330_v8 = vrot.slane %v328_v62, 4  ;;  %v2605_v9 = vcombine.low %v208_v48, %v209_v53  ;;  %v333_v10 = vrot.slane %v331_v1, 5  ;;  %v217_v48 = vld [vmem:[%s2558_s28 + $0x48] sm:$0xf]  ;;  %v218_v60 = vld [vmem:[%s2558_s28 + $0x4c] sm:$0xf] }
  0x1f   : > { %v339_v11 = vrot.slane %v337_v2, 5  ;;  %v343_v12 = vrot.slane %v341_v3, 4  ;;  %v310_v13 = vor.u32 %v309_v57, %v306_v51  ;;  %v320_v14 = vor.u32 %v319_v7, %v315_v59 }
  0x20   : > { %2328 = vmatmul.mubr.msk.bf16.vlgmr.msra.gmra.mxu0 %vm695_vm1, %v2601_v5  ;;  %2366 = vmatmul.mubr.msk.bf16.gmra.mxu1 %vm695_vm1, %v2605_v9  ;;  %v323_v15 = vshll.u32 %v207_v58, 16  ;;  %v347_v16 = vshll.u32 %v210_v63, 16  ;;  %v352_v17 = vshrl.u32 %v211_v4, 16  ;;  %v334_v19 = vor.u32 %v333_v10, %v330_v8  ;;  %v220_v10 = vld [vmem:[%s2558_s28 + $0x54] sm:$0xf] }
  0x21   : > { %2394 = vmatpush3.bf16.msra.mxu0 %v2562_v6  ;;  %v311_v18 = vrot.slane %v310_v13, 4  ;;  %v344_v20 = vor.u32 %v343_v12, %v339_v11  ;;  %v355_v22 = vshll.u32 %v211_v4, 16  ;;  %v321_v23 = vrot.slane %v320_v14, 4 }
  0x22   : > { %v325_v24 = vrot.slane %v323_v15, 5  ;;  %v349_v25 = vrot.slane %v347_v16, 5  ;;  %v354_v26 = vrot.slane %v352_v17, 4  ;;  %v335_v29 = vrot.slane %v334_v19, 4  ;;  %v221_v15 = vld [vmem:[%s2558_s28 + $0x58] sm:$0xf] }
  0x23   : > { %v316_v28 = vsel %vm2577_vm4, %v311_v18, %v315_v59  ;;  %v345_v31 = vrot.slane %v344_v20, 4  ;;  %v357_v32 = vrot.slane %v355_v22, 5  ;;  %v361_v33 = vshll.u32 %v212_v21, 16 }
  0x24   : > { %v326_v6 = vsel %vm2577_vm4, %v321_v23, %v325_v24  ;;  %v365_v34 = vshrl.u32 %v212_v21, 16  ;;  %v2618_v36 = vcombine.low %v211_v4, %v212_v21  ;;  %v340_v39 = vsel %vm2577_vm4, %v335_v29, %v339_v11  ;;  %v219_v24 = vld [vmem:[%s2558_s28 + $0x50] sm:$0x1] }
  0x25   : > { %v2621_v38 = vcombine.low %v316_v28, %v326_v6  ;;  %v350_v40 = vsel %vm2577_vm4, %v345_v31, %v349_v25  ;;  %v376_v41 = vshrl.u32 %v214_v27, 16  ;;  %v363_v45 = vrot.slane %v361_v33, 5  ;;  %v222_v25 = vld [vmem:[%s2558_s28 + $0x5c] sm:$0x1]  ;;  %v223_v31 = vld [vmem:[%s2558_s28 + $0x60] sm:$0xf] }
  0x26   : > { %v2629_v44 = vcombine.low %v340_v39, %v350_v40  ;;  %v367_v46 = vrot.slane %v365_v34, 4  ;;  %2369 = vmatprep.mubr.msk.bf16.mxu1 %vm695_vm1, %v2618_v36  ;;  %v379_v47 = vshll.u32 %v214_v27, 16  ;;  %v385_v50 = vshll.u32 %v215_v37, 16 }
  0x27   : > { %2331 = vmatprep.mubr.msk.bf16.mxu0 %vm695_vm1, %v2621_v38  ;;  %v378_v49 = vrot.slane %v376_v41, 4  ;;  %v389_v51 = vshrl.u32 %v215_v37, 16  ;;  %v2636_v52 = vcombine.low %v214_v27, %v215_v37  ;;  %v358_v54 = vor.u32 %v357_v32, %v354_v26 }
  0x28   : > { %2332 = vmatmul.mubr.msk.bf16.gmra.mxu0 %vm695_vm1, %v2629_v44  ;;  %v381_v53 = vrot.slane %v379_v47, 5  ;;  %v368_v55 = vor.u32 %v367_v46, %v363_v45  ;;  %v371_v56 = vshll.u32 %v213_v42, 16  ;;  %v387_v57 = vrot.slane %v385_v50, 5  ;;  %v224_v46 = vld [vmem:[%s2558_s28 + $0x64] sm:$0xf] }
  0x29   : > { %v391_v58 = vrot.slane %v389_v51, 4  ;;  %2370 = vmatmul.mubr.msk.bf16.gmra.mxu1 %vm695_vm1, %v2636_v52  ;;  %v395_v59 = vshll.u32 %v216_v43, 16  ;;  %v400_v62 = vshrl.u32 %v217_v48, 16  ;;  %v359_v63 = vrot.slane %v358_v54, 4 }
  0x2a   : > { %v369_v0 = vrot.slane %v368_v55, 4  ;;  %v373_v1 = vrot.slane %v371_v56, 5  ;;  %v382_v2 = vor.u32 %v381_v53, %v378_v49  ;;  %v403_v8 = vshll.u32 %v217_v48, 16 }
  0x2b   : > { %v392_v3 = vor.u32 %v391_v58, %v387_v57  ;;  %v397_v4 = vrot.slane %v395_v59, 5  ;;  %v402_v7 = vrot.slane %v400_v62, 4  ;;  %v364_v11 = vsel %vm2577_vm4, %v359_v63, %v363_v45  ;;  %v227_v63 = vld [vmem:[%s2558_s28 + $0x70] sm:$0xf] }
  0x2c   : > { %v374_v12 = vsel %vm2577_vm4, %v369_v0, %v373_v1  ;;  %v383_v13 = vrot.slane %v382_v2, 4  ;;  %v409_v14 = vshll.u32 %v218_v60, 16  ;;  %v405_v18 = vrot.slane %v403_v8, 5 }
  0x2d   : > { %v2649_v16 = vcombine.low %v364_v11, %v374_v12  ;;  %v393_v17 = vrot.slane %v392_v3, 4  ;;  %v413_v19 = vshrl.u32 %v218_v60, 16  ;;  %v2653_v22 = vcombine.low %v217_v48, %v218_v60  ;;  %v225_v11 = vld [vmem:[%s2558_s28 + $0x68] sm:$0x1]  ;;  %v228_v12 = vld [vmem:[%s2558_s28 + $0x74] sm:$0x1] }
  0x2e   : > { %v388_v20 = vsel %vm2577_vm4, %v383_v13, %v387_v57  ;;  %v411_v21 = vrot.slane %v409_v14, 5  ;;  %v424_v23 = vshrl.u32 %v220_v10, 16  ;;  %v427_v28 = vshll.u32 %v220_v10, 16  ;;  %v226_v57 = vld [vmem:[%s2558_s28 + $0x6c] sm:$0xf] }
  0x2f   : > { %2335 = vmatprep.mubr.msk.bf16.mxu0 %vm695_vm1, %v2649_v16  ;;  %v398_v26 = vsel %vm2577_vm4, %v393_v17, %v397_v4  ;;  %v415_v27 = vrot.slane %v413_v19, 4  ;;  %v433_v29 = vshll.u32 %v221_v15, 16  ;;  %2373 = vmatprep.mubr.msk.bf16.mxu1 %vm695_vm1, %v2653_v22  ;;  %v437_v33 = vshrl.u32 %v221_v15, 16 }
  0x30   : > { %v2662_v32 = vcombine.low %v388_v20, %v398_v26  ;;  %v426_v6 = vrot.slane %v424_v23, 4  ;;  %v2666_v34 = vcombine.low %v220_v10, %v221_v15  ;;  %v429_v37 = vrot.slane %v427_v28, 5 }
  0x31   : > { %v435_v39 = vrot.slane %v433_v29, 5  ;;  %v406_v40 = vor.u32 %v405_v18, %v402_v7  ;;  %v416_v41 = vor.u32 %v415_v27, %v411_v21  ;;  %v439_v42 = vrot.slane %v437_v33, 4  ;;  %v229_v18 = vld [vmem:[%s2558_s28 + $0x78] sm:$0xf] }
  0x32   : > { %2336 = vmatmul.mubr.msk.bf16.gmra.mxu0 %vm695_vm1, %v2662_v32  ;;  %2374 = vmatmul.mubr.msk.bf16.gmra.mxu1 %vm695_vm1, %v2666_v34  ;;  %v419_v43 = vshll.u32 %v219_v24, 16  ;;  %v443_v45 = vshll.u32 %v222_v25, 16  ;;  %v448_v47 = vshrl.u32 %v223_v31, 16  ;;  %v430_v50 = vor.u32 %v429_v37, %v426_v6  ;;  %v230_v6 = vld [vmem:[%s2558_s28 + $0x7c] sm:$0xf] }
  0x33   : > { %v407_v48 = vrot.slane %v406_v40, 4  ;;  %v417_v49 = vrot.slane %v416_v41, 4  ;;  %v451_v51 = vshll.u32 %v223_v31, 16  ;;  %v440_v54 = vor.u32 %v439_v42, %v435_v39 }
  0x34   : > { %v421_v53 = vrot.slane %v419_v43, 5  ;;  %v445_v55 = vrot.slane %v443_v45, 5  ;;  %v450_v56 = vrot.slane %v448_v47, 4  ;;  %v431_v59 = vrot.slane %v430_v50, 4  ;;  %v232_v47 = vld [vmem:[%s2558_s28 + $0x84] sm:$0xf] }
  0x35   : > { %v412_v58 = vsel %vm2577_vm4, %v407_v48, %v411_v21  ;;  %v453_v60 = vrot.slane %v451_v51, 5  ;;  %v457_v62 = vshll.u32 %v224_v46, 16  ;;  %v441_v1 = vrot.slane %v440_v54, 4 }
  0x36   : > { %v422_v0 = vsel %vm2577_vm4, %v417_v49, %v421_v53  ;;  %v461_v2 = vshrl.u32 %v224_v46, 16  ;;  %v2679_v3 = vcombine.low %v223_v31, %v224_v46  ;;  %v436_v7 = vsel %vm2577_vm4, %v431_v59, %v435_v39  ;;  %v233_v53 = vld [vmem:[%s2558_s28 + $0x88] sm:$0xf] }
  0x37   : > { %v2681_v4 = vcombine.low %v412_v58, %v422_v0  ;;  %v459_v8 = vrot.slane %v457_v62, 5  ;;  %v472_v10 = vshrl.u32 %v226_v57, 16  ;;  %v446_v13 = vsel %vm2577_vm4, %v441_v1, %v445_v55  ;;  %v234_v0 = vld [vmem:[%s2558_s28 + $0x8c] sm:$0x1] }
  0x38   : > { %v463_v14 = vrot.slane %v461_v2, 4  ;;  %2377 = vmatprep.mubr.msk.bf16.mxu1 %vm695_vm1, %v2679_v3  ;;  %v475_v15 = vshll.u32 %v226_v57, 16  ;;  %v481_v17 = vshll.u32 %v227_v63, 16  ;;  %v2694_v19 = vcombine.low %v436_v7, %v446_v13 }
  0x39   : > { %2339 = vmatprep.mubr.msk.bf16.mxu0 %vm695_vm1, %v2681_v4  ;;  %v474_v20 = vrot.slane %v472_v10, 4  ;;  %v485_v21 = vshrl.u32 %v227_v63, 16  ;;  %v2696_v23 = vcombine.low %v226_v57, %v227_v63  ;;  %v454_v26 = vor.u32 %v453_v60, %v450_v56  ;;  %v231_v63 = vld [vmem:[%s2558_s28 + $0x80] sm:$0x1]  ;;  %v235_v10 = vld [vmem:[%s2558_s28 + $0x90] sm:$0xf] }
  0x3a   : > { %v477_v24 = vrot.slane %v475_v15, 5  ;;  %v483_v25 = vrot.slane %v481_v17, 5  ;;  %v464_v27 = vor.u32 %v463_v14, %v459_v8  ;;  %2340 = vmatmul.mubr.msk.bf16.gmra.mxu0 %vm695_vm1, %v2694_v19  ;;  %v467_v29 = vshll.u32 %v225_v11, 16 }
  0x3b   : > { %v487_v28 = vrot.slane %v485_v21, 4  ;;  %2378 = vmatmul.mubr.msk.bf16.gmra.mxu1 %vm695_vm1, %v2696_v23  ;;  %v491_v31 = vshll.u32 %v228_v12, 16  ;;  %v496_v33 = vshrl.u32 %v229_v18, 16  ;;  %v455_v37 = vrot.slane %v454_v26, 4  ;;  %v236_v26 = vld [vmem:[%s2558_s28 + $0x94] sm:$0xf] }
  0x3c   : > { %v465_v39 = vrot.slane %v464_v27, 4  ;;  %v478_v40 = vor.u32 %v477_v24, %v474_v20  ;;  %v499_v41 = vshll.u32 %v229_v18, 16  ;;  %v469_v42 = vrot.slane %v467_v29, 5 }
  0x3d   : > { %v488_v43 = vor.u32 %v487_v28, %v483_v25  ;;  %v493_v45 = vrot.slane %v491_v31, 5  ;;  %v498_v46 = vrot.slane %v496_v33, 4  ;;  %v460_v48 = vsel %vm2577_vm4, %v455_v37, %v459_v8 }
  0x3e   : > { %v479_v49 = vrot.slane %v478_v40, 4  ;;  %v501_v50 = vrot.slane %v499_v41, 5  ;;  %v505_v51 = vshll.u32 %v230_v6, 16  ;;  %v470_v54 = vsel %vm2577_vm4, %v465_v39, %v469_v42  ;;  %v238_v41 = vld [vmem:[%s2558_s28 + $0x9c] sm:$0xf] }
  0x3f   : > { %v489_v55 = vrot.slane %v488_v43, 4  ;;  %v509_v56 = vshrl.u32 %v230_v6, 16  ;;  %v2709_v57 = vcombine.low %v229_v18, %v230_v6  ;;  %v2711_v58 = vcombine.low %v460_v48, %v470_v54 }
  0x40   : > { %v484_v59 = vsel %vm2577_vm4, %v479_v49, %v483_v25  ;;  %v507_v60 = vrot.slane %v505_v51, 5  ;;  %v520_v62 = vshrl.u32 %v232_v47, 16  ;;  %v523_v7 = vshll.u32 %v232_v47, 16 }
  0x41   : > { %v494_v1 = vsel %vm2577_vm4, %v489_v55, %v493_v45  ;;  %v511_v2 = vrot.slane %v509_v56, 4  ;;  %2381 = vmatprep.mubr.msk.bf16.mxu1 %vm695_vm1, %v2709_v57  ;;  %v529_v8 = vshll.u32 %v233_v53, 16  ;;  %2343 = vmatprep.mubr.msk.bf16.mxu0 %vm695_vm1, %v2711_v58  ;;  %v533_v13 = vshrl.u32 %v233_v53, 16 }
  0x42   : > { %v2724_v11 = vcombine.low %v484_v59, %v494_v1  ;;  %v522_v12 = vrot.slane %v520_v62, 4  ;;  %v2726_v14 = vcombine.low %v232_v47, %v233_v53  ;;  %v525_v15 = vrot.slane %v523_v7, 5  ;;  %v239_v47 = vld [vmem:[%s2558_s28 + $0xa0] sm:$0xf]  ;;  %v237_v59 = vld [vmem:[%s2558_s28 + $0x98] sm:$0x1] }
  0x43   : > { %v531_v17 = vrot.slane %v529_v8, 5  ;;  %v502_v18 = vor.u32 %v501_v50, %v498_v46  ;;  %v512_v20 = vor.u32 %v511_v2, %v507_v60  ;;  %v535_v21 = vrot.slane %v533_v13, 4  ;;  %v241_v2 = vld [vmem:[%s2558_s28 + $0xa8] sm:$0xf] }
  0x44   : > { %2344 = vmatmul.mubr.msk.bf16.gmra.mxu0 %vm695_vm1, %v2724_v11  ;;  %2382 = vmatmul.mubr.msk.bf16.gmra.mxu1 %vm695_vm1, %v2726_v14  ;;  %v515_v24 = vshll.u32 %v231_v63, 16  ;;  %v539_v25 = vshll.u32 %v234_v0, 16  ;;  %v544_v27 = vshrl.u32 %v235_v10, 16  ;;  %v526_v31 = vor.u32 %v525_v15, %v522_v12 }
  0x45   : > { %v503_v28 = vrot.slane %v502_v18, 4  ;;  %v513_v29 = vrot.slane %v512_v20, 4  ;;  %v547_v6 = vshll.u32 %v235_v10, 16  ;;  %v536_v37 = vor.u32 %v535_v21, %v531_v17 }
  0x46   : > { %v517_v33 = vrot.slane %v515_v24, 5  ;;  %v541_v39 = vrot.slane %v539_v25, 5  ;;  %v546_v40 = vrot.slane %v544_v27, 4  ;;  %v527_v43 = vrot.slane %v526_v31, 4  ;;  %v242_v25 = vld [vmem:[%s2558_s28 + $0xac] sm:$0xf] }
  0x47   : > { %v508_v42 = vsel %vm2577_vm4, %v503_v28, %v507_v60  ;;  %v549_v45 = vrot.slane %v547_v6, 5  ;;  %v553_v46 = vshll.u32 %v236_v26, 16  ;;  %v537_v49 = vrot.slane %v536_v37, 4  ;;  %v240_v60 = vld [vmem:[%s2558_s28 + $0xa4] sm:$0x1] }
  0x48   : > { %v518_v48 = vsel %vm2577_vm4, %v513_v29, %v517_v33  ;;  %v557_v50 = vshrl.u32 %v236_v26, 16  ;;  %v2739_v51 = vcombine.low %v235_v10, %v236_v26  ;;  %v532_v54 = vsel %vm2577_vm4, %v527_v43, %v531_v17 }
  0x49   : > { %v2741_v53 = vcombine.low %v508_v42, %v518_v48  ;;  %v555_v55 = vrot.slane %v553_v46, 5  ;;  %v568_v56 = vshrl.u32 %v238_v41, 16  ;;  %v542_v62 = vsel %vm2577_vm4, %v537_v49, %v541_v39  ;;  %v245_v46 = vld [vmem:[%s2558_s28 + $0xb8] sm:$0xf] }
  0x4a   : > { %v559_v63 = vrot.slane %v557_v50, 4  ;;  %2385 = vmatprep.mubr.msk.bf16.mxu1 %vm695_vm1, %v2739_v51  ;;  %v571_v0 = vshll.u32 %v238_v41, 16  ;;  %v577_v1 = vshll.u32 %v239_v47, 16  ;;  %v2754_v7 = vcombine.low %v532_v54, %v542_v62 }
  0x4b   : > { %2347 = vmatprep.mubr.msk.bf16.mxu0 %vm695_vm1, %v2741_v53  ;;  %v570_v8 = vrot.slane %v568_v56, 4  ;;  %v581_v10 = vshrl.u32 %v239_v47, 16  ;;  %v2756_v12 = vcombine.low %v238_v41, %v239_v47  ;;  %v550_v17 = vor.u32 %v549_v45, %v546_v40  ;;  %v244_v40 = vld [vmem:[%s2558_s28 + $0xb4] sm:$0xf] }
  0x4c   : > { %v573_v13 = vrot.slane %v571_v0, 5  ;;  %v579_v15 = vrot.slane %v577_v1, 5  ;;  %v560_v18 = vor.u32 %v559_v63, %v555_v55  ;;  %2348 = vmatmul.mubr.msk.bf16.gmra.mxu0 %vm695_vm1, %v2754_v7  ;;  %v563_v21 = vshll.u32 %v237_v59, 16 }
  0x4d   : > { %v583_v20 = vrot.slane %v581_v10, 4  ;;  %2386 = vmatmul.mubr.msk.bf16.gmra.mxu1 %vm695_vm1, %v2756_v12  ;;  %v587_v24 = vshll.u32 %v240_v60, 16  ;;  %v592_v26 = vshrl.u32 %v241_v2, 16  ;;  %v551_v27 = vrot.slane %v550_v17, 4 }
  0x4e   : > { %v561_v28 = vrot.slane %v560_v18, 4  ;;  %v574_v29 = vor.u32 %v573_v13, %v570_v8  ;;  %v595_v31 = vshll.u32 %v241_v2, 16  ;;  %v565_v6 = vrot.slane %v563_v21, 5  ;;  %v246_v8 = vld [vmem:[%s2558_s28 + $0xbc] sm:$0x1] }
  0x4f   : > { %v584_v33 = vor.u32 %v583_v20, %v579_v15  ;;  %v589_v37 = vrot.slane %v587_v24, 5  ;;  %v594_v39 = vrot.slane %v592_v26, 4  ;;  %v556_v41 = vsel %vm2577_vm4, %v551_v27, %v555_v55  ;;  %v243_v55 = vld [vmem:[%s2558_s28 + $0xb0] sm:$0x1] }
  0x50   : > { %v575_v42 = vrot.slane %v574_v29, 4  ;;  %v597_v43 = vrot.slane %v595_v31, 5  ;;  %v601_v45 = vshll.u32 %v242_v25, 16  ;;  %v566_v47 = vsel %vm2577_vm4, %v561_v28, %v565_v6 }
  0x51   : > { %v585_v48 = vrot.slane %v584_v33, 4  ;;  %v605_v49 = vshrl.u32 %v242_v25, 16  ;;  %v2769_v50 = vcombine.low %v241_v2, %v242_v25  ;;  %v2771_v54 = vcombine.low %v556_v41, %v566_v47 }
  0x52   : > { %v580_v56 = vsel %vm2577_vm4, %v575_v42, %v579_v15  ;;  %v603_v59 = vrot.slane %v601_v45, 5  ;;  %v616_v60 = vshrl.u32 %v244_v40, 16  ;;  %v619_v0 = vshll.u32 %v244_v40, 16 }
  0x53   : > { %v590_v62 = vsel %vm2577_vm4, %v585_v48, %v589_v37  ;;  %v607_v63 = vrot.slane %v605_v49, 4  ;;  %2389 = vmatprep.mubr.msk.bf16.mxu1 %vm695_vm1, %v2769_v50  ;;  %v625_v1 = vshll.u32 %v245_v46, 16  ;;  %2351 = vmatprep.mubr.msk.bf16.mxu0 %vm695_vm1, %v2771_v54  ;;  %v629_v13 = vshrl.u32 %v245_v46, 16 }
  0x54   : > { %v2000_v2 = vcombine.low %v580_v56, %v590_v62  ;;  %v618_v10 = vrot.slane %v616_v60, 4  ;;  %v2783_v15 = vcombine.low %v244_v40, %v245_v46  ;;  %v621_v17 = vrot.slane %v619_v0, 5 }
  0x55   : > { %v627_v18 = vrot.slane %v625_v1, 5  ;;  %v598_v20 = vor.u32 %v597_v43, %v594_v39  ;;  %v608_v21 = vor.u32 %v607_v63, %v603_v59  ;;  %v631_v24 = vrot.slane %v629_v13, 4 }
  0x56   : > { %2352 = vmatmul.mubr.msk.bf16.gmra.mxu0 %vm695_vm1, %v2000_v2  ;;  %2390 = vmatmul.mubr.msk.bf16.gmra.mxu1 %vm695_vm1, %v2783_v15  ;;  %v611_v25 = vshll.u32 %v243_v55, 16  ;;  %v635_v26 = vshll.u32 %v246_v8, 16  ;;  %v622_v29 = vor.u32 %v621_v17, %v618_v10 }
  0x57   : > { %v599_v27 = vrot.slane %v598_v20, 4  ;;  %v609_v28 = vrot.slane %v608_v21, 4  ;;  %2429 = vmatprep.mubr.msk.bf16.mxu1 %vm695_vm1, %v2601_v5  ;;  %v632_v6 = vor.u32 %v631_v24, %v627_v18 }
  0x58   : > { %v613_v31 = vrot.slane %v611_v25, 5  ;;  %v637_v33 = vrot.slane %v635_v26, 5  ;;  %v623_v39 = vrot.slane %v622_v29, 4 }
  0x59   : > { %v604_v37 = vsel %vm2577_vm4, %v599_v27, %v603_v59  ;;  %v633_v41 = vrot.slane %v632_v6, 4 }
  0x5a   : > { %v614_v40 = vsel %vm2577_vm4, %v609_v28, %v613_v31  ;;  %v628_v43 = vsel %vm2577_vm4, %v623_v39, %v627_v18 }
  0x5b   : > { %v2001_v42 = vcombine.low %v604_v37, %v614_v40  ;;  %v638_v45 = vsel %vm2577_vm4, %v633_v41, %v637_v33 }
  0x5c   : > { %v2002_v5 = vcombine.low %v628_v43, %v638_v45 }
  0x5d   : > { %2355 = vmatprep.mubr.msk.bf16.mxu0 %vm695_vm1, %v2001_v42 }
  0x5e   : > { %2430 = vmatmul.mubr.msk.bf16.vlgmr.msra.gmra.mxu1 %vm695_vm1, %v2621_v38  ;;  %2356 = vmatmul.mubr.msk.bf16.gmra.mxu0 %vm695_vm1, %v2002_v5 }
  0x5f   : > { %2433 = vmatprep.mubr.msk.bf16.mxu1 %vm695_vm1, %v2629_v44  ;;  %2395 = vmatprep.mubr.msk.bf16.mxu0 %vm695_vm1, %v2573_v30  ;;  %v247_v30 = vld [vmem:[%s2558_s28 + $0xc0] sm:$0xf] }
  0x66   : > { %2434 = vmatmul.mubr.msk.bf16.gmra.mxu1 %vm695_vm1, %v2649_v16  ;;  %2396 = vmatmul.mubr.msk.bf16.vlgmr.msra.gmra.mxu0 %vm695_vm1, %v2594_v61  ;;  %v248_v61 = vld [vmem:[%s2558_s28 + $0xc4] sm:$0xf] }
  0x67   : > { %2437 = vmatprep.mubr.msk.bf16.mxu1 %vm695_vm1, %v2662_v32  ;;  %2399 = vmatprep.mubr.msk.bf16.mxu0 %vm695_vm1, %v2605_v9  ;;  %v1419_v9 = vshrl.u32 %v247_v30, 16  ;;  %v1428_v38 = vshll.u32 %v248_v61, 16  ;;  %v1432_v44 = vshrl.u32 %v248_v61, 16 }
  0x69   : > { %v1434_v32 = vrot.slane %v1432_v44, 4 }
  0x6e   : > { %2438 = vmatmul.mubr.msk.bf16.gmra.mxu1 %vm695_vm1, %v2681_v4  ;;  %2400 = vmatmul.mubr.msk.bf16.gmra.mxu0 %vm695_vm1, %v2618_v36  ;;  %v1422_v36 = vshll.u32 %v247_v30, 16 }
  0x6f   : > { %2441 = vmatprep.mubr.msk.bf16.mxu1 %vm695_vm1, %v2694_v19  ;;  %2403 = vmatprep.mubr.msk.bf16.mxu0 %vm695_vm1, %v2636_v52  ;;  %v1421_v52 = vrot.slane %v1419_v9, 4 }
  0x70   : > { %v1424_v16 = vrot.slane %v1422_v36, 5 }
  0x76   : > { %2442 = vmatmul.mubr.msk.bf16.gmra.mxu1 %vm695_vm1, %v2711_v58  ;;  %2404 = vmatmul.mubr.msk.bf16.gmra.mxu0 %vm695_vm1, %v2653_v22  ;;  %v1430_v22 = vrot.slane %v1428_v38, 5 }
  0x77   : > { %2445 = vmatprep.mubr.msk.bf16.mxu1 %vm695_vm1, %v2724_v11  ;;  %2407 = vmatprep.mubr.msk.bf16.mxu0 %vm695_vm1, %v2666_v34  ;;  %v249_v34 = vld [vmem:[%s2558_s28 + $0xc8] sm:$0x1] }
  0x78   : > { %v1435_v4 = vor.u32 %v1434_v32, %v1430_v22  ;;  %v1438_v19 = vshll.u32 %v249_v34, 16 }
  0x7a   : > { %v1436_v58 = vrot.slane %v1435_v4, 4  ;;  %v1440_v11 = vrot.slane %v1438_v19, 5 }
  0x7e   : > { %2446 = vmatmul.mubr.msk.bf16.gmra.mxu1 %vm695_vm1, %v2741_v53  ;;  %2408 = vmatmul.mubr.msk.bf16.gmra.mxu0 %vm695_vm1, %v2679_v3  ;;  %v1425_v3 = vor.u32 %v1424_v16, %v1421_v52  ;;  %v1441_v53 = vsel %vm2577_vm4, %v1436_v58, %v1440_v11 }
  0x7f   : > { %2449 = vmatprep.mubr.msk.bf16.mxu1 %vm695_vm1, %v2754_v7  ;;  %2411 = vmatprep.mubr.msk.bf16.mxu0 %vm695_vm1, %v2696_v23 }
  0x80   : > { %v1426_v23 = vrot.slane %v1425_v3, 4 }
  0x86   : > { %2450 = vmatmul.mubr.msk.bf16.gmra.mxu1 %vm695_vm1, %v2771_v54  ;;  %2412 = vmatmul.mubr.msk.bf16.gmra.mxu0 %vm695_vm1, %v2709_v57  ;;  %v1431_v57 = vsel %vm2577_vm4, %v1426_v23, %v1430_v22 }
  0x87   : > { %2453 = vmatprep.mubr.msk.bf16.mxu1 %vm695_vm1, %v2000_v2  ;;  %2415 = vmatprep.mubr.msk.bf16.mxu0 %vm695_vm1, %v2726_v14  ;;  %v2075_v14 = vcombine.low %v1431_v57, %v1441_v53 }
  0x8e   : > { %2454 = vmatmul.mubr.msk.bf16.gmra.mxu1 %vm695_vm1, %v2001_v42  ;;  %2416 = vmatmul.mubr.msk.bf16.gmra.mxu0 %vm695_vm1, %v2739_v51  ;;  %v2055_v51 = vcombine.low %v247_v30, %v248_v61 }
  0x8f   : > { %2457 = vmatprep.mubr.msk.bf16.mxu1 %vm695_vm1, %v2002_v5  ;;  %2419 = vmatprep.mubr.msk.bf16.mxu0 %vm695_vm1, %v2756_v12 }
  0x96   : > { %2458 = vmatmul.mubr.msk.bf16.gmra.mxu1 %vm695_vm1, %v2075_v14  ;;  %2420 = vmatmul.mubr.msk.bf16.gmra.mxu0 %vm695_vm1, %v2769_v50 }
  0x97   : > { %2423 = vmatprep.mubr.msk.bf16.mxu0 %vm695_vm1, %v2783_v15 }
  0x9e   : > { %2424 = vmatmul.mubr.msk.bf16.gmra.mxu0 %vm695_vm1, %v2055_v51 }
  0xd8   : > { %v2363_v7 = vpop.f32.mrf.mxu1 }
  0xda   : > { %v1079_v46 = vpop.f32.mrf.mxu1 }
  0xdc   : > { %v2864_v47 = vpop.f32.mrf.mxu1 }
  0xde   : > { %v2866_v35 = vpop.f32.mrf.mxu1 }
  0xe0   : > { %v2329_v48 = vpop.f32.mrf.mxu0  ;;  %v2367_v12 = vpop.f32.mrf.mxu1 }
  0xe1   : > { %v2868_v49 = vadd.f32 %v2363_v7, %v2329_v48 }
  0xe2   : > { %v782_v54 = vpop.f32.mrf.mxu0  ;;  %v1095_v56 = vpop.f32.mrf.mxu1 }
  0xe3   : > { %v2870_v59 = vadd.f32 %v1079_v46, %v782_v54 }
  0xe4   : > { %v2872_v50 = vpop.f32.mrf.mxu0  ;;  %v2874_v60 = vpop.f32.mrf.mxu1 }
  0xe6   : > { %v2876_v55 = vpop.f32.mrf.mxu0  ;;  %v2878_v62 = vpop.f32.mrf.mxu1 }
  0xe8   : > { %v2333_v63 = vpop.f32.mrf.mxu0 }
  0xe9   : > { %v2880_v0 = vadd.f32 %v2367_v12, %v2333_v63  ;;  %v2371_v1 = vpop.f32.mrf.mxu1 }
  0xea   : > { %v798_v8 = vpop.f32.mrf.mxu0 }
  0xeb   : > { %v2882_v2 = vadd.f32 %v1095_v56, %v798_v8  ;;  %v1111_v10 = vpop.f32.mrf.mxu1 }
  0xec   : > { %v2884_v13 = vpop.f32.mrf.mxu0 }
  0xed   : > { %v2886_v15 = vpop.f32.mrf.mxu1 }
  0xee   : > { %v2888_v17 = vpop.f32.mrf.mxu0 }
  0xef   : > { %v2890_v18 = vpop.f32.mrf.mxu1 }
  0xf2   : > { %v2337_v20 = vpop.f32.mrf.mxu0  ;;  %v2375_v21 = vpop.f32.mrf.mxu1 }
  0xf3   : > { %v2892_v24 = vadd.f32 %v2371_v1, %v2337_v20 }
  0xf4   : > { %v814_v25 = vpop.f32.mrf.mxu0  ;;  %v1127_v26 = vpop.f32.mrf.mxu1 }
  0xf5   : > { %v2894_v27 = vadd.f32 %v1111_v10, %v814_v25 }
  0xf6   : > { %v2896_v28 = vpop.f32.mrf.mxu0  ;;  %v2898_v29 = vpop.f32.mrf.mxu1 }
  0xf8   : > { %v2900_v31 = vpop.f32.mrf.mxu0  ;;  %v2902_v6 = vpop.f32.mrf.mxu1 }
  0xfa   : > { %v2341_v33 = vpop.f32.mrf.mxu0 }
  0xfb   : > { %v2379_v37 = vpop.f32.mrf.mxu1  ;;  %v2904_v39 = vadd.f32 %v2375_v21, %v2341_v33 }
  0xfc   : > { %v830_v40 = vpop.f32.mrf.mxu0 }
  0xfd   : > { %v1143_v41 = vpop.f32.mrf.mxu1  ;;  %v2906_v42 = vadd.f32 %v1127_v26, %v830_v40 }
  0xfe   : > { %v2908_v43 = vpop.f32.mrf.mxu0 }
  0xff   : > { %v2910_v45 = vpop.f32.mrf.mxu1 }
 0x100   : > { %v2912_v5 = vpop.f32.mrf.mxu0 }
 0x101   : > { %v2914_v30 = vpop.f32.mrf.mxu1 }
 0x104   : > { %v2345_v61 = vpop.f32.mrf.mxu0  ;;  %v2383_v9 = vpop.f32.mrf.mxu1 }
 0x105   : > { %v2916_v36 = vadd.f32 %v2379_v37, %v2345_v61 }
 0x106   : > { %v846_v38 = vpop.f32.mrf.mxu0  ;;  %v1159_v44 = vpop.f32.mrf.mxu1 }
 0x107   : > { %v2918_v52 = vadd.f32 %v1143_v41, %v846_v38 }
 0x108   : > { %v2920_v16 = vpop.f32.mrf.mxu0  ;;  %v2922_v22 = vpop.f32.mrf.mxu1 }
 0x10a   : > { %v2924_v32 = vpop.f32.mrf.mxu0  ;;  %v2926_v34 = vpop.f32.mrf.mxu1 }
 0x10c   : > { %v2349_v3 = vpop.f32.mrf.mxu0 }
 0x10d   : > { %v2387_v4 = vpop.f32.mrf.mxu1  ;;  %v2928_v19 = vadd.f32 %v2383_v9, %v2349_v3 }
 0x10e   : > { %v862_v23 = vpop.f32.mrf.mxu0 }
 0x10f   : > { %v1175_v58 = vpop.f32.mrf.mxu1  ;;  %v2930_v11 = vadd.f32 %v1159_v44, %v862_v23  ;;  %v2964_v23 = vld [vmem:[%s3109_s2] ss:$0 sm:$0xff] }
 0x110   : > { %v2932_v57 = vpop.f32.mrf.mxu0 }
 0x111   : > { %v2934_v53 = vpop.f32.mrf.mxu1 }
 0x112   : > { %v2936_v14 = vpop.f32.mrf.mxu0 }
 0x113   : > { %v2938_v51 = vpop.f32.mrf.mxu1 }
 0x116   : > { %v2353_v7 = vpop.f32.mrf.mxu0  ;;  %v2391_v46 = vpop.f32.mrf.mxu1 }
 0x117   : > { %v2940_v48 = vadd.f32 %v2387_v4, %v2353_v7  ;;  %v1091_v7 = vadd.f32 %v2864_v47, %v2872_v50 }
 0x118   : > { %v878_v12 = vpop.f32.mrf.mxu0  ;;  %v1191_v54 = vpop.f32.mrf.mxu1 }
 0x119   : > { %v2942_v56 = vadd.f32 %v1175_v58, %v878_v12 }
 0x11a   : > { %v2944_v63 = vpop.f32.mrf.mxu0  ;;  %v2946_v1 = vpop.f32.mrf.mxu1 }
 0x11b   : > { %3114 = vst [vmem:[#allocation2_spill] sm:$0xff] %v2946_v1 }
 0x11c   : > { %v2948_v8 = vpop.f32.mrf.mxu0  ;;  %v2950_v10 = vpop.f32.mrf.mxu1 }
 0x11d   : > { %3115 = vst [vmem:[#allocation3_spill] sm:$0xff] %v2950_v10 }
 0x11e   : > { %v2431_v20 = vpop.f32.mrf.mxu1  ;;  %v2357_v21 = vpop.f32.mrf.mxu0 }
 0x11f   : > { %v2952_v25 = vadd.f32 %v2391_v46, %v2357_v21 }
 0x120   : > { %v1493_v26 = vpop.f32.mrf.mxu1  ;;  %v894_v33 = vpop.f32.mrf.mxu0 }
 0x121   : > { %v2954_v37 = vadd.f32 %v1191_v54, %v894_v33  ;;  %v1083_v33 = vadd.f32 %v2866_v35, %v2876_v55 }
 0x122   : > { %v2432_v40 = vpop.f32.mrf.mxu1  ;;  %v2956_v41 = vpop.f32.mrf.mxu0 }
 0x123   : > { %3116 = vst [vmem:[#allocation4_spill] sm:$0xff] %v2954_v37  ;;  %3117 = vst [vmem:[#allocation5_spill] sm:$0xff] %v2956_v41 }
 0x124   : > { %v1496_v61 = vpop.f32.mrf.mxu1  ;;  %v2958_v9 = vpop.f32.mrf.mxu0 }
 0x125   : > { %3118 = vst [vmem:[#allocation6_spill] sm:$0xff] %v2958_v9 }
 0x126   : > { %v2435_v38 = vpop.f32.mrf.mxu1  ;;  %v2397_v44 = vpop.f32.mrf.mxu0 }
 0x127   : > { %v1388_v3 = vadd.f32 %v2397_v44, %v2868_v49  ;;  %v2975_v44 = vld [vmem:[%s3110_s3] ss:$0 sm:$0xff] }
 0x128   : > { %v1509_v4 = vpop.f32.mrf.mxu1  ;;  %v1259_v58 = vpop.f32.mrf.mxu0 }
 0x129   : > { %v1622_v46 = vadd.f32 %v2431_v20, %v1388_v3  ;;  %v1386_v12 = vadd.f32 %v1259_v58, %v2870_v59 }
 0x12a   : > { %v2436_v54 = vpop.f32.mrf.mxu1  ;;  %v2398_v21 = vpop.f32.mrf.mxu0 }
 0x12b   : > { %v1661_v49 = vmul.f32 %v2964_v23, %v1622_v46  ;;  %v1620_v10 = vadd.f32 %v1493_v26, %v1386_v12  ;;  %v1389_v9 = vadd.f32 %v2398_v21, %v1091_v7  ;;  %v1107_v12 = vadd.f32 %v2874_v60, %v2884_v13 }
 0x12c   : > { %v1512_v37 = vpop.f32.mrf.mxu1  ;;  %v1262_v47 = vpop.f32.mrf.mxu0  ;;  %v1099_v60 = vadd.f32 %v2878_v62, %v2888_v17 }
 0x12d   : > { %v1659_v50 = vmul.f32 %v2964_v23, %v1620_v10  ;;  %v1623_v59 = vadd.f32 %v2432_v40, %v1389_v9  ;;  %v1387_v20 = vadd.f32 %v1262_v47, %v1083_v33  ;;  %v1700_v58 = vadd.f32 %v2975_v44, %v1661_v49 }
 0x12e   : > { %v2439_v3 = vpop.f32.mrf.mxu1  ;;  %v2401_v35 = vpop.f32.mrf.mxu0 }
 0x12f   : > { %v1662_v55 = vmul.f32 %v2964_v23, %v1623_v59  ;;  %v1621_v46 = vadd.f32 %v1496_v61, %v1387_v20  ;;  %v1698_v41 = vadd.f32 %v2975_v44, %v1659_v50  ;;  %v1392_v26 = vadd.f32 %v2401_v35, %v2880_v0 }
 0x130   : > { %v1525_v1 = vpop.f32.mrf.mxu1  ;;  %v1275_v7 = vpop.f32.mrf.mxu0  ;;  %v1732_v33 = vmax.f32 %v1700_v58, 0.0 }
 0x131   : > { %v1701_v10 = vadd.f32 %v2975_v44, %v1662_v55  ;;  %v1660_v40 = vmul.f32 %v2964_v23, %v1621_v46  ;;  %v1390_v9 = vadd.f32 %v1275_v7, %v2882_v2  ;;  %v1626_v49 = vadd.f32 %v2435_v38, %v1392_v26 }
 0x132   : > { %v2440_v21 = vpop.f32.mrf.mxu1  ;;  %v2402_v61 = vpop.f32.mrf.mxu0  ;;  %v1730_v13 = vmax.f32 %v1698_v41, 0.0 }
 0x133   : > { %v1733_v47 = vmax.f32 %v1701_v10, 0.0  ;;  %v1699_v50 = vadd.f32 %v2975_v44, %v1660_v40  ;;  %v1624_v59 = vadd.f32 %v1509_v4, %v1390_v9  ;;  %v1393_v0 = vadd.f32 %v2402_v61, %v1107_v12 }
 0x134   : > { %v1528_v20 = vpop.f32.mrf.mxu1  ;;  %v1665_v2 = vmul.f32 %v2964_v23, %v1626_v49  ;;  %v1278_v38 = vpop.f32.mrf.mxu0  ;;  %v1123_v40 = vadd.f32 %v2886_v15, %v2896_v28 }
 0x135   : > { %v2170_v58 = vpack.c.bf16 %v1733_v47, %v1732_v33  ;;  %v1731_v35 = vmax.f32 %v1699_v50, 0.0  ;;  %v1663_v4 = vmul.f32 %v2964_v23, %v1624_v59  ;;  %v1627_v55 = vadd.f32 %v2436_v54, %v1393_v0 }
 0x136   : > { %v2443_v46 = vpop.f32.mrf.mxu1  ;;  %v1704_v26 = vadd.f32 %v2975_v44, %v1665_v2  ;;  %v1391_v62 = vadd.f32 %v1278_v38, %v1099_v60  ;;  %v2405_v17 = vpop.f32.mrf.mxu0  ;;  %v1115_v2 = vadd.f32 %v2890_v18, %v2900_v31 }
 0x137   : > { %2242 = vst [vmem:[%s2994_s10 + $0x8] sm:$0xff] %v2170_v58   ;;  %v2165_v41 = vpack.c.bf16 %v1731_v35, %v1730_v13  ;;  %v1666_v7 = vmul.f32 %v2964_v23, %v1627_v55  ;;  %v1396_v12 = vadd.f32 %v2405_v17, %v2892_v24  ;;  %v1702_v54 = vadd.f32 %v2975_v44, %v1663_v4 }
 0x138   : > { %v1541_v10 = vpop.f32.mrf.mxu1  ;;  %v1625_v9 = vadd.f32 %v1512_v37, %v1391_v62  ;;  %v1291_v33 = vpop.f32.mrf.mxu0  ;;  %v1736_v59 = vmax.f32 %v1704_v26, 0.0 }
 0x139   : > { %2166 = vst [vmem:[%s2994_s10] sm:$0xff] %v2165_v41   ;;  %v1705_v49 = vadd.f32 %v2975_v44, %v1666_v7  ;;  %v1630_v61 = vadd.f32 %v2439_v3, %v1396_v12  ;;  %v1394_v47 = vadd.f32 %v1291_v33, %v2894_v27  ;;  %v1734_v58 = vmax.f32 %v1702_v54, 0.0 }
 0x13a   : > { %v2444_v50 = vpop.f32.mrf.mxu1  ;;  %v1664_v0 = vmul.f32 %v2964_v23, %v1625_v9  ;;  %v2406_v60 = vpop.f32.mrf.mxu0 }
 0x13b   : > { %v1737_v24 = vmax.f32 %v1705_v49, 0.0  ;;  %v1669_v13 = vmul.f32 %v2964_v23, %v1630_v61  ;;  %v1628_v15 = vadd.f32 %v1525_v1, %v1394_v47  ;;  %v1397_v28 = vadd.f32 %v2406_v60, %v1123_v40 }
 0x13c   : > { %v1544_v37 = vpop.f32.mrf.mxu1  ;;  %v1703_v38 = vadd.f32 %v2975_v44, %v1664_v0  ;;  %v1294_v3 = vpop.f32.mrf.mxu0 }
 0x13d   : > { %v2180_v27 = vpack.c.bf16 %v1737_v24, %v1736_v59  ;;  %v1631_v35 = vadd.f32 %v2440_v21, %v1397_v28  ;;  %v1708_v26 = vadd.f32 %v2975_v44, %v1669_v13  ;;  %v1667_v62 = vmul.f32 %v2964_v23, %v1628_v15 }
 0x13e   : > { %v2447_v4 = vpop.f32.mrf.mxu1  ;;  %v1735_v55 = vmax.f32 %v1703_v38, 0.0  ;;  %v1395_v17 = vadd.f32 %v1294_v3, %v1115_v2  ;;  %v2409_v1 = vpop.f32.mrf.mxu0  ;;  %v1139_v21 = vadd.f32 %v2898_v29, %v2908_v43  ;;  %v1131_v43 = vadd.f32 %v2902_v6, %v2912_v5 }
 0x13f   : > { %2244 = vst [vmem:[%s2994_s10 + $0x18] sm:$0xff] %v2180_v27   ;;  %v1670_v41 = vmul.f32 %v2964_v23, %v1631_v35  ;;  %v1400_v18 = vadd.f32 %v2409_v1, %v2904_v39  ;;  %v1740_v61 = vmax.f32 %v1708_v26, 0.0  ;;  %v1706_v47 = vadd.f32 %v2975_v44, %v1667_v62 }
 0x140   : > { %v1557_v31 = vpop.f32.mrf.mxu1  ;;  %v2175_v7 = vpack.c.bf16 %v1735_v55, %v1734_v58  ;;  %v1629_v12 = vadd.f32 %v1528_v20, %v1395_v17  ;;  %v1307_v40 = vpop.f32.mrf.mxu0  ;;  %v1155_v55 = vadd.f32 %v2910_v45, %v2920_v16 }
 0x141   : > { %v1709_v9 = vadd.f32 %v2975_v44, %v1670_v41  ;;  %v1634_v33 = vadd.f32 %v2443_v46, %v1400_v18  ;;  %v1398_v54 = vadd.f32 %v1307_v40, %v2906_v42  ;;  %v1738_v38 = vmax.f32 %v1706_v47, 0.0 }
 0x142   : > { %v2448_v49 = vpop.f32.mrf.mxu1  ;;  %2243 = vst [vmem:[%s2994_s10 + $0x10] sm:$0xff] %v2175_v7   ;;  %v1668_v59 = vmul.f32 %v2964_v23, %v1629_v12  ;;  %v2410_v39 = vpop.f32.mrf.mxu0 }
 0x143   : > { %v1741_v0 = vmax.f32 %v1709_v9, 0.0  ;;  %v1673_v20 = vmul.f32 %v2964_v23, %v1634_v33  ;;  %v1632_v60 = vadd.f32 %v1541_v10, %v1398_v54  ;;  %v1401_v24 = vadd.f32 %v2410_v39, %v1139_v21 }
 0x144   : > { %v1560_v29 = vpop.f32.mrf.mxu1  ;;  %v1707_v42 = vadd.f32 %v2975_v44, %v1668_v59  ;;  %v1310_v46 = vpop.f32.mrf.mxu0  ;;  %v1147_v33 = vadd.f32 %v2914_v30, %v2924_v32 }
 0x145   : > { %v2190_v13 = vpack.c.bf16 %v1741_v0, %v1740_v61  ;;  %v1671_v15 = vmul.f32 %v2964_v23, %v1632_v60  ;;  %v1635_v28 = vadd.f32 %v2444_v50, %v1401_v24  ;;  %v1712_v58 = vadd.f32 %v2975_v44, %v1673_v20 }
 0x146   : > { %v2451_v2 = vpop.f32.mrf.mxu1  ;;  %v1739_v3 = vmax.f32 %v1707_v42, 0.0  ;;  %v1399_v27 = vadd.f32 %v1310_v46, %v1131_v43  ;;  %v2413_v10 = vpop.f32.mrf.mxu0 }
 0x147   : > { %2246 = vst [vmem:[%s2994_s10 + $0x28] sm:$0xff] %v2190_v13   ;;  %v1674_v35 = vmul.f32 %v2964_v23, %v1635_v28  ;;  %v1404_v6 = vadd.f32 %v2413_v10, %v2916_v36  ;;  %v1710_v17 = vadd.f32 %v2975_v44, %v1671_v15  ;;  %v1744_v12 = vmax.f32 %v1712_v58, 0.0 }
 0x148   : > { %v1573_v5 = vpop.f32.mrf.mxu1  ;;  %v2185_v26 = vpack.c.bf16 %v1739_v3, %v1738_v38  ;;  %v1633_v62 = vadd.f32 %v1544_v37, %v1399_v27  ;;  %v1323_v50 = vpop.f32.mrf.mxu0 }
 0x149   : > { %v1713_v1 = vadd.f32 %v2975_v44, %v1674_v35  ;;  %v1638_v41 = vadd.f32 %v2447_v4, %v1404_v6  ;;  %v1402_v18 = vadd.f32 %v1323_v50, %v2918_v52  ;;  %v1742_v52 = vmax.f32 %v1710_v17, 0.0 }
 0x14a   : > { %v2452_v7 = vpop.f32.mrf.mxu1  ;;  %2245 = vst [vmem:[%s2994_s10 + $0x20] sm:$0xff] %v2185_v26   ;;  %v1672_v40 = vmul.f32 %v2964_v23, %v1633_v62  ;;  %v2414_v36 = vpop.f32.mrf.mxu0 }
 0x14b   : > { %v1745_v21 = vmax.f32 %v1713_v1, 0.0  ;;  %v1677_v9 = vmul.f32 %v2964_v23, %v1638_v41  ;;  %v1636_v45 = vadd.f32 %v1557_v31, %v1402_v18  ;;  %v1405_v16 = vadd.f32 %v2414_v36, %v1155_v55 }
 0x14c   : > { %v1576_v37 = vpop.f32.mrf.mxu1  ;;  %v1711_v4 = vadd.f32 %v2975_v44, %v1672_v40  ;;  %v1326_v54 = vpop.f32.mrf.mxu0 }
 0x14d   : > { %v2200_v61 = vpack.c.bf16 %v1745_v21, %v1744_v12  ;;  %v1639_v47 = vadd.f32 %v2448_v49, %v1405_v16  ;;  %v1716_v0 = vadd.f32 %v2975_v44, %v1677_v9  ;;  %v1675_v20 = vmul.f32 %v2964_v23, %v1636_v45 }
 0x14e   : > { %v2455_v59 = vpop.f32.mrf.mxu1  ;;  %v1743_v39 = vmax.f32 %v1711_v4, 0.0  ;;  %v1403_v60 = vadd.f32 %v1326_v54, %v1147_v33  ;;  %v2417_v31 = vpop.f32.mrf.mxu0  ;;  %v1171_v49 = vadd.f32 %v2922_v22, %v2932_v57  ;;  %v1163_v22 = vadd.f32 %v2926_v34, %v2936_v14 }
 0x14f   : > { %2248 = vst [vmem:[%s2994_s10 + $0x38] sm:$0xff] %v2200_v61   ;;  %v1678_v24 = vmul.f32 %v2964_v23, %v1639_v47  ;;  %v1408_v30 = vadd.f32 %v2417_v31, %v2928_v19  ;;  %v1748_v38 = vmax.f32 %v1716_v0, 0.0  ;;  %v1714_v3 = vadd.f32 %v2975_v44, %v1675_v20 }
 0x150   : > { %v1589_v32 = vpop.f32.mrf.mxu1  ;;  %v2195_v43 = vpack.c.bf16 %v1743_v39, %v1742_v52  ;;  %v1637_v42 = vadd.f32 %v1560_v29, %v1403_v60  ;;  %v1339_v46 = vpop.f32.mrf.mxu0  ;;  %v1187_v14 = vadd.f32 %v2934_v53, %v2944_v63  ;;  %v1179_v52 = vadd.f32 %v2938_v51, %v2948_v8 }
 0x151   : > { %v1717_v13 = vadd.f32 %v2975_v44, %v1678_v24  ;;  %v1642_v15 = vadd.f32 %v2451_v2, %v1408_v30  ;;  %v1406_v28 = vadd.f32 %v1339_v46, %v2930_v11  ;;  %v1746_v62 = vmax.f32 %v1714_v3, 0.0  ;;  %v3119_v46 = vld [vmem:[#allocation5_spill] sm:$0xff] }
 0x152   : > { %2247 = vst [vmem:[%s2994_s10 + $0x30] sm:$0xff] %v2195_v43   ;;  %v1676_v58 = vmul.f32 %v2964_v23, %v1637_v42  ;;  %v2418_v27 = vpop.f32.mrf.mxu0  ;;  %v2456_v6 = vpop.f32.mrf.mxu1 }
 0x153   : > { %v1749_v19 = vmax.f32 %v1717_v13, 0.0  ;;  %v1681_v29 = vmul.f32 %v2964_v23, %v1642_v15  ;;  %v1640_v10 = vadd.f32 %v1573_v5, %v1406_v28  ;;  %v1409_v35 = vadd.f32 %v2418_v27, %v1171_v49  ;;  %v3120_v49 = vld [vmem:[#allocation2_spill] sm:$0xff] }
 0x154   : > { %v1715_v57 = vadd.f32 %v2975_v44, %v1676_v58  ;;  %v1342_v11 = vpop.f32.mrf.mxu0  ;;  %v1592_v34 = vpop.f32.mrf.mxu1  ;;  %v1203_v13 = vadd.f32 %v3120_v49, %v3119_v46 }
 0x155   : > { %v2210_v2 = vpack.c.bf16 %v1749_v19, %v1748_v38  ;;  %v1679_v55 = vmul.f32 %v2964_v23, %v1640_v10  ;;  %v1643_v26 = vadd.f32 %v2452_v7, %v1409_v35  ;;  %v1720_v17 = vadd.f32 %v2975_v44, %v1681_v29  ;;  %v3121_v38 = vld [vmem:[#allocation4_spill] sm:$0xff] }
 0x156   : > { %v1747_v50 = vmax.f32 %v1715_v57, 0.0  ;;  %v1407_v1 = vadd.f32 %v1342_v11, %v1163_v22  ;;  %v2421_v41 = vpop.f32.mrf.mxu0  ;;  %v3122_v57 = vld [vmem:[#allocation6_spill] sm:$0xff]  ;;  %v3123_v11 = vld [vmem:[#allocation3_spill] sm:$0xff] }
 0x157   : > { %2250 = vst [vmem:[%s2994_s10 + $0x48] sm:$0xff] %v2210_v2   ;;  %v1682_v5 = vmul.f32 %v2964_v23, %v1643_v26  ;;  %v1412_v18 = vadd.f32 %v2421_v41, %v2940_v48  ;;  %v1718_v7 = vadd.f32 %v2975_v44, %v1679_v55  ;;  %v1752_v16 = vmax.f32 %v1720_v17, 0.0 }
 0x158   : > { %v2205_v12 = vpack.c.bf16 %v1747_v50, %v1746_v62  ;;  %v1641_v40 = vadd.f32 %v1576_v37, %v1407_v1  ;;  %v1355_v36 = vpop.f32.mrf.mxu0  ;;  %v2459_v37 = vpop.f32.mrf.mxu1  ;;  %v1195_v2 = vadd.f32 %v3123_v11, %v3122_v57 }
 0x159   : > { %v1721_v21 = vadd.f32 %v2975_v44, %v1682_v5  ;;  %v1646_v9 = vadd.f32 %v2455_v59, %v1412_v18  ;;  %v1410_v45 = vadd.f32 %v1355_v36, %v2942_v56  ;;  %v1750_v59 = vmax.f32 %v1718_v7, 0.0 }
 0x15a   : > { %2249 = vst [vmem:[%s2994_s10 + $0x40] sm:$0xff] %v2205_v12   ;;  %v1680_v33 = vmul.f32 %v2964_v23, %v1641_v40  ;;  %v2422_v4 = vpop.f32.mrf.mxu0 }
 0x15b   : > { %v1753_v48 = vmax.f32 %v1721_v21, 0.0  ;;  %v1685_v54 = vmul.f32 %v2964_v23, %v1646_v9  ;;  %v1644_v53 = vadd.f32 %v1589_v32, %v1410_v45  ;;  %v1413_v63 = vadd.f32 %v2422_v4, %v1187_v14  ;;  %v1605_v32 = vpop.f32.mrf.mxu1 }
 0x15c   : > { %v1719_v61 = vadd.f32 %v2975_v44, %v1680_v33  ;;  %v1358_v47 = vpop.f32.mrf.mxu0 }
 0x15d   : > { %v2220_v56 = vpack.c.bf16 %v1753_v48, %v1752_v16  ;;  %v1647_v39 = vadd.f32 %v2456_v6, %v1413_v63  ;;  %v1724_v20 = vadd.f32 %v2975_v44, %v1685_v54  ;;  %v1683_v60 = vmul.f32 %v2964_v23, %v1644_v53  ;;  %v2460_v35 = vpop.f32.mrf.mxu1 }
 0x15e   : > { %v1751_v0 = vmax.f32 %v1719_v61, 0.0  ;;  %v1411_v31 = vadd.f32 %v1358_v47, %v1179_v52  ;;  %v2425_v24 = vpop.f32.mrf.mxu0 }
 0x15f   : > { %2252 = vst [vmem:[%s2994_s10 + $0x58] sm:$0xff] %v2220_v56   ;;  %v1686_v30 = vmul.f32 %v2964_v23, %v1647_v39  ;;  %v1416_v51 = vadd.f32 %v2425_v24, %v2952_v25  ;;  %v1756_v58 = vmax.f32 %v1724_v20, 0.0  ;;  %v1722_v27 = vadd.f32 %v2975_v44, %v1683_v60 }
 0x160   : > { %v2215_v8 = vpack.c.bf16 %v1751_v0, %v1750_v59  ;;  %v1645_v43 = vadd.f32 %v1592_v34, %v1411_v31  ;;  %v1371_v42 = vpop.f32.mrf.mxu0  ;;  %v1608_v34 = vpop.f32.mrf.mxu1 }
 0x161   : > { %v1725_v15 = vadd.f32 %v2975_v44, %v1686_v30  ;;  %v1650_v28 = vadd.f32 %v2459_v37, %v1416_v51  ;;  %v1414_v3 = vadd.f32 %v1371_v42, %v3121_v38  ;;  %v1754_v17 = vmax.f32 %v1722_v27, 0.0 }
 0x162   : > { %2251 = vst [vmem:[%s2994_s10 + $0x50] sm:$0xff] %v2215_v8   ;;  %v1684_v19 = vmul.f32 %v2964_v23, %v1645_v43  ;;  %v2426_v29 = vpop.f32.mrf.mxu0 }
 0x163   : > { %v1757_v25 = vmax.f32 %v1725_v15, 0.0  ;;  %v1689_v10 = vmul.f32 %v2964_v23, %v1650_v28  ;;  %v1648_v6 = vadd.f32 %v1605_v32, %v1414_v3  ;;  %v1417_v22 = vadd.f32 %v2426_v29, %v1203_v13 }
 0x164   : > { %v1723_v55 = vadd.f32 %v2975_v44, %v1684_v19  ;;  %v1374_v26 = vpop.f32.mrf.mxu0 }
 0x165   : > { %v2230_v62 = vpack.c.bf16 %v1757_v25, %v1756_v58  ;;  %v1651_v50 = vadd.f32 %v2460_v35, %v1417_v22  ;;  %v1687_v41 = vmul.f32 %v2964_v23, %v1648_v6  ;;  %v1415_v5 = vadd.f32 %v1374_v26, %v1195_v2 }
 0x166   : > { %v1755_v1 = vmax.f32 %v1723_v55, 0.0  ;;  %v1728_v18 = vadd.f32 %v2975_v44, %v1689_v10 }
 0x167   : > { %2254 = vst [vmem:[%s2994_s10 + $0x68] sm:$0xff] %v2230_v62   ;;  %v1690_v14 = vmul.f32 %v2964_v23, %v1651_v50  ;;  %v1649_v40 = vadd.f32 %v1608_v34, %v1415_v5  ;;  %v1726_v7 = vadd.f32 %v2975_v44, %v1687_v41 }
 0x168   : > { %v2225_v12 = vpack.c.bf16 %v1755_v1, %v1754_v17  ;;  %v1760_v9 = vmax.f32 %v1728_v18, 0.0 }
 0x169   : > { %v1729_v36 = vadd.f32 %v2975_v44, %v1690_v14  ;;  %v1688_v21 = vmul.f32 %v2964_v23, %v1649_v40  ;;  %v1758_v4 = vmax.f32 %v1726_v7, 0.0 }
 0x16a   : > { %2253 = vst [vmem:[%s2994_s10 + $0x60] sm:$0xff] %v2225_v12  }
 0x16b   : > { %v1761_v45 = vmax.f32 %v1729_v36, 0.0  ;;  %v1727_v16 = vadd.f32 %v2975_v44, %v1688_v21 }
 0x16d   : > { %v2240_v33 = vpack.c.bf16 %v1761_v45, %v1760_v9  ;;  %v1759_v48 = vmax.f32 %v1727_v16, 0.0 }
 0x16f   : > { %2256 = vst [vmem:[%s2994_s10 + $0x78] sm:$0xff] %v2240_v33   ;;  %v2235_v54 = vpack.c.bf16 %v1759_v48, %v1758_v4 }
 0x171   : > { %2255 = vst [vmem:[%s2994_s10 + $0x70] sm:$0xff] %v2235_v54  }
 0x172 PF: > { %s14_s15 = sadd.s32 1, %s2501_s15  }
 0x173   : > { %p11_p4 = scmp.ge.s32.totalorder %s14_s15, 6  }
 0x175   :  { %13 = sbr.rel (!%p11_p4) target bundleno = 1 (0x1), region = 69 }

// kernel: cnn_finernetwork_forward.5
= control target key start
LH: loop header
LB: loop body
LE: loop exit
PB: predicated region body
PF: predicated region fallthrough
CT: control target
= control target key end

     0   :  { %s3290_s15 = smov 0   ;;  %s4139_s0 = inlined_call_operand.vmem [shape: bf16[4,9,9,512], index: 0, kind: input, shape index: {}]   ;;  %s4140_s1 = inlined_call_operand.vmem [shape: bf16[4,512,128], index: 1, kind: input, shape index: {}]   ;;  %s4141_s2 = inlined_call_operand.vmem [shape: f32[1,128], index: 2, kind: input, shape index: {}]   ;;  %s4142_s3 = inlined_call_operand.vmem [shape: f32[1,128], index: 3, kind: input, shape index: {}]   ;;  %s4143_s4 = inlined_call_operand.vmem [shape: bf16[4,8,8,128], index: 4, kind: output, shape index: {}]  }
   0x1 LB: > { %s2380_s16 = sadd.s32 4294967295, %s3263_s15   ;;  %p2384_p0 = scmp.ge.s32.totalorder %s3263_s15, 1  ;;  %s3263_s15 = sphi %s3290_s15, %s14_s15  }
   0x2   : > { %p162_p1 = scmp.lt.s32.totalorder %s3263_s15, 5 }
   0x4   : > { %p163_p2 = pnand %p2384_p0, %p162_p1 }
   0x5   : > { %p188_p3 = scmp.lt.s32.totalorder (!%p163_p2), %s2380_s16, 3 }
   0x6   : > { %166 = sbr.rel (%p163_p2) target bundleno = 391 (0x187), region = 36 }
   0xb   : > { %v3129_v0 = vld [vmem:[%s4140_s1 + $0x178] sm:$0xff]   ;;  %v3133_v4 = vld [vmem:[%s4140_s1 + $0x170] sm:$0xff]   ;;  %v3137_v8 = vld [vmem:[%s4140_s1 + $0x168] sm:$0xff]   ;;  %s4149_s16 = smov (!%p188_p3, %s2380_s16), 3  ;;  %vm299_vm0 = vsmask.f32 3328 }
   0xc   : > { %v3130_v1 = vld [vmem:[%s4140_s1 + $0x1f8] sm:$0xff]   ;;  %2800 = vmatprep.subr.bf16.mxu0 %v3129_v0  ;;  %v3134_v5 = vld [vmem:[%s4140_s1 + $0x1f0] sm:$0xff]   ;;  %v3138_v9 = vld [vmem:[%s4140_s1 + $0x1e8] sm:$0xff]   ;;  %s3120_s21 = smul.u32 288, %s4149_s16  ;;  %vm300_vm1 = vsmask.f32 7440 }
   0xd   : > { %v3131_v2 = vld [vmem:[%s4140_s1 + $0x138] sm:$0xff]   ;;  %2840 = vmatprep.subr.bf16.mxu1 %v3130_v1  ;;  %v3135_v6 = vld [vmem:[%s4140_s1 + $0x130] sm:$0xff]   ;;  %v3139_v10 = vld [vmem:[%s4140_s1 + $0x128] sm:$0xff]   ;;  %s2776_s24 = sshll.u32 %s4149_s16, 5 }
   0xe   : > { %v3132_v3 = vld [vmem:[%s4140_s1 + $0x1b8] sm:$0xff]   ;;  %2801 = vmatpush3.bf16.msra.mxu0 %v3131_v2  ;;  %v3136_v7 = vld [vmem:[%s4140_s1 + $0x1b0] sm:$0xff]   ;;  %v3140_v11 = vld [vmem:[%s4140_s1 + $0x1a8] sm:$0xff]   ;;  %s3398_s6 = scalar_lea.vmem %s4139_s0, %s3120_s21  ;;  %s4107_s27 = scalar_lea.vmem %s4143_s4, %s2776_s24 }
   0xf   : > { %2841 = vmatpush3.bf16.msra.mxu1 %v3132_v3  ;;  %2802 = vmatprep.subr.bf16.mxu0 %v3133_v4  ;;  %v3141_v12 = vld [vmem:[%s4140_s1 + $0x160] sm:$0xff]   ;;  %v3145_v16 = vld [vmem:[%s4140_s1 + $0x158] sm:$0xff]   ;;  %v3149_v20 = vld [vmem:[%s4140_s1 + $0x150] sm:$0xff]  }
  0x10   : > { %2842 = vmatprep.subr.bf16.mxu1 %v3134_v5  ;;  %v3142_v13 = vld [vmem:[%s4140_s1 + $0x1e0] sm:$0xff]   ;;  %v3146_v17 = vld [vmem:[%s4140_s1 + $0x1d8] sm:$0xff]   ;;  %v3150_v21 = vld [vmem:[%s4140_s1 + $0x1d0] sm:$0xff]  }
  0x11   : > { %v3143_v14 = vld [vmem:[%s4140_s1 + $0x120] sm:$0xff]   ;;  %v3147_v18 = vld [vmem:[%s4140_s1 + $0x118] sm:$0xff]   ;;  %v3151_v22 = vld [vmem:[%s4140_s1 + $0x110] sm:$0xff]  }
  0x12   : > { %2803 = vmatpush3.bf16.msra.mxu0 %v3135_v6  ;;  %v3144_v15 = vld [vmem:[%s4140_s1 + $0x1a0] sm:$0xff]   ;;  %v3148_v19 = vld [vmem:[%s4140_s1 + $0x198] sm:$0xff]   ;;  %v3152_v23 = vld [vmem:[%s4140_s1 + $0x190] sm:$0xff]  }
  0x13   : > { %2843 = vmatpush3.bf16.msra.mxu1 %v3136_v7  ;;  %2804 = vmatprep.subr.bf16.mxu0 %v3137_v8  ;;  %v3153_v24 = vld [vmem:[%s4140_s1 + $0x148] sm:$0xff]   ;;  %v3157_v28 = vld [vmem:[%s4140_s1 + $0x140] sm:$0xff]   ;;  %v201_v33 = vld [vmem:[%s3398_s6 + $0x10] sm:$0x11] }
  0x14   : > { %2844 = vmatprep.subr.bf16.mxu1 %v3138_v9  ;;  %v3154_v25 = vld [vmem:[%s4140_s1 + $0x1c8] sm:$0xff]   ;;  %v3158_v29 = vld [vmem:[%s4140_s1 + $0x1c0] sm:$0xff]   ;;  %v205_v35 = vld [vmem:[%s3398_s6 + $0x30] sm:$0x11]  ;;  %v312_v40 = vshll.u32 %v201_v33, 16 }
  0x15   : > { %v3155_v26 = vld [vmem:[%s4140_s1 + $0x108] sm:$0xff]   ;;  %v3159_v30 = vld [vmem:[%s4140_s1 + $0x100] sm:$0xff]   ;;  %v209_v37 = vld [vmem:[%s3398_s6 + $0x50] sm:$0x11]  ;;  %v340_v45 = vshll.u32 %v205_v35, 16 }
  0x16   : > { %2805 = vmatpush3.bf16.msra.mxu0 %v3139_v10  ;;  %v3156_v27 = vld [vmem:[%s4140_s1 + $0x188] sm:$0xff]   ;;  %v3160_v31 = vld [vmem:[%s4140_s1 + $0x180] sm:$0xff]   ;;  %v202_v47 = vld [vmem:[%s3398_s6 + $0x18] sm:$0x11]  ;;  %v314_v49 = vrot.slane %v312_v40, 5  ;;  %v368_v56 = vshll.u32 %v209_v37, 16 }
  0x17   : > { %2845 = vmatpush3.bf16.msra.mxu1 %v3140_v11  ;;  %2806 = vmatprep.subr.bf16.mxu0 %v3141_v12  ;;  %v3407_v32 = vld [vmem:[%s3398_s6] sm:$0xff]  ;;  %v3422_v42 = vld [vmem:[%s3398_s6 + $0x8] sm:$0xff]  ;;  %v342_v54 = vrot.slane %v340_v45, 5  ;;  %v206_v59 = vld [vmem:[%s3398_s6 + $0x38] sm:$0x11]  ;;  %v326_v2 = vshll.u32 %v202_v47, 16 }
  0x18   : > { %2846 = vmatprep.subr.bf16.mxu1 %v3142_v13  ;;  %v3411_v34 = vld [vmem:[%s3398_s6 + $0x20] sm:$0xff]  ;;  %v303_v38 = vshrl.u32 %v3407_v32, 16  ;;  %v306_v39 = vshll.u32 %v3407_v32, 16  ;;  %v3429_v52 = vld [vmem:[%s3398_s6 + $0x28] sm:$0xff]  ;;  %v317_v60 = vshrl.u32 %v3422_v42, 16  ;;  %v320_v61 = vshll.u32 %v3422_v42, 16  ;;  %vm3439_vm2 = vmor %vm299_vm0, %vm300_vm1 }
  0x19   : > { %v3415_v36 = vld [vmem:[%s3398_s6 + $0x40] sm:$0xff]  ;;  %v331_v41 = vshrl.u32 %v3411_v34, 16  ;;  %v334_v44 = vshll.u32 %v3411_v34, 16  ;;  %v3161_v62 = vld [vmem:[%s4140_s1 + $0x78] sm:$0xff]   ;;  %v370_v1 = vrot.slane %v368_v56, 5  ;;  %v345_v3 = vshrl.u32 %v3429_v52, 16 }
  0x1a   : > { %2807 = vmatpush3.bf16.msra.mxu0 %v3143_v14  ;;  %v305_v43 = vrot.slane %v303_v38, 4  ;;  %v359_v46 = vshrl.u32 %v3415_v36, 16  ;;  %v308_v48 = vrot.slane %v306_v39, 5  ;;  %v362_v51 = vshll.u32 %v3415_v36, 16  ;;  %v3162_v4 = vld [vmem:[%s4140_s1 + $0xf8] sm:$0xff]   ;;  %v3448_v7 = vld [vmem:[%s3398_s6 + $0x48] sm:$0xff] }
  0x1b   : > { %2847 = vmatpush3.bf16.msra.mxu1 %v3144_v15  ;;  %2808 = vmatprep.subr.bf16.mxu0 %v3145_v16  ;;  %v333_v50 = vrot.slane %v331_v41, 4  ;;  %v336_v53 = vrot.slane %v334_v44, 5  ;;  %v319_v8 = vrot.slane %v317_v60, 4  ;;  %v322_v9 = vrot.slane %v320_v61, 5  ;;  %v210_v11 = vld [vmem:[%s3398_s6 + $0x58] sm:$0x11] }
  0x1c   : > { %2848 = vmatprep.subr.bf16.mxu1 %v3146_v17  ;;  %v361_v55 = vrot.slane %v359_v46, 4  ;;  %v309_v57 = vor.u32 %v308_v48, %v305_v43  ;;  %v364_v58 = vrot.slane %v362_v51, 5  ;;  %v328_v12 = vrot.slane %v326_v2, 5  ;;  %v3164_v45 = vld [vmem:[%s4140_s1 + $0xb8] sm:$0xff]   ;;  %v3167_v46 = vld [vmem:[%s4140_s1 + $0x30] sm:$0xff]   ;;  %v3498_v51 = vld [vmem:[%s3398_s6 + $0x60] sm:$0xff] }
  0x1d   : > { %v337_v0 = vor.u32 %v336_v53, %v333_v50  ;;  %v347_v13 = vrot.slane %v345_v3, 4  ;;  %v348_v14 = vshll.u32 %v3429_v52, 16  ;;  %v323_v17 = vor.u32 %v322_v9, %v319_v8  ;;  %v3166_v50 = vld [vmem:[%s4140_s1 + $0xf0] sm:$0xff]   ;;  %v214_v60 = vld [vmem:[%s3398_s6 + $0x78] sm:$0x11]  ;;  %v3169_v61 = vld [vmem:[%s4140_s1 + $0x68] sm:$0xff]  }
  0x1e   : > { %2809 = vmatpush3.bf16.msra.mxu0 %v3147_v18  ;;  %v310_v5 = vrot.slane %v309_v57, 4  ;;  %v365_v6 = vor.u32 %v364_v58, %v361_v55  ;;  %v354_v18 = vshll.u32 %v206_v59, 16  ;;  %v382_v37 = vshll.u32 %v210_v11, 16  ;;  %v213_v53 = vld [vmem:[%s3398_s6 + $0x70] sm:$0x11]  ;;  %v3507_v59 = vld [vmem:[%s3398_s6 + $0x68] sm:$0xff] }
  0x1f   : > { %2849 = vmatpush3.bf16.msra.mxu1 %v3148_v19  ;;  %2810 = vmatprep.subr.bf16.mxu0 %v3149_v20  ;;  %v338_v10 = vrot.slane %v337_v0, 4  ;;  %v350_v20 = vrot.slane %v348_v14, 5  ;;  %v2613_v40 = vcombine.high %v3411_v34, %v3415_v36  ;;  %v2615_v41 = vcombine.high %v3429_v52, %v3448_v7  ;;  %v3168_v8 = vld [vmem:[%s4140_s1 + $0xb0] sm:$0xff]  }
  0x20   : > { %2850 = vmatprep.subr.bf16.mxu1 %v3150_v21  ;;  %v315_v15 = vsel %vm3439_vm2, %v310_v5, %v314_v49  ;;  %v366_v16 = vrot.slane %v365_v6, 4  ;;  %v373_v21 = vshrl.u32 %v3448_v7, 16  ;;  %v384_v44 = vrot.slane %v382_v37, 5  ;;  %v217_v37 = vld [vmem:[%s3398_s6 + $0x90] sm:$0x11] }
  0x21   : > { %v3456_v19 = vsel %vm3439_vm2, %v338_v10, %v342_v54  ;;  %v2612_v47 = vcombine.low %v3411_v34, %v3415_v36  ;;  %v2614_v48 = vcombine.low %v3429_v52, %v3448_v7  ;;  %v387_v58 = vshrl.u32 %v3498_v51, 16 }
  0x22   : > { %2811 = vmatpush3.bf16.msra.mxu0 %v3151_v22  ;;  %v376_v22 = vshll.u32 %v3448_v7, 16  ;;  %v375_v33 = vrot.slane %v373_v21, 4  ;;  %v396_v0 = vshll.u32 %v213_v53, 16  ;;  %v404_v2 = vshll.u32 %v3507_v59, 16 }
  0x23   : > { %2851 = vmatpush3.bf16.msra.mxu1 %v3152_v23  ;;  %2812 = vmatprep.subr.bf16.mxu0 %v3153_v24  ;;  %v3163_v23 = vld [vmem:[%s4140_s1 + $0x38] sm:$0xff]   ;;  %v3465_v24 = vsel %vm3439_vm2, %v366_v16, %v370_v1  ;;  %v401_v1 = vshrl.u32 %v3507_v59, 16  ;;  %v410_v5 = vshll.u32 %v214_v60, 16  ;;  %v424_v53 = vshll.u32 %v217_v37, 16 }
  0x24   : > { %2852 = vmatprep.subr.bf16.mxu1 %v3154_v25  ;;  %v2452_v25 = vcombine.low %v315_v15, %v3456_v19  ;;  %v378_v35 = vrot.slane %v376_v22, 5  ;;  %v2725_v54 = vcombine.high %v3456_v19, %v3465_v24  ;;  %v406_v11 = vrot.slane %v404_v2, 5  ;;  %v3173_v22 = vld [vmem:[%s4140_s1 + $0x60] sm:$0xff]  }
  0x25   : > { %v403_v10 = vrot.slane %v401_v1, 4  ;;  %v398_v14 = vrot.slane %v396_v0, 5  ;;  %v222_v0 = vld [vmem:[%s3398_s6 + $0xb8] sm:$0x11]  ;;  %v426_v2 = vrot.slane %v424_v53, 5 }
  0x26   : > { %2813 = vmatpush3.bf16.msra.mxu0 %v3155_v26  ;;  %v2453_v26 = vcombine.high %v315_v15, %v3456_v19  ;;  %v379_v43 = vor.u32 %v378_v35, %v375_v33  ;;  %v3171_v15 = vld [vmem:[%s4140_s1 + $0x28] sm:$0xff]   ;;  %v3176_v33 = vld [vmem:[%s4140_s1 + $0xa0] sm:$0xff]  }
  0x27   : > { %2853 = vmatpush3.bf16.msra.mxu1 %v3156_v27  ;;  %2814 = vmatprep.subr.bf16.mxu0 %v3157_v28  ;;  %v324_v27 = vrot.slane %v323_v17, 4  ;;  %v3165_v28 = vld [vmem:[%s4140_s1 + $0x70] sm:$0xff]   ;;  %v407_v17 = vor.u32 %v406_v11, %v403_v10  ;;  %v3561_v35 = vld [vmem:[%s3398_s6 + $0x80] sm:$0xff] }
  0x28   : > { %2854 = vmatprep.subr.bf16.mxu1 %v3158_v29  ;;  %v2724_v29 = vcombine.low %v3456_v19, %v3465_v24  ;;  %879 = vmatprep.mubr.bf16.mxu0 %v2453_v26  ;;  %v380_v55 = vrot.slane %v379_v43, 4  ;;  %v3569_v43 = vld [vmem:[%s3398_s6 + $0xa0] sm:$0xff] }
  0x29   : > { %v329_v38 = vsel %vm3439_vm2, %v324_v27, %v328_v12  ;;  %v3170_v12 = vld [vmem:[%s4140_s1 + $0xe8] sm:$0xff]   ;;  %v3175_v27 = vld [vmem:[%s4140_s1 + $0x20] sm:$0xff]  }
  0x2a   : > { %2815 = vmatpush3.bf16.msra.mxu0 %v3159_v30  ;;  %v351_v30 = vor.u32 %v350_v20, %v347_v13  ;;  %v3518_v3 = vsel %vm3439_vm2, %v380_v55, %v384_v44  ;;  %v3172_v20 = vld [vmem:[%s4140_s1 + $0xa8] sm:$0xff]   ;;  %v221_v44 = vld [vmem:[%s3398_s6 + $0xb0] sm:$0x11]  ;;  %v443_v55 = vshrl.u32 %v3569_v43, 16 }
  0x2b   : > { %2855 = vmatpush3.bf16.msra.mxu1 %v3160_v31  ;;  %2880 = vmatprep.subr.bf16.mxu0 %v3161_v62  ;;  %v356_v31 = vrot.slane %v354_v18, 5  ;;  %v390_v62 = vshll.u32 %v3498_v51, 16  ;;  %v412_v18 = vrot.slane %v410_v5, 5 }
  0x2c   : > { %2920 = vmatprep.subr.bf16.mxu1 %v3162_v4  ;;  %v352_v39 = vrot.slane %v351_v30, 4  ;;  %v389_v4 = vrot.slane %v387_v58, 4  ;;  %v218_v58 = vld [vmem:[%s3398_s6 + $0x98] sm:$0x11] }
  0x2d   : > { %880 = vmatmul.mubr.bf16.vlgmr.msra.gmra.mxu0 %v2452_v25  ;;  %v392_v9 = vrot.slane %v390_v62, 5  ;;  %v3174_v25 = vld [vmem:[%s4140_s1 + $0xe0] sm:$0xff]   ;;  %v3581_v62 = vld [vmem:[%s3398_s6 + $0xa8] sm:$0xff] }
  0x2e   : > { %2881 = vmatpush3.bf16.msra.mxu0 %v3163_v23  ;;  %v3492_v49 = vsel %vm3439_vm2, %v352_v39, %v356_v31  ;;  %v408_v23 = vrot.slane %v407_v17, 4  ;;  %v460_v17 = vshll.u32 %v3581_v62, 16 }
  0x2f   : > { %2882 = vmatprep.subr.bf16.mxu0 %v3165_v28  ;;  %v2454_v56 = vcombine.low %v329_v38, %v3492_v49  ;;  %v2455_v57 = vcombine.high %v329_v38, %v3492_v49  ;;  %v2726_v6 = vcombine.low %v3492_v49, %v3518_v3  ;;  %v393_v13 = vor.u32 %v392_v9, %v389_v4 }
  0x30   : > { %v2727_v16 = vcombine.high %v3492_v49, %v3518_v3  ;;  %v3553_v30 = vsel %vm3439_vm2, %v408_v23, %v412_v18  ;;  %v445_v4 = vrot.slane %v443_v55, 4  ;;  %v466_v18 = vshll.u32 %v222_v0, 16  ;;  %v3182_v0 = vld [vmem:[%s4140_s1 + $0xd0] sm:$0xff]  }
  0x31   : > { %944 = vmatprep.mubr.bf16.mxu1 %v2455_v57  ;;  %v394_v21 = vrot.slane %v393_v13, 4  ;;  %v2459_v38 = vcombine.high %v3518_v3, %v3553_v30  ;;  %v2458_v39 = vcombine.low %v3518_v3, %v3553_v30  ;;  %v452_v57 = vshll.u32 %v221_v44, 16  ;;  %v3177_v13 = vld [vmem:[%s4140_s1 + $0x58] sm:$0xff]  }
  0x32   : > { %2883 = vmatpush3.bf16.msra.mxu0 %v3167_v46  ;;  %945 = vmatmul.mubr.bf16.vlgmr.msra.gmra.mxu1 %v2454_v56  ;;  %v418_v46 = vshll.u32 %v3561_v35, 16  ;;  %v446_v56 = vshll.u32 %v3569_v43, 16 }
  0x33   : > { %2884 = vmatprep.subr.bf16.mxu0 %v3169_v61  ;;  %2921 = vmatpush3.bf16.msra.mxu1 %v3164_v45  ;;  %v3544_v26 = vsel %vm3439_vm2, %v394_v21, %v398_v14  ;;  %v415_v45 = vshrl.u32 %v3561_v35, 16 }
  0x34   : > { %2922 = vmatprep.subr.bf16.mxu1 %v3166_v50  ;;  %v2457_v28 = vcombine.high %v3465_v24, %v3544_v26  ;;  %v2456_v31 = vcombine.low %v3465_v24, %v3544_v26  ;;  %v3575_v50 = vld [vmem:[%s3398_s6 + $0x88] sm:$0xff]  ;;  %952 = vmatprep.mubr.bf16.mxu1 %v2459_v38  ;;  %v420_v61 = vrot.slane %v418_v46, 5  ;;  %v448_v5 = vrot.slane %v446_v56, 5 }
  0x35   : > { %v417_v60 = vrot.slane %v415_v45, 4  ;;  %v429_v1 = vshrl.u32 %v3575_v50, 16  ;;  %v432_v11 = vshll.u32 %v3575_v50, 16  ;;  %v3180_v45 = vld [vmem:[%s4140_s1 + $0x98] sm:$0xff]   ;;  %v2617_v46 = vcombine.high %v3498_v51, %v3561_v35 }
  0x36   : > { %2885 = vmatpush3.bf16.msra.mxu0 %v3171_v15  ;;  %887 = vmatprep.mubr.bf16.mxu0 %v2457_v28  ;;  %v449_v14 = vor.u32 %v448_v5, %v445_v4  ;;  %v457_v15 = vshrl.u32 %v3581_v62, 16  ;;  %v2619_v53 = vcombine.high %v3507_v59, %v3575_v50 }
  0x37   : > { %2923 = vmatpush3.bf16.msra.mxu1 %v3168_v8  ;;  %2886 = vmatprep.subr.bf16.mxu0 %v3173_v22  ;;  %v454_v8 = vrot.slane %v452_v57, 5  ;;  %v421_v9 = vor.u32 %v420_v61, %v417_v60  ;;  %v431_v10 = vrot.slane %v429_v1, 4  ;;  %v434_v22 = vrot.slane %v432_v11, 5  ;;  %v3645_v11 = vld [vmem:[%s3398_s6 + $0xc0] sm:$0xff] }
  0x38   : > { %2924 = vmatprep.subr.bf16.mxu1 %v3170_v12  ;;  %888 = vmatmul.mubr.bf16.gmra.mxu0 %v2456_v31  ;;  %v438_v12 = vshll.u32 %v218_v58, 16  ;;  %v459_v28 = vrot.slane %v457_v15, 4  ;;  %v462_v31 = vrot.slane %v460_v17, 5  ;;  %v3181_v58 = vld [vmem:[%s4140_s1 + $0x50] sm:$0xff]   ;;  %v2616_v60 = vcombine.low %v3498_v51, %v3561_v35 }
  0x39   : > { %v422_v21 = vrot.slane %v421_v9, 4  ;;  %v435_v38 = vor.u32 %v434_v22, %v431_v10  ;;  %v2618_v1 = vcombine.low %v3507_v59, %v3575_v50  ;;  %v3184_v10 = vld [vmem:[%s4140_s1 + $0x90] sm:$0xff]   ;;  %v474_v22 = vshll.u32 %v3645_v11, 16 }
  0x3a   : > { %2887 = vmatpush3.bf16.msra.mxu0 %v3175_v27  ;;  %953 = vmatmul.mubr.bf16.gmra.mxu1 %v2458_v39  ;;  %v440_v23 = vrot.slane %v438_v12, 5  ;;  %v450_v27 = vrot.slane %v449_v14, 4  ;;  %v463_v44 = vor.u32 %v462_v31, %v459_v28  ;;  %v225_v12 = vld [vmem:[%s3398_s6 + $0xd0] sm:$0x11] }
  0x3b   : > { %2925 = vmatpush3.bf16.msra.mxu1 %v3172_v20  ;;  %v3178_v20 = vld [vmem:[%s4140_s1 + $0xd8] sm:$0xff]   ;;  %2888 = vmatprep.subr.bf16.mxu0 %v3177_v13  ;;  %v3599_v37 = vsel %vm3439_vm2, %v422_v21, %v426_v2  ;;  %v436_v56 = vrot.slane %v435_v38, 4  ;;  %v471_v21 = vshrl.u32 %v3645_v11, 16 }
  0x3c   : > { %2926 = vmatprep.subr.bf16.mxu1 %v3174_v25  ;;  %v3179_v25 = vld [vmem:[%s4140_s1 + $0x18] sm:$0xff]   ;;  %v3603_v39 = vsel %vm3439_vm2, %v450_v27, %v454_v8  ;;  %v464_v61 = vrot.slane %v463_v44, 4  ;;  %v2729_v2 = vcombine.high %v3544_v26, %v3599_v37  ;;  %v3183_v8 = vld [vmem:[%s4140_s1 + $0x10] sm:$0xff]   ;;  %v476_v44 = vrot.slane %v474_v22, 5 }
  0x3d   : > { %v2461_v55 = vcombine.high %v3599_v37, %v3603_v39  ;;  %v2460_v57 = vcombine.low %v3599_v37, %v3603_v39  ;;  %v3632_v5 = vsel %vm3439_vm2, %v436_v56, %v440_v23  ;;  %v3663_v23 = vld [vmem:[%s3398_s6 + $0xc8] sm:$0xff]  ;;  %v473_v38 = vrot.slane %v471_v21, 4 }
  0x3e   : > { %2889 = vmatpush3.bf16.msra.mxu0 %v3179_v25  ;;  %v2731_v13 = vcombine.high %v3553_v30, %v3632_v5  ;;  %v480_v25 = vshll.u32 %v225_v12, 16  ;;  %v485_v56 = vshrl.u32 %v3663_v23, 16  ;;  %v488_v12 = vshll.u32 %v3663_v23, 16 }
  0x3f   : > { %2927 = vmatpush3.bf16.msra.mxu1 %v3176_v33  ;;  %v468_v33 = vrot.slane %v466_v18, 5  ;;  %895 = vmatprep.mubr.bf16.mxu0 %v2461_v55  ;;  %v3657_v18 = vld [vmem:[%s3398_s6 + $0xe0] sm:$0xff]  ;;  %v230_v55 = vld [vmem:[%s3398_s6 + $0xf8] sm:$0x11] }
  0x40   : > { %2928 = vmatprep.subr.bf16.mxu1 %v3178_v20  ;;  %2890 = vmatprep.subr.bf16.mxu0 %v3181_v58  ;;  %v229_v20 = vld [vmem:[%s3398_s6 + $0xf0] sm:$0x11]  ;;  %v499_v27 = vshrl.u32 %v3657_v18, 16  ;;  %v502_v28 = vshll.u32 %v3657_v18, 16  ;;  %v522_v4 = vshll.u32 %v230_v55, 16 }
  0x41   : > { %v3639_v9 = vsel %vm3439_vm2, %v464_v61, %v468_v33  ;;  %896 = vmatmul.mubr.bf16.gmra.mxu0 %v2460_v57  ;;  %v508_v31 = vshll.u32 %v229_v20, 16  ;;  %v226_v33 = vld [vmem:[%s3398_s6 + $0xd8] sm:$0x11]  ;;  %v482_v57 = vrot.slane %v480_v25, 5 }
  0x42   : > { %v2463_v15 = vcombine.high %v3632_v5, %v3639_v9  ;;  %v2462_v17 = vcombine.low %v3632_v5, %v3639_v9  ;;  %2891 = vmatpush3.bf16.msra.mxu0 %v3183_v8  ;;  %v501_v58 = vrot.slane %v499_v27, 4  ;;  %v504_v61 = vrot.slane %v502_v28, 5  ;;  %v3187_v28 = vld [vmem:[%s4140_s1 + $0x8] sm:$0xff]  }
  0x43   : > { %2929 = vmatpush3.bf16.msra.mxu1 %v3180_v45  ;;  %v3669_v45 = vld [vmem:[%s3398_s6 + $0xe8] sm:$0xff]  ;;  %v477_v8 = vor.u32 %v476_v44, %v473_v38  ;;  %v494_v14 = vshll.u32 %v226_v33, 16  ;;  %v490_v27 = vrot.slane %v488_v12, 5 }
  0x44   : > { %2930 = vmatprep.subr.bf16.mxu1 %v3182_v0  ;;  %960 = vmatprep.mubr.bf16.mxu1 %v2463_v15  ;;  %v510_v0 = vrot.slane %v508_v31, 5  ;;  %v3185_v15 = vld [vmem:[%s4140_s1 + $0x48] sm:$0xff]   ;;  %v505_v20 = vor.u32 %v504_v61, %v501_v58  ;;  %v513_v21 = vshrl.u32 %v3669_v45, 16  ;;  %v516_v22 = vshll.u32 %v3669_v45, 16 }
  0x45   : > { %961 = vmatmul.mubr.bf16.gmra.mxu1 %v2462_v17  ;;  %v3186_v17 = vld [vmem:[%s4140_s1 + $0xc8] sm:$0xff]   ;;  %v478_v25 = vrot.slane %v477_v8, 4  ;;  %2892 = vmatprep.subr.bf16.mxu0 %v3185_v15  ;;  %v496_v33 = vrot.slane %v494_v14, 5  ;;  %v524_v8 = vrot.slane %v522_v4, 5  ;;  %v2501_v14 = vcombine.high %v3407_v32, %v3411_v34 }
  0x46   : > { %v506_v31 = vrot.slane %v505_v20, 4  ;;  %v515_v38 = vrot.slane %v513_v21, 4  ;;  %v518_v44 = vrot.slane %v516_v22, 5  ;;  %2893 = vmatpush3.bf16.msra.mxu0 %v3187_v28  ;;  %v3188_v12 = vld [vmem:[%s4140_s1 + $0x88] sm:$0xff]   ;;  %v2620_v4 = vcombine.low %v3569_v43, %v3645_v11  ;;  %v3190_v21 = vld [vmem:[%s4140_s1 + $0xc0] sm:$0xff]  }
  0x47   : > { %2931 = vmatpush3.bf16.msra.mxu1 %v3184_v10  ;;  %v487_v10 = vrot.slane %v485_v56, 4  ;;  %v3687_v56 = vsel %vm3439_vm2, %v478_v25, %v482_v57  ;;  %v2622_v22 = vcombine.low %v3581_v62, %v3663_v23  ;;  %v3191_v28 = vld [vmem:[%s4140_s1] sm:$0xff]  }
  0x48   : > { %2932 = vmatprep.subr.bf16.mxu1 %v3186_v17  ;;  %v3691_v58 = vsel %vm3439_vm2, %v506_v31, %v510_v0  ;;  %v519_v61 = vor.u32 %v518_v44, %v515_v38  ;;  %v3189_v0 = vld [vmem:[%s4140_s1 + $0x40] sm:$0xff]   ;;  %v2733_v17 = vcombine.high %v3603_v39, %v3687_v56  ;;  %v2732_v25 = vcombine.low %v3603_v39, %v3687_v56 }
  0x49   : > { %v491_v55 = vor.u32 %v490_v27, %v487_v10  ;;  %v2465_v15 = vcombine.high %v3687_v56, %v3691_v58  ;;  %v2464_v10 = vcombine.low %v3687_v56, %v3691_v58  ;;  %2894 = vmatprep.subr.bf16.mxu0 %v3189_v0  ;;  %v3192_v38 = vld [vmem:[%s4140_s1 + $0x80] sm:$0xff]   ;;  %v3197_v0 = vld [vmem:[%s4140_s1 + $0x270] sm:$0xff]  }
  0x4a   : > { %v520_v20 = vrot.slane %v519_v61, 4  ;;  %2895 = vmatpush3.bf16.msra.mxu0 %v3191_v28  ;;  %v3198_v28 = vld [vmem:[%s4140_s1 + $0x2f0] sm:$0xff]  }
  0x4b   : > { %v492_v57 = vrot.slane %v491_v55, 4  ;;  %2933 = vmatpush3.bf16.msra.mxu1 %v3188_v12  ;;  %903 = vmatprep.mubr.bf16.mxu0 %v2465_v15  ;;  %v3193_v12 = vld [vmem:[%s4140_s1 + $0x278] sm:$0xff]  }
  0x4c   : > { %v3725_v31 = vsel %vm3439_vm2, %v520_v20, %v524_v8  ;;  %904 = vmatmul.mubr.bf16.gmra.mxu0 %v2464_v10  ;;  %2934 = vmatprep.subr.bf16.mxu1 %v3190_v21  ;;  %v2503_v8 = vcombine.high %v3422_v42, %v3429_v52  ;;  %v3194_v15 = vld [vmem:[%s4140_s1 + $0x2f8] sm:$0xff]   ;;  %v2505_v10 = vcombine.high %v3415_v36, %v3498_v51  ;;  %v3199_v21 = vld [vmem:[%s4140_s1 + $0x230] sm:$0xff]  }
  0x4d   : > { %v3718_v27 = vsel %vm3439_vm2, %v492_v57, %v496_v33  ;;  %1281 = vmatprep.mubr.bf16.mxu0 %v2501_v14  ;;  %2960 = vmatprep.subr.bf16.mxu0 %v3193_v12  ;;  %v2500_v57 = vcombine.low %v3407_v32, %v3411_v34  ;;  %v3195_v14 = vld [vmem:[%s4140_s1 + $0x238] sm:$0xff]   ;;  %v2502_v20 = vcombine.low %v3422_v42, %v3429_v52  ;;  %v3200_v42 = vld [vmem:[%s4140_s1 + $0x2b0] sm:$0xff]   ;;  %v3203_v12 = vld [vmem:[%s4140_s1 + $0x228] sm:$0xff]  }
  0x4e   : > { %v2735_v44 = vcombine.high %v3639_v9, %v3718_v27  ;;  %v2734_v33 = vcombine.low %v3639_v9, %v3718_v27  ;;  %v2467_v55 = vcombine.high %v3718_v27, %v3725_v31  ;;  %v2466_v61 = vcombine.low %v3718_v27, %v3725_v31  ;;  %v3196_v32 = vld [vmem:[%s4140_s1 + $0x2b8] sm:$0xff]   ;;  %v3232_v34 = vld [vmem:[%s4140_s1 + $0x3b0] sm:$0xff]   ;;  %v3237_v52 = vld [vmem:[%s4140_s1 + $0x360] sm:$0xff]  }
  0x4f   : > { %2935 = vmatpush3.bf16.msra.mxu1 %v3192_v38  ;;  %v2507_v38 = vcombine.high %v3448_v7, %v3507_v59 }
  0x50   : > { %968 = vmatprep.mubr.bf16.mxu1 %v2467_v55  ;;  %3000 = vmatprep.subr.bf16.mxu1 %v3194_v15  ;;  %v3201_v55 = vld [vmem:[%s4140_s1 + $0x268] sm:$0xff]   ;;  %v3205_v15 = vld [vmem:[%s4140_s1 + $0x260] sm:$0xff]  }
  0x51   : > { %969 = vmatmul.mubr.bf16.gmra.mxu1 %v2466_v61  ;;  %v2504_v61 = vcombine.low %v3415_v36, %v3498_v51  ;;  %v3233_v36 = vld [vmem:[%s4140_s1 + $0x368] sm:$0xff]   ;;  %v2623_v51 = vcombine.high %v3581_v62, %v3663_v23 }
  0x52   : > { %1346 = vmatprep.mubr.bf16.mxu1 %v2503_v8  ;;  %v3202_v8 = vld [vmem:[%s4140_s1 + $0x2e8] sm:$0xff]  }
  0x54   : > { %1282 = vmatmul.mubr.bf16.vlgmr.msra.gmra.mxu0 %v2500_v57  ;;  %v2509_v57 = vcombine.high %v3561_v35, %v3569_v43 }
  0x55   : > { %2961 = vmatpush3.bf16.msra.mxu0 %v3195_v14  ;;  %1289 = vmatprep.mubr.bf16.mxu0 %v2505_v10  ;;  %v2506_v14 = vcombine.low %v3448_v7, %v3507_v59  ;;  %v3204_v10 = vld [vmem:[%s4140_s1 + $0x2a8] sm:$0xff]   ;;  %v2621_v7 = vcombine.high %v3569_v43, %v3645_v11  ;;  %v3244_v59 = vld [vmem:[%s4140_s1 + $0x398] sm:$0xff]  }
  0x56   : > { %2962 = vmatprep.subr.bf16.mxu0 %v3197_v0  ;;  %v3207_v0 = vld [vmem:[%s4140_s1 + $0x220] sm:$0xff]  }
  0x59   : > { %1347 = vmatmul.mubr.bf16.vlgmr.msra.gmra.mxu1 %v2502_v20  ;;  %2963 = vmatpush3.bf16.msra.mxu0 %v3199_v21  ;;  %v3206_v20 = vld [vmem:[%s4140_s1 + $0x2e0] sm:$0xff]  }
  0x5a   : > { %3001 = vmatpush3.bf16.msra.mxu1 %v3196_v32  ;;  %1354 = vmatprep.mubr.bf16.mxu1 %v2507_v38  ;;  %v2511_v32 = vcombine.high %v3575_v50, %v3581_v62  ;;  %v3208_v21 = vld [vmem:[%s4140_s1 + $0x2a0] sm:$0xff]   ;;  %v2508_v38 = vcombine.low %v3561_v35, %v3569_v43  ;;  %v3246_v43 = vld [vmem:[%s4140_s1 + $0x3d0] sm:$0xff]  }
  0x5b   : > { %3002 = vmatprep.subr.bf16.mxu1 %v3198_v28  ;;  %2964 = vmatprep.subr.bf16.mxu0 %v3201_v55  ;;  %v3209_v28 = vld [vmem:[%s4140_s1 + $0x258] sm:$0xff]   ;;  %v3240_v35 = vld [vmem:[%s4140_s1 + $0x3a0] sm:$0xff]  }
  0x5c   : > { %1290 = vmatmul.mubr.bf16.gmra.mxu0 %v2504_v61  ;;  %v3211_v55 = vld [vmem:[%s4140_s1 + $0x218] sm:$0xff]   ;;  %v3213_v61 = vld [vmem:[%s4140_s1 + $0x250] sm:$0xff]  }
  0x5d   : > { %2965 = vmatpush3.bf16.msra.mxu0 %v3203_v12  ;;  %1297 = vmatprep.mubr.bf16.mxu0 %v2509_v57  ;;  %v2510_v12 = vcombine.low %v3575_v50, %v3581_v62  ;;  %v3215_v57 = vld [vmem:[%s4140_s1 + $0x210] sm:$0xff]   ;;  %v231_v50 = vld [vmem:[%s3398_s6 + $0x100] sm:$0xff] }
  0x5e   : > { %3003 = vmatpush3.bf16.msra.mxu1 %v3200_v42  ;;  %2966 = vmatprep.subr.bf16.mxu0 %v3205_v15  ;;  %v3210_v42 = vld [vmem:[%s4140_s1 + $0x2d8] sm:$0xff]  }
  0x5f   : > { %3004 = vmatprep.subr.bf16.mxu1 %v3202_v8  ;;  %v2513_v8 = vcombine.high %v3645_v11, %v3657_v18  ;;  %v3212_v15 = vld [vmem:[%s4140_s1 + $0x298] sm:$0xff]  }
  0x61   : > { %1355 = vmatmul.mubr.bf16.gmra.mxu1 %v2506_v14  ;;  %2967 = vmatpush3.bf16.msra.mxu0 %v3207_v0  ;;  %v3214_v14 = vld [vmem:[%s4140_s1 + $0x2d0] sm:$0xff]  }
  0x62   : > { %3005 = vmatpush3.bf16.msra.mxu1 %v3204_v10  ;;  %1362 = vmatprep.mubr.bf16.mxu1 %v2511_v32  ;;  %v2515_v10 = vcombine.high %v3663_v23, %v3669_v45  ;;  %v3216_v0 = vld [vmem:[%s4140_s1 + $0x290] sm:$0xff]   ;;  %v2512_v32 = vcombine.low %v3645_v11, %v3657_v18 }
  0x63   : > { %3006 = vmatprep.subr.bf16.mxu1 %v3206_v20  ;;  %2968 = vmatprep.subr.bf16.mxu0 %v3209_v28  ;;  %v3217_v20 = vld [vmem:[%s4140_s1 + $0x248] sm:$0xff]  }
  0x64   : > { %1298 = vmatmul.mubr.bf16.gmra.mxu0 %v2508_v38  ;;  %v3219_v28 = vld [vmem:[%s4140_s1 + $0x208] sm:$0xff]   ;;  %v3221_v38 = vld [vmem:[%s4140_s1 + $0x240] sm:$0xff]  }
  0x65   : > { %2969 = vmatpush3.bf16.msra.mxu0 %v3211_v55  ;;  %1305 = vmatprep.mubr.bf16.mxu0 %v2513_v8  ;;  %v3220_v55 = vld [vmem:[%s4140_s1 + $0x288] sm:$0xff]   ;;  %v3222_v8 = vld [vmem:[%s4140_s1 + $0x2c0] sm:$0xff]  }
  0x66   : > { %3007 = vmatpush3.bf16.msra.mxu1 %v3208_v21  ;;  %2970 = vmatprep.subr.bf16.mxu0 %v3213_v61  ;;  %v3218_v21 = vld [vmem:[%s4140_s1 + $0x2c8] sm:$0xff]   ;;  %v3223_v61 = vld [vmem:[%s4140_s1 + $0x200] sm:$0xff]  }
  0x67   : > { %3008 = vmatprep.subr.bf16.mxu1 %v3210_v42  ;;  %v2514_v42 = vcombine.low %v3663_v23, %v3669_v45  ;;  %v3255_v23 = vld [vmem:[%s4140_s1 + $0x300] sm:$0xff]  }
  0x69   : > { %1363 = vmatmul.mubr.bf16.gmra.mxu1 %v2510_v12  ;;  %2971 = vmatpush3.bf16.msra.mxu0 %v3215_v57  ;;  %v3224_v12 = vld [vmem:[%s4140_s1 + $0x280] sm:$0xff]   ;;  %v3226_v57 = vld [vmem:[%s4140_s1 + $0x3f8] sm:$0xff]  }
  0x6a   : > { %3009 = vmatpush3.bf16.msra.mxu1 %v3212_v15  ;;  %1370 = vmatprep.mubr.bf16.mxu1 %v2515_v10  ;;  %v3225_v15 = vld [vmem:[%s4140_s1 + $0x378] sm:$0xff]  }
  0x6b   : > { %3010 = vmatprep.subr.bf16.mxu1 %v3214_v14  ;;  %2972 = vmatprep.subr.bf16.mxu0 %v3217_v20  ;;  %v3227_v14 = vld [vmem:[%s4140_s1 + $0x338] sm:$0xff]   ;;  %v3235_v20 = vld [vmem:[%s4140_s1 + $0x328] sm:$0xff]  }
  0x6c   : > { %1306 = vmatmul.mubr.bf16.gmra.mxu0 %v2512_v32  ;;  %v3228_v10 = vld [vmem:[%s4140_s1 + $0x3b8] sm:$0xff]  }
  0x6d   : > { %2973 = vmatpush3.bf16.msra.mxu0 %v3219_v28  ;;  %1706 = vmatprep.mubr.bf16.mxu0 %v2613_v40  ;;  %v3229_v40 = vld [vmem:[%s4140_s1 + $0x370] sm:$0xff]   ;;  %v3242_v32 = vld [vmem:[%s4140_s1 + $0x3d8] sm:$0xff]  }
  0x6e   : > { %3011 = vmatpush3.bf16.msra.mxu1 %v3216_v0  ;;  %2974 = vmatprep.subr.bf16.mxu0 %v3221_v38  ;;  %v3231_v0 = vld [vmem:[%s4140_s1 + $0x330] sm:$0xff]  }
  0x6f   : > { %3012 = vmatprep.subr.bf16.mxu1 %v3218_v21  ;;  %v3243_v21 = vld [vmem:[%s4140_s1 + $0x318] sm:$0xff]   ;;  %v3245_v28 = vld [vmem:[%s4140_s1 + $0x350] sm:$0xff]  }
  0x70   : > { %v3247_v38 = vld [vmem:[%s4140_s1 + $0x310] sm:$0xff]  }
  0x71   : > { %1371 = vmatmul.mubr.bf16.gmra.mxu1 %v2514_v42  ;;  %2975 = vmatpush3.bf16.msra.mxu0 %v3223_v61  ;;  %v2625_v42 = vcombine.high %v3657_v18, %v231_v50  ;;  %v2624_v61 = vcombine.low %v3657_v18, %v231_v50  ;;  %v3252_v18 = vld [vmem:[%s4140_s1 + $0x388] sm:$0xff]  }
  0x72   : > { %3013 = vmatpush3.bf16.msra.mxu1 %v3220_v55  ;;  %1771 = vmatprep.mubr.bf16.mxu1 %v2615_v41  ;;  %v3230_v41 = vld [vmem:[%s4140_s1 + $0x3f0] sm:$0xff]  }
  0x73   : > { %3014 = vmatprep.subr.bf16.mxu1 %v3222_v8  ;;  %3040 = vmatprep.subr.bf16.mxu0 %v3225_v15  ;;  %v3248_v55 = vld [vmem:[%s4140_s1 + $0x390] sm:$0xff]   ;;  %v3250_v8 = vld [vmem:[%s4140_s1 + $0x3c8] sm:$0xff]   ;;  %v3253_v15 = vld [vmem:[%s4140_s1 + $0x340] sm:$0xff]  }
  0x74   : > { %1707 = vmatmul.mubr.bf16.vlgmr.msra.gmra.mxu0 %v2612_v47  ;;  %v3234_v47 = vld [vmem:[%s4140_s1 + $0x3e8] sm:$0xff]  }
  0x75   : > { %3041 = vmatpush3.bf16.msra.mxu0 %v3227_v14  ;;  %1714 = vmatprep.mubr.bf16.mxu0 %v2617_v46  ;;  %v3239_v46 = vld [vmem:[%s4140_s1 + $0x320] sm:$0xff]  }
  0x76   : > { %3015 = vmatpush3.bf16.msra.mxu1 %v3224_v12  ;;  %3042 = vmatprep.subr.bf16.mxu0 %v3229_v40  ;;  %v3251_v12 = vld [vmem:[%s4140_s1 + $0x308] sm:$0xff]   ;;  %v3254_v14 = vld [vmem:[%s4140_s1 + $0x3c0] sm:$0xff]  }
  0x77   : > { %3080 = vmatprep.subr.bf16.mxu1 %v3226_v57  ;;  %v1816_v57 = vshll.u32 %v231_v50, 16 }
  0x79   : > { %1772 = vmatmul.mubr.bf16.vlgmr.msra.gmra.mxu1 %v2614_v48  ;;  %3043 = vmatpush3.bf16.msra.mxu0 %v3231_v0  ;;  %v3236_v48 = vld [vmem:[%s4140_s1 + $0x3a8] sm:$0xff]  }
  0x7a   : > { %3081 = vmatpush3.bf16.msra.mxu1 %v3228_v10  ;;  %1779 = vmatprep.mubr.bf16.mxu1 %v2619_v53  ;;  %v3238_v53 = vld [vmem:[%s4140_s1 + $0x3e0] sm:$0xff]  }
  0x7b   : > { %3082 = vmatprep.subr.bf16.mxu1 %v3230_v41  ;;  %3044 = vmatprep.subr.bf16.mxu0 %v3233_v36  ;;  %v1818_v41 = vrot.slane %v1816_v57, 5 }
  0x7c   : > { %1715 = vmatmul.mubr.bf16.gmra.mxu0 %v2616_v60  ;;  %v3241_v60 = vld [vmem:[%s4140_s1 + $0x358] sm:$0xff]  }
  0x7d   : > { %3045 = vmatpush3.bf16.msra.mxu0 %v3235_v20  ;;  %1722 = vmatprep.mubr.bf16.mxu0 %v2621_v7 }
  0x7e   : > { %3083 = vmatpush3.bf16.msra.mxu1 %v3232_v34  ;;  %3046 = vmatprep.subr.bf16.mxu0 %v3237_v52  ;;  %v233_v34 = vld [vmem:[%s3398_s6 + $0x110] sm:$0x11]  ;;  %v234_v52 = vld [vmem:[%s3398_s6 + $0x118] sm:$0x11] }
  0x7f   : > { %3084 = vmatprep.subr.bf16.mxu1 %v3234_v47  ;;  %v1822_v36 = vshll.u32 %v233_v34, 16 }
  0x81   : > { %1780 = vmatmul.mubr.bf16.gmra.mxu1 %v2618_v1  ;;  %3047 = vmatpush3.bf16.msra.mxu0 %v3239_v46  ;;  %v232_v1 = vld [vmem:[%s3398_s6 + $0x108] sm:$0xff]  ;;  %v1824_v24 = vrot.slane %v1822_v36, 5 }
  0x82   : > { %3085 = vmatpush3.bf16.msra.mxu1 %v3236_v48  ;;  %1787 = vmatprep.mubr.bf16.mxu1 %v2623_v51  ;;  %v2627_v11 = vcombine.high %v3669_v45, %v232_v1  ;;  %v2626_v62 = vcombine.low %v3669_v45, %v232_v1  ;;  %v3256_v45 = vld [vmem:[%s4140_s1 + $0x380] sm:$0xff]   ;;  %v1827_v40 = vshrl.u32 %v232_v1, 16  ;;  %v1830_v10 = vshll.u32 %v232_v1, 16 }
  0x83   : > { %3086 = vmatprep.subr.bf16.mxu1 %v3238_v53  ;;  %3048 = vmatprep.subr.bf16.mxu0 %v3241_v60 }
  0x84   : > { %1723 = vmatmul.mubr.bf16.gmra.mxu0 %v2620_v4  ;;  %v3249_v4 = vld [vmem:[%s4140_s1 + $0x348] sm:$0xff]   ;;  %v1829_v47 = vrot.slane %v1827_v40, 4  ;;  %v1832_v20 = vrot.slane %v1830_v10, 5 }
  0x85   : > { %3049 = vmatpush3.bf16.msra.mxu0 %v3243_v21  ;;  %1730 = vmatprep.mubr.bf16.mxu0 %v2625_v42 }
  0x86   : > { %3087 = vmatpush3.bf16.msra.mxu1 %v3240_v35  ;;  %3050 = vmatprep.subr.bf16.mxu0 %v3245_v28 }
  0x87   : > { %3088 = vmatprep.subr.bf16.mxu1 %v3242_v32 }
  0x89   : > { %1788 = vmatmul.mubr.bf16.gmra.mxu1 %v2622_v22  ;;  %3051 = vmatpush3.bf16.msra.mxu0 %v3247_v38  ;;  %v1813_v22 = vshrl.u32 %v231_v50, 16 }
  0x8a   : > { %3089 = vmatpush3.bf16.msra.mxu1 %v3244_v59  ;;  %1795 = vmatprep.mubr.bf16.mxu1 %v2627_v11 }
  0x8b   : > { %3090 = vmatprep.subr.bf16.mxu1 %v3246_v43  ;;  %3052 = vmatprep.subr.bf16.mxu0 %v3249_v4  ;;  %v1815_v0 = vrot.slane %v1813_v22, 4 }
  0x8c   : > { %1731 = vmatmul.mubr.bf16.gmra.mxu0 %v2624_v61 }
  0x8d   : > { %3053 = vmatpush3.bf16.msra.mxu0 %v3251_v12  ;;  %2165 = vmatprep.mubr.bf16.mxu0 %v2725_v54  ;;  %v1819_v54 = vor.u32 %v1818_v41, %v1815_v0 }
  0x8e   : > { %3091 = vmatpush3.bf16.msra.mxu1 %v3248_v55  ;;  %3054 = vmatprep.subr.bf16.mxu0 %v3253_v15 }
  0x8f   : > { %3092 = vmatprep.subr.bf16.mxu1 %v3250_v8  ;;  %v1820_v19 = vrot.slane %v1819_v54, 4 }
  0x91   : > { %1796 = vmatmul.mubr.bf16.gmra.mxu1 %v2626_v62  ;;  %3055 = vmatpush3.bf16.msra.mxu0 %v3255_v23  ;;  %v1825_v49 = vsel %vm3439_vm2, %v1820_v19, %v1824_v24 }
  0x92   : > { %3093 = vmatpush3.bf16.msra.mxu1 %v3252_v18  ;;  %2230 = vmatprep.mubr.bf16.mxu1 %v2727_v16  ;;  %v1836_v16 = vshll.u32 %v234_v52, 16 }
  0x93   : > { %3094 = vmatprep.subr.bf16.mxu1 %v3254_v14 }
  0x94   : > { %2166 = vmatmul.mubr.bf16.vlgmr.msra.gmra.mxu0 %v2724_v29  ;;  %v1833_v29 = vor.u32 %v1832_v20, %v1829_v47 }
  0x95   : > { %2173 = vmatprep.mubr.bf16.mxu0 %v2729_v2  ;;  %v4146_v2 = vcombine.low %v3544_v26, %v3599_v37  ;;  %v2737_v26 = vcombine.high %v3691_v58, %v1825_v49 }
  0x96   : > { %3095 = vmatpush3.bf16.msra.mxu1 %v3256_v45  ;;  %v1834_v3 = vrot.slane %v1833_v29, 4 }
  0x99   : > { %2231 = vmatmul.mubr.bf16.vlgmr.msra.gmra.mxu1 %v2726_v6  ;;  %v1838_v6 = vrot.slane %v1836_v16, 5 }
  0x9a   : > { %2238 = vmatprep.mubr.bf16.mxu1 %v2731_v13  ;;  %v4147_v13 = vcombine.low %v3553_v30, %v3632_v5  ;;  %v2736_v30 = vcombine.low %v3691_v58, %v1825_v49 }
  0x9b   : > { %v1839_v37 = vsel %vm3439_vm2, %v1834_v3, %v1838_v6 }
  0x9c   : > { %2174 = vmatmul.mubr.bf16.gmra.mxu0 %v4146_v2  ;;  %v2738_v5 = vcombine.low %v3725_v31, %v1839_v37 }
  0x9d   : > { %2181 = vmatprep.mubr.bf16.mxu0 %v2733_v17  ;;  %v2739_v17 = vcombine.high %v3725_v31, %v1839_v37 }
  0xa1   : > { %2239 = vmatmul.mubr.bf16.gmra.mxu1 %v4147_v13 }
  0xa2   : > { %2246 = vmatprep.mubr.bf16.mxu1 %v2735_v44 }
  0xa4   : > { %2182 = vmatmul.mubr.bf16.gmra.mxu0 %v2732_v25 }
  0xa5   : > { %2189 = vmatprep.mubr.bf16.mxu0 %v2737_v26 }
  0xa9   : > { %2247 = vmatmul.mubr.bf16.gmra.mxu1 %v2734_v33 }
  0xaa   : > { %2254 = vmatprep.mubr.bf16.mxu1 %v2739_v17 }
  0xac   : > { %2190 = vmatmul.mubr.bf16.gmra.mxu0 %v2736_v30 }
  0xb1   : > { %2255 = vmatmul.mubr.bf16.gmra.mxu1 %v2738_v5 }
  0xed   : > { %v2816_v63 = vpop.f32.mrf.mxu0 }
  0xef   : > { %v2817_v44 = vpop.f32.mrf.mxu0 }
  0xf0   : > { %v2818_v7 = vadd.f32 %v2817_v44, %v2816_v63 }
  0xf1   : > { %v2819_v48 = vpop.f32.mrf.mxu0 }
  0xf2   : > { %v2856_v39 = vpop.f32.mrf.mxu1 }
  0xf3   : > { %v2820_v56 = vpop.f32.mrf.mxu0 }
  0xf4   : > { %v2821_v25 = vadd.f32 %v2820_v56, %v2819_v48  ;;  %v2857_v46 = vpop.f32.mrf.mxu1 }
  0xf5   : > { %v2858_v53 = vadd.f32 %v2857_v46, %v2856_v39 }
  0xf6   : > { %v2859_v51 = vpop.f32.mrf.mxu1 }
  0xf7   : > { %v947_v35 = vadd.f32 %v2858_v53, %v2818_v7 }
  0xf8   : > { %v2860_v9 = vpop.f32.mrf.mxu1  ;;  %v2822_v58 = vpop.f32.mrf.mxu0 }
  0xf9   : > { %v2861_v27 = vadd.f32 %v2860_v9, %v2859_v51 }
  0xfa   : > { %v2862_v60 = vpop.f32.mrf.mxu1  ;;  %v2823_v32 = vpop.f32.mrf.mxu0 }
  0xfb   : > { %v950_v33 = vadd.f32 %v2861_v27, %v2821_v25  ;;  %v2824_v21 = vadd.f32 %v2823_v32, %v2822_v58 }
  0xfc   : > { %v2863_v31 = vpop.f32.mrf.mxu1  ;;  %v2825_v59 = vpop.f32.mrf.mxu0 }
  0xfd   : > { %v2864_v28 = vadd.f32 %v2863_v31, %v2862_v60 }
  0xfe   : > { %v2865_v50 = vpop.f32.mrf.mxu1  ;;  %v2826_v38 = vpop.f32.mrf.mxu0 }
  0xff   : > { %v955_v1 = vadd.f32 %v2864_v28, %v2824_v21  ;;  %v2827_v42 = vadd.f32 %v2826_v38, %v2825_v59 }
 0x100   : > { %v2866_v43 = vpop.f32.mrf.mxu1 }
 0x101   : > { %v2867_v11 = vadd.f32 %v2866_v43, %v2865_v50  ;;  %v2828_v55 = vpop.f32.mrf.mxu0 }
 0x103   : > { %v958_v4 = vadd.f32 %v2867_v11, %v2827_v42  ;;  %v2829_v61 = vpop.f32.mrf.mxu0 }
 0x104   : > { %v2830_v8 = vadd.f32 %v2829_v61, %v2828_v55 }
 0x105   : > { %v2868_v12 = vpop.f32.mrf.mxu1  ;;  %v2831_v15 = vpop.f32.mrf.mxu0 }
 0x107   : > { %v2869_v62 = vpop.f32.mrf.mxu1  ;;  %v2832_v18 = vpop.f32.mrf.mxu0 }
 0x108   : > { %v2870_v23 = vadd.f32 %v2869_v62, %v2868_v12  ;;  %v2833_v22 = vadd.f32 %v2832_v18, %v2831_v15 }
 0x109   : > { %v2871_v57 = vpop.f32.mrf.mxu1 }
 0x10a   : > { %v963_v14 = vadd.f32 %v2870_v23, %v2830_v8 }
 0x10b   : > { %v2872_v45 = vpop.f32.mrf.mxu1 }
 0x10c   : > { %v2873_v40 = vadd.f32 %v2872_v45, %v2871_v57  ;;  %v2834_v0 = vpop.f32.mrf.mxu0 }
 0x10e   : > { %v966_v10 = vadd.f32 %v2873_v40, %v2833_v22  ;;  %v2835_v41 = vpop.f32.mrf.mxu0 }
 0x10f   : > { %v2836_v34 = vadd.f32 %v2835_v41, %v2834_v0 }
 0x110   : > { %v2837_v36 = vpop.f32.mrf.mxu0 }
 0x111   : > { %v2874_v54 = vpop.f32.mrf.mxu1 }
 0x112   : > { %v2838_v20 = vpop.f32.mrf.mxu0 }
 0x113   : > { %v2875_v47 = vpop.f32.mrf.mxu1  ;;  %v2839_v19 = vadd.f32 %v2838_v20, %v2837_v36 }
 0x114   : > { %v2876_v52 = vadd.f32 %v2875_v47, %v2874_v54  ;;  %v2896_v29 = vpop.f32.mrf.mxu0 }
 0x115   : > { %v2877_v24 = vpop.f32.mrf.mxu1 }
 0x116   : > { %v971_v16 = vadd.f32 %v2876_v52, %v2836_v34  ;;  %v2897_v49 = vpop.f32.mrf.mxu0 }
 0x117   : > { %v2878_v2 = vpop.f32.mrf.mxu1  ;;  %v2898_v6 = vadd.f32 %v2897_v49, %v2896_v29 }
 0x118   : > { %v2879_v3 = vadd.f32 %v2878_v2, %v2877_v24  ;;  %v2899_v26 = vpop.f32.mrf.mxu0 }
 0x119   : > { %v2936_v13 = vpop.f32.mrf.mxu1  ;;  %v1284_v17 = vadd.f32 %v2898_v6, %v947_v35 }
 0x11a   : > { %v974_v37 = vadd.f32 %v2879_v3, %v2839_v19  ;;  %v2900_v5 = vpop.f32.mrf.mxu0 }
 0x11b   : > { %v2937_v30 = vpop.f32.mrf.mxu1  ;;  %v2901_v44 = vadd.f32 %v2900_v5, %v2899_v26 }
 0x11c   : > { %v2938_v63 = vadd.f32 %v2937_v30, %v2936_v13  ;;  %v2902_v48 = vpop.f32.mrf.mxu0 }
 0x11d   : > { %v2939_v7 = vpop.f32.mrf.mxu1  ;;  %v1287_v56 = vadd.f32 %v2901_v44, %v950_v33 }
 0x11e   : > { %v4046_v39 = vadd.f32 %v2938_v63, %v1284_v17  ;;  %v2903_v46 = vpop.f32.mrf.mxu0 }
 0x11f   : > { %v2940_v25 = vpop.f32.mrf.mxu1  ;;  %v2904_v51 = vadd.f32 %v2903_v46, %v2902_v48 }
 0x120   : > { %v2941_v53 = vadd.f32 %v2940_v25, %v2939_v7  ;;  %v2905_v27 = vpop.f32.mrf.mxu0 }
 0x121   : > { %v2942_v9 = vpop.f32.mrf.mxu1  ;;  %v1292_v60 = vadd.f32 %v2904_v51, %v955_v1 }
 0x122   : > { %v4048_v58 = vadd.f32 %v2941_v53, %v1287_v56  ;;  %v2906_v35 = vpop.f32.mrf.mxu0 }
 0x123   : > { %v2943_v32 = vpop.f32.mrf.mxu1  ;;  %v2907_v31 = vadd.f32 %v2906_v35, %v2905_v27 }
 0x124   : > { %v2944_v21 = vadd.f32 %v2943_v32, %v2942_v9  ;;  %v2908_v59 = vpop.f32.mrf.mxu0 }
 0x125   : > { %v2945_v28 = vpop.f32.mrf.mxu1  ;;  %v1295_v38 = vadd.f32 %v2907_v31, %v958_v4 }
 0x126   : > { %v4050_v50 = vadd.f32 %v2944_v21, %v1292_v60  ;;  %v2909_v33 = vpop.f32.mrf.mxu0 }
 0x127   : > { %v2946_v42 = vpop.f32.mrf.mxu1  ;;  %v2910_v11 = vadd.f32 %v2909_v33, %v2908_v59 }
 0x128   : > { %v2947_v43 = vadd.f32 %v2946_v42, %v2945_v28  ;;  %v2911_v61 = vpop.f32.mrf.mxu0 }
 0x129   : > { %v2948_v55 = vpop.f32.mrf.mxu1  ;;  %v1300_v12 = vadd.f32 %v2910_v11, %v963_v14 }
 0x12a   : > { %v4052_v8 = vadd.f32 %v2947_v43, %v1295_v38  ;;  %v2912_v1 = vpop.f32.mrf.mxu0 }
 0x12b   : > { %v2949_v15 = vpop.f32.mrf.mxu1  ;;  %v2913_v18 = vadd.f32 %v2912_v1, %v2911_v61 }
 0x12c   : > { %v2950_v62 = vadd.f32 %v2949_v15, %v2948_v55  ;;  %v2914_v22 = vpop.f32.mrf.mxu0 }
 0x12d   : > { %v2951_v23 = vpop.f32.mrf.mxu1  ;;  %v1303_v45 = vadd.f32 %v2913_v18, %v966_v10 }
 0x12e   : > { %v4054_v57 = vadd.f32 %v2950_v62, %v1300_v12  ;;  %v2915_v4 = vpop.f32.mrf.mxu0 }
 0x12f   : > { %v2952_v40 = vpop.f32.mrf.mxu1  ;;  %v2916_v41 = vadd.f32 %v2915_v4, %v2914_v22 }
 0x130   : > { %v2953_v0 = vadd.f32 %v2952_v40, %v2951_v23  ;;  %v2917_v54 = vpop.f32.mrf.mxu0 }
 0x131   : > { %v2954_v34 = vpop.f32.mrf.mxu1  ;;  %v1308_v47 = vadd.f32 %v2916_v41, %v971_v16 }
 0x132   : > { %v4056_v36 = vadd.f32 %v2953_v0, %v1303_v45  ;;  %v2918_v14 = vpop.f32.mrf.mxu0 }
 0x133   : > { %v2955_v20 = vpop.f32.mrf.mxu1  ;;  %v2919_v19 = vadd.f32 %v2918_v14, %v2917_v54 }
 0x134   : > { %v2956_v52 = vadd.f32 %v2955_v20, %v2954_v34  ;;  %v2976_v29 = vpop.f32.mrf.mxu0 }
 0x135   : > { %v2957_v24 = vpop.f32.mrf.mxu1  ;;  %v1311_v49 = vadd.f32 %v2919_v19, %v974_v37 }
 0x136   : > { %v4058_v2 = vadd.f32 %v2956_v52, %v1308_v47  ;;  %v2977_v10 = vpop.f32.mrf.mxu0 }
 0x137   : > { %v2958_v3 = vpop.f32.mrf.mxu1  ;;  %v2978_v11 = vadd.f32 %v2977_v10, %v2976_v29  ;;  %v4086_v29 = vld [vmem:[%s4141_s2] ss:$0 sm:$0xff] }
 0x138   : > { %v2959_v6 = vadd.f32 %v2958_v3, %v2957_v24  ;;  %v2979_v26 = vpop.f32.mrf.mxu0 }
 0x139   : > { %v3016_v13 = vpop.f32.mrf.mxu1 }
 0x13a   : > { %v4060_v17 = vadd.f32 %v2959_v6, %v1311_v49  ;;  %v2980_v5 = vpop.f32.mrf.mxu0 }
 0x13b   : > { %v3017_v30 = vpop.f32.mrf.mxu1  ;;  %v2981_v18 = vadd.f32 %v2980_v5, %v2979_v26 }
 0x13c   : > { %v2982_v16 = vpop.f32.mrf.mxu0  ;;  %v3018_v55 = vadd.f32 %v3017_v30, %v3016_v13 }
 0x13d   : > { %v3019_v63 = vpop.f32.mrf.mxu1 }
 0x13e   : > { %v2983_v7 = vpop.f32.mrf.mxu0  ;;  %v1774_v62 = vadd.f32 %v3018_v55, %v2978_v11 }
 0x13f   : > { %v3020_v44 = vpop.f32.mrf.mxu1  ;;  %v2984_v14 = vadd.f32 %v2983_v7, %v2982_v16 }
 0x140   : > { %v2985_v56 = vpop.f32.mrf.mxu0  ;;  %v3021_v23 = vadd.f32 %v3020_v44, %v3019_v63  ;;  %v1804_v34 = vadd.f32 %v1774_v62, %v4046_v39  ;;  %v4093_v44 = vld [vmem:[%s4142_s3] ss:$0 sm:$0xff] }
 0x141   : > { %v3022_v48 = vpop.f32.mrf.mxu1 }
 0x142   : > { %v2986_v46 = vpop.f32.mrf.mxu0  ;;  %v1777_v54 = vadd.f32 %v3021_v23, %v2981_v18 }
 0x143   : > { %v3023_v25 = vpop.f32.mrf.mxu1  ;;  %v2987_v26 = vadd.f32 %v2986_v46, %v2985_v56 }
 0x144   : > { %v2988_v51 = vpop.f32.mrf.mxu0  ;;  %v3024_v52 = vadd.f32 %v3023_v25, %v3022_v48  ;;  %v1805_v13 = vadd.f32 %v1777_v54, %v4048_v58 }
 0x145   : > { %v3025_v53 = vpop.f32.mrf.mxu1 }
 0x146   : > { %v2989_v9 = vpop.f32.mrf.mxu0  ;;  %v1782_v63 = vadd.f32 %v3024_v52, %v2984_v14 }
 0x147   : > { %v3026_v37 = vpop.f32.mrf.mxu1  ;;  %v2990_v56 = vadd.f32 %v2989_v9, %v2988_v51 }
 0x148   : > { %v4062_v60 = vpop.f32.mrf.mxu0  ;;  %v3027_v39 = vadd.f32 %v3026_v37, %v3025_v53  ;;  %v1806_v62 = vadd.f32 %v1782_v63, %v4050_v50 }
 0x149   : > { %v3028_v27 = vpop.f32.mrf.mxu1 }
 0x14a   : > { %v2992_v35 = vpop.f32.mrf.mxu0  ;;  %v1785_v58 = vadd.f32 %v3027_v39, %v2987_v26 }
 0x14b   : > { %v3029_v32 = vpop.f32.mrf.mxu1 }
 0x14c   : > { %v4066_v31 = vpop.f32.mrf.mxu0  ;;  %v3030_v46 = vadd.f32 %v3029_v32, %v3028_v27  ;;  %v1807_v32 = vadd.f32 %v1785_v58, %v4052_v8 }
 0x14d   : > { %v4064_v21 = vpop.f32.mrf.mxu1 }
 0x14e   : > { %v4068_v59 = vpop.f32.mrf.mxu0 }
 0x14f   : > { %v3032_v28 = vpop.f32.mrf.mxu1 }
 0x150   : > { %v4072_v42 = vpop.f32.mrf.mxu0 }
 0x151   : > { %v4070_v38 = vpop.f32.mrf.mxu1 }
 0x152   : > { %v4076_v43 = vpop.f32.mrf.mxu0 }
 0x153   : > { %v4074_v33 = vpop.f32.mrf.mxu1 }
 0x154   : > { %v3056_v12 = vpop.f32.mrf.mxu0 }
 0x155   : > { %v4078_v61 = vpop.f32.mrf.mxu1 }
 0x156   : > { %v3057_v1 = vpop.f32.mrf.mxu0 }
 0x157   : > { %v4080_v15 = vpop.f32.mrf.mxu1  ;;  %v3058_v40 = vadd.f32 %v3057_v1, %v3056_v12 }
 0x158   : > { %v3059_v45 = vpop.f32.mrf.mxu0 }
 0x159   : > { %v3096_v22 = vpop.f32.mrf.mxu1 }
 0x15a   : > { %v3060_v0 = vpop.f32.mrf.mxu0 }
 0x15b   : > { %v3097_v4 = vpop.f32.mrf.mxu1  ;;  %v3061_v24 = vadd.f32 %v3060_v0, %v3059_v45  ;;  %v2993_v45 = vadd.f32 %v2992_v35, %v4062_v60  ;;  %v3033_v0 = vadd.f32 %v3032_v28, %v4064_v21 }
 0x15c   : > { %v3098_v41 = vadd.f32 %v3097_v4, %v3096_v22  ;;  %v3062_v20 = vpop.f32.mrf.mxu0 }
 0x15d   : > { %v3099_v47 = vpop.f32.mrf.mxu1  ;;  %v1793_v28 = vadd.f32 %v3033_v0, %v2993_v45 }
 0x15e   : > { %v2233_v19 = vadd.f32 %v3098_v41, %v3058_v40  ;;  %v3063_v3 = vpop.f32.mrf.mxu0  ;;  %v1790_v41 = vadd.f32 %v3030_v46, %v2990_v56 }
 0x15f   : > { %v3100_v49 = vpop.f32.mrf.mxu1  ;;  %v3064_v48 = vadd.f32 %v3063_v3, %v3062_v20 }
 0x160   : > { %v2263_v10 = vadd.f32 %v2233_v19, %v1804_v34  ;;  %v3101_v6 = vadd.f32 %v3100_v49, %v3099_v47  ;;  %v3065_v5 = vpop.f32.mrf.mxu0  ;;  %v3036_v49 = vadd.f32 %v4074_v33, %v4070_v38  ;;  %v2999_v33 = vadd.f32 %v4076_v43, %v4072_v42 }
 0x161   : > { %v3102_v30 = vpop.f32.mrf.mxu1 }
 0x162   : > { %v2278_v16 = vmul.f32 %v4086_v29, %v2263_v10  ;;  %v2236_v7 = vadd.f32 %v3101_v6, %v3061_v24  ;;  %v3066_v11 = vpop.f32.mrf.mxu0  ;;  %v2996_v24 = vadd.f32 %v4068_v59, %v4066_v31 }
 0x163   : > { %v3103_v25 = vpop.f32.mrf.mxu1  ;;  %v3067_v22 = vadd.f32 %v3066_v11, %v3065_v5 }
 0x164   : > { %v2264_v55 = vadd.f32 %v2236_v7, %v1805_v13  ;;  %v3104_v12 = vadd.f32 %v3103_v25, %v3102_v30  ;;  %v2293_v53 = vadd.f32 %v4093_v44, %v2278_v16  ;;  %v3068_v1 = vpop.f32.mrf.mxu0  ;;  %v1808_v13 = vadd.f32 %v1790_v41, %v4054_v57 }
 0x165   : > { %v3105_v37 = vpop.f32.mrf.mxu1  ;;  %v1809_v16 = vadd.f32 %v1793_v28, %v4056_v36  ;;  %v1798_v38 = vadd.f32 %v3036_v49, %v2996_v24  ;;  %v3039_v57 = vadd.f32 %v4080_v15, %v4078_v61 }
 0x166   : > { %v2279_v18 = vmul.f32 %v4086_v29, %v2264_v55  ;;  %v2241_v23 = vadd.f32 %v3104_v12, %v3064_v48  ;;  %v3069_v4 = vpop.f32.mrf.mxu0  ;;  %v2301_v34 = vmax.f32 %v2293_v53, 0.0 }
 0x167   : > { %v3106_v40 = vpop.f32.mrf.mxu1  ;;  %v3070_v60 = vadd.f32 %v3069_v4, %v3068_v1  ;;  %v1801_v42 = vadd.f32 %v3039_v57, %v2999_v33 }
 0x168   : > { %v2294_v51 = vadd.f32 %v4093_v44, %v2279_v18  ;;  %v2265_v9 = vadd.f32 %v2241_v23, %v1806_v62  ;;  %v3107_v27 = vadd.f32 %v3106_v40, %v3105_v37  ;;  %v3071_v54 = vpop.f32.mrf.mxu0  ;;  %v1810_v62 = vadd.f32 %v1798_v38, %v4058_v2 }
 0x169   : > { %v3108_v50 = vpop.f32.mrf.mxu1  ;;  %v1811_v0 = vadd.f32 %v1801_v42, %v4060_v17 }
 0x16a   : > { %v2302_v47 = vmax.f32 %v2294_v51, 0.0  ;;  %v2280_v20 = vmul.f32 %v4086_v29, %v2265_v9  ;;  %v2244_v14 = vadd.f32 %v3107_v27, %v3067_v22  ;;  %v3072_v21 = vpop.f32.mrf.mxu0 }
 0x16b   : > { %v3109_v35 = vpop.f32.mrf.mxu1  ;;  %v3073_v30 = vadd.f32 %v3072_v21, %v3071_v54 }
 0x16c   : > { %v2780_v52 = vpack.c.bf16 %v2302_v47, %v2301_v34  ;;  %v2266_v8 = vadd.f32 %v2244_v14, %v1807_v32  ;;  %v3110_v19 = vadd.f32 %v3109_v35, %v3108_v50  ;;  %v2295_v3 = vadd.f32 %v4093_v44, %v2280_v20  ;;  %v3074_v6 = vpop.f32.mrf.mxu0 }
 0x16d   : > { %v3111_v10 = vpop.f32.mrf.mxu1 }
 0x16e   : > { %2781 = vst [vmem:[%s4107_s27] sm:$0xff] %v2780_v52   ;;  %v2281_v26 = vmul.f32 %v4086_v29, %v2266_v8  ;;  %v2249_v39 = vadd.f32 %v3110_v19, %v3070_v60  ;;  %v3075_v63 = vpop.f32.mrf.mxu0  ;;  %v2303_v48 = vmax.f32 %v2295_v3, 0.0 }
 0x16f   : > { %v3112_v5 = vpop.f32.mrf.mxu1  ;;  %v3076_v36 = vadd.f32 %v3075_v63, %v3074_v6 }
 0x170   : > { %v2296_v31 = vadd.f32 %v4093_v44, %v2281_v26  ;;  %v2267_v59 = vadd.f32 %v2249_v39, %v1808_v13  ;;  %v3113_v7 = vadd.f32 %v3112_v5, %v3111_v10  ;;  %v3077_v11 = vpop.f32.mrf.mxu0 }
 0x171   : > { %v3114_v25 = vpop.f32.mrf.mxu1 }
 0x172   : > { %v2304_v55 = vmax.f32 %v2296_v31, 0.0  ;;  %v2282_v12 = vmul.f32 %v4086_v29, %v2267_v59  ;;  %v2252_v58 = vadd.f32 %v3113_v7, %v3073_v30  ;;  %v3078_v46 = vpop.f32.mrf.mxu0 }
 0x173   : > { %v3115_v56 = vpop.f32.mrf.mxu1  ;;  %v3079_v23 = vadd.f32 %v3078_v46, %v3077_v11 }
 0x174   : > { %v2785_v53 = vpack.c.bf16 %v2304_v55, %v2303_v48  ;;  %v2268_v37 = vadd.f32 %v2252_v58, %v1809_v16  ;;  %v3116_v1 = vadd.f32 %v3115_v56, %v3114_v25  ;;  %v2297_v61 = vadd.f32 %v4093_v44, %v2282_v12 }
 0x175   : > { %v3117_v43 = vpop.f32.mrf.mxu1 }
 0x176   : > { %2797 = vst [vmem:[%s4107_s27 + $0x8] sm:$0xff] %v2785_v53   ;;  %v2283_v15 = vmul.f32 %v4086_v29, %v2268_v37  ;;  %v2257_v18 = vadd.f32 %v3116_v1, %v3076_v36  ;;  %v2305_v51 = vmax.f32 %v2297_v61, 0.0 }
 0x177   : > { %v3118_v22 = vpop.f32.mrf.mxu1 }
 0x178   : > { %v2298_v45 = vadd.f32 %v4093_v44, %v2283_v15  ;;  %v2269_v40 = vadd.f32 %v2257_v18, %v1810_v62  ;;  %v3119_v4 = vadd.f32 %v3118_v22, %v3117_v43 }
 0x17a   : > { %v2306_v2 = vmax.f32 %v2298_v45, 0.0  ;;  %v2284_v9 = vmul.f32 %v4086_v29, %v2269_v40  ;;  %v2260_v27 = vadd.f32 %v3119_v4, %v3079_v23 }
 0x17c   : > { %v2790_v32 = vpack.c.bf16 %v2306_v2, %v2305_v51  ;;  %v2270_v41 = vadd.f32 %v2260_v27, %v1811_v0  ;;  %v2299_v34 = vadd.f32 %v4093_v44, %v2284_v9 }
 0x17e   : > { %2798 = vst [vmem:[%s4107_s27 + $0x10] sm:$0xff] %v2790_v32   ;;  %v2285_v50 = vmul.f32 %v4086_v29, %v2270_v41  ;;  %v2307_v47 = vmax.f32 %v2299_v34, 0.0 }
 0x180   : > { %v2300_v54 = vadd.f32 %v4093_v44, %v2285_v50 }
 0x182   : > { %v2308_v20 = vmax.f32 %v2300_v54, 0.0 }
 0x184   : > { %v2795_v14 = vpack.c.bf16 %v2308_v20, %v2307_v47 }
 0x186   : > { %2799 = vst [vmem:[%s4107_s27 + $0x18] sm:$0xff] %v2795_v14  }
 0x187 PF: > { %s14_s15 = sadd.s32 1, %s3263_s15  }
 0x188   : > { %p11_p4 = scmp.ge.s32.totalorder %s14_s15, 6  }
 0x18a   :  { %13 = sbr.rel (!%p11_p4) target bundleno = 1 (0x1), region = 69 }

// kernel: cnn_finernetwork_forward.6
= control target key start
LH: loop header
LB: loop body
LE: loop exit
PB: predicated region body
PF: predicated region fallthrough
CT: control target
= control target key end

     0   :  { %s2664_s15 = smov 0   ;;  %s3239_s0 = inlined_call_operand.vmem [shape: bf16[4,5,5,512], index: 0, kind: input, shape index: {}]   ;;  %s3240_s1 = inlined_call_operand.vmem [shape: bf16[4,512,128], index: 1, kind: input, shape index: {}]   ;;  %s3241_s2 = inlined_call_operand.vmem [shape: f32[1,128], index: 2, kind: input, shape index: {}]   ;;  %s3242_s3 = inlined_call_operand.vmem [shape: f32[1,128], index: 3, kind: input, shape index: {}]   ;;  %s3243_s4 = inlined_call_operand.vmem [shape: f32[4,1,1,128], index: 4, kind: output, shape index: {}]  }
   0x1 LB: > { %s1968_s16 = sadd.s32 4294967295, %s2636_s15   ;;  %p1972_p0 = scmp.ge.s32.totalorder %s2636_s15, 1  ;;  %s2636_s15 = sphi %s2664_s15, %s14_s15  }
   0x2   : > { %p162_p1 = scmp.lt.s32.totalorder %s2636_s15, 5 }
   0x4   : > { %p163_p2 = pnand %p1972_p0, %p162_p1 }
   0x5   : > { %p186_p3 = scmp.lt.s32.totalorder (!%p163_p2), %s1968_s16, 3 }
   0x6   : > { %166 = sbr.rel (%p163_p2) target bundleno = 375 (0x177), region = 36 }
   0xb   : > { %v2502_v0 = vld [vmem:[%s3240_s1 + $0x178] sm:$0xff]   ;;  %v2506_v4 = vld [vmem:[%s3240_s1 + $0x170] sm:$0xff]   ;;  %v2510_v8 = vld [vmem:[%s3240_s1 + $0x168] sm:$0xff]   ;;  %s3249_s16 = smov (!%p186_p3, %s1968_s16), 3  ;;  %vm341_vm0 = vsmask.f32 1280  ;;  %v476_v56 = vlaneseq }
   0xc   : > { %v2503_v1 = vld [vmem:[%s3240_s1 + $0x1f8] sm:$0xff]   ;;  %2316 = vmatprep.subr.bf16.mxu0 %v2502_v0  ;;  %v2507_v5 = vld [vmem:[%s3240_s1 + $0x1f0] sm:$0xff]   ;;  %v2511_v9 = vld [vmem:[%s3240_s1 + $0x1e8] sm:$0xff]   ;;  %s2492_s21 = smul.u32 80, %s3249_s16  ;;  %vm342_vm1 = vsmask.f32 3336  ;;  %s193_s23 = scalar_lea.vmem %s3243_s4, %s3249_s16 }
   0xd   : > { %v2504_v2 = vld [vmem:[%s3240_s1 + $0x138] sm:$0xff]   ;;  %2338 = vmatprep.subr.bf16.mxu1 %v2503_v1  ;;  %v2508_v6 = vld [vmem:[%s3240_s1 + $0x130] sm:$0xff]   ;;  %v2512_v10 = vld [vmem:[%s3240_s1 + $0x128] sm:$0xff]   ;;  %vm344_vm2 = vsmask.f32 5392 }
   0xe   : > { %v2505_v3 = vld [vmem:[%s3240_s1 + $0x1b8] sm:$0xff]   ;;  %2317 = vmatpush3.bf16.msra.mxu0 %v2504_v2  ;;  %v2509_v7 = vld [vmem:[%s3240_s1 + $0x1b0] sm:$0xff]   ;;  %v2513_v11 = vld [vmem:[%s3240_s1 + $0x1a8] sm:$0xff]   ;;  %s2772_s6 = scalar_lea.vmem %s3239_s0, %s2492_s21  ;;  %vm346_vm3 = vsmask.f32 7448 }
   0xf   : > { %2339 = vmatpush3.bf16.msra.mxu1 %v2505_v3  ;;  %2318 = vmatprep.subr.bf16.mxu0 %v2506_v4  ;;  %v2514_v12 = vld [vmem:[%s3240_s1 + $0x160] sm:$0xff]   ;;  %v2518_v16 = vld [vmem:[%s3240_s1 + $0x158] sm:$0xff]   ;;  %v2522_v20 = vld [vmem:[%s3240_s1 + $0x150] sm:$0xff]  }
  0x10   : > { %2340 = vmatprep.subr.bf16.mxu1 %v2507_v5  ;;  %v2515_v13 = vld [vmem:[%s3240_s1 + $0x1e0] sm:$0xff]   ;;  %v2519_v17 = vld [vmem:[%s3240_s1 + $0x1d8] sm:$0xff]   ;;  %v2523_v21 = vld [vmem:[%s3240_s1 + $0x1d0] sm:$0xff]  }
  0x11   : > { %v2516_v14 = vld [vmem:[%s3240_s1 + $0x120] sm:$0xff]   ;;  %v2520_v18 = vld [vmem:[%s3240_s1 + $0x118] sm:$0xff]   ;;  %v2524_v22 = vld [vmem:[%s3240_s1 + $0x110] sm:$0xff]  }
  0x12   : > { %2319 = vmatpush3.bf16.msra.mxu0 %v2508_v6  ;;  %v2517_v15 = vld [vmem:[%s3240_s1 + $0x1a0] sm:$0xff]   ;;  %v2521_v19 = vld [vmem:[%s3240_s1 + $0x198] sm:$0xff]   ;;  %v2525_v23 = vld [vmem:[%s3240_s1 + $0x190] sm:$0xff]  }
  0x13   : > { %2341 = vmatpush3.bf16.msra.mxu1 %v2509_v7  ;;  %2320 = vmatprep.subr.bf16.mxu0 %v2510_v8  ;;  %v2526_v24 = vld [vmem:[%s3240_s1 + $0x148] sm:$0xff]   ;;  %v2530_v28 = vld [vmem:[%s3240_s1 + $0x140] sm:$0xff]   ;;  %v2787_v34 = vld.sshfl [vmem:[%s2772_s6 + $0x10] sm:$0x5f pattern:$0x76325410] }
  0x14   : > { %2342 = vmatprep.subr.bf16.mxu1 %v2511_v9  ;;  %v2527_v25 = vld [vmem:[%s3240_s1 + $0x1c8] sm:$0xff]   ;;  %v2531_v29 = vld [vmem:[%s3240_s1 + $0x1c0] sm:$0xff]   ;;  %v2794_v37 = vld.sshfl [vmem:[%s2772_s6 + $0x18] sm:$0x5f pattern:$0x76325410] }
  0x15   : > { %v2528_v26 = vld [vmem:[%s3240_s1 + $0x108] sm:$0xff]   ;;  %v2532_v30 = vld [vmem:[%s3240_s1 + $0x100] sm:$0xff]   ;;  %v242_v39 = vcombine.low %v2787_v34, %v2794_v37  ;;  %vm343_vm4 = vmor %vm341_vm0, %vm342_vm1  ;;  %v338_v43 = vcombine.high %v2787_v34, %v2794_v37 }
  0x16   : > { %2321 = vmatpush3.bf16.msra.mxu0 %v2512_v10  ;;  %v2529_v27 = vld [vmem:[%s3240_s1 + $0x188] sm:$0xff]   ;;  %v2533_v31 = vld [vmem:[%s3240_s1 + $0x180] sm:$0xff]   ;;  %v2534_v45 = vld [vmem:[%s3240_s1 + $0x78] sm:$0xff]  }
  0x17   : > { %2343 = vmatpush3.bf16.msra.mxu1 %v2513_v11  ;;  %2322 = vmatprep.subr.bf16.mxu0 %v2514_v12  ;;  %v2781_v32 = vld.sshfl [vmem:[%s2772_s6] sm:$0x5f pattern:$0x76325410]  ;;  %vm2822_vm5 = vmor %vm343_vm4, %vm344_vm2  ;;  %v363_v55 = vshrl.u32 %v242_v39, 16  ;;  %v366_v61 = vshll.u32 %v242_v39, 16 }
  0x18   : > { %2344 = vmatprep.subr.bf16.mxu1 %v2515_v13  ;;  %v2784_v33 = vld.sshfl [vmem:[%s2772_s6 + $0x8] sm:$0x5f pattern:$0x76325410]  ;;  %v2535_v62 = vld [vmem:[%s3240_s1 + $0xf8] sm:$0xff]   ;;  %v372_v0 = vshll.u32 %v338_v43, 16  ;;  %vm2838_vm6 = vmor %vm2822_vm5, %vm346_vm3 }
  0x19   : > { %v227_v35 = vcombine.low %v2781_v32, %v2784_v33  ;;  %v337_v36 = vcombine.high %v2781_v32, %v2784_v33  ;;  %v2797_v38 = vld.sshfl [vmem:[%s2772_s6 + $0x20] sm:$0x5f pattern:$0x76325410]  ;;  %v365_v63 = vrot.slane %v363_v55, 6  ;;  %v368_v4 = vrot.slane %v366_v61, 7 }
  0x1a   : > { %2323 = vmatpush3.bf16.msra.mxu0 %v2516_v14  ;;  %v2802_v42 = vld.sshfl [vmem:[%s2772_s6 + $0x28] sm:$0x5f pattern:$0x76325410]  ;;  %v2180_v46 = vcombine.low %v2787_v34, %v2797_v38  ;;  %v374_v12 = vrot.slane %v372_v0, 7  ;;  %v2536_v55 = vld [vmem:[%s3240_s1 + $0x38] sm:$0xff]  }
  0x1b   : > { %2345 = vmatpush3.bf16.msra.mxu1 %v2517_v15  ;;  %2324 = vmatprep.subr.bf16.mxu0 %v2518_v16  ;;  %v349_v40 = vshrl.u32 %v227_v35, 16  ;;  %v352_v41 = vshll.u32 %v227_v35, 16  ;;  %v358_v44 = vshll.u32 %v337_v36, 16  ;;  %v257_v48 = vcombine.low %v2797_v38, %v2802_v42  ;;  %v2538_v0 = vld [vmem:[%s3240_s1 + $0x70] sm:$0xff]  }
  0x1c   : > { %2346 = vmatprep.subr.bf16.mxu1 %v2519_v17  ;;  %v2812_v47 = vld.sshfl [vmem:[%s2772_s6 + $0x30] sm:$0x5f pattern:$0x76325410]  ;;  %v339_v49 = vcombine.high %v2797_v38, %v2802_v42  ;;  %v2181_v57 = vcombine.low %v2794_v37, %v2802_v42  ;;  %v369_v11 = vor.u32 %v368_v4, %v365_v63 }
  0x1d   : > { %v351_v50 = vrot.slane %v349_v40, 6  ;;  %v354_v51 = vrot.slane %v352_v41, 7  ;;  %v2819_v52 = vld.sshfl [vmem:[%s2772_s6 + $0x38] sm:$0x5f pattern:$0x76325410] }
  0x1e   : > { %2325 = vmatpush3.bf16.msra.mxu0 %v2520_v18  ;;  %v360_v54 = vrot.slane %v358_v44, 7  ;;  %v272_v58 = vcombine.low %v2812_v47, %v2819_v52  ;;  %v340_v59 = vcombine.high %v2812_v47, %v2819_v52  ;;  %v377_v1 = vshrl.u32 %v257_v48, 16 }
  0x1f   : > { %2347 = vmatpush3.bf16.msra.mxu1 %v2521_v19  ;;  %2326 = vmatprep.subr.bf16.mxu0 %v2522_v20  ;;  %v355_v60 = vor.u32 %v354_v51, %v351_v50  ;;  %v380_v2 = vshll.u32 %v257_v48, 16  ;;  %v386_v5 = vshll.u32 %v339_v49, 16  ;;  %v370_v19 = vrot.slane %v369_v11, 2  ;;  %v2546_v11 = vld [vmem:[%s3240_s1 + $0x60] sm:$0xff]  }
  0x20   : > { %2348 = vmatprep.subr.bf16.mxu1 %v2523_v21  ;;  %v391_v6 = vshrl.u32 %v272_v58, 16  ;;  %v379_v8 = vrot.slane %v377_v1, 6  ;;  %v394_v10 = vshll.u32 %v272_v58, 16  ;;  %v400_v17 = vshll.u32 %v340_v59, 16  ;;  %v2537_v59 = vld [vmem:[%s3240_s1 + $0xb8] sm:$0xff]   ;;  %v2539_v1 = vld [vmem:[%s3240_s1 + $0xf0] sm:$0xff]  }
  0x21   : > { %v356_v3 = vrot.slane %v355_v60, 2  ;;  %v382_v9 = vrot.slane %v380_v2, 7  ;;  %v388_v13 = vrot.slane %v386_v5, 7  ;;  %v2638_v20 = vmov 1983009808   ;;  %v2540_v2 = vld [vmem:[%s3240_s1 + $0x30] sm:$0xff]  }
  0x22   : > { %2327 = vmatpush3.bf16.msra.mxu0 %v2524_v22  ;;  %v393_v14 = vrot.slane %v391_v6, 6  ;;  %v396_v16 = vrot.slane %v394_v10, 7  ;;  %v474_v21 = vunpack.c.l.s4 %v2638_v20  ;;  %v477_v22 = vshrl.u32 %v476_v56, 7  ;;  %v2541_v5 = vld [vmem:[%s3240_s1 + $0xb0] sm:$0xff]   ;;  %v2542_v6 = vld [vmem:[%s3240_s1 + $0x68] sm:$0xff]  }
  0x23   : > { %2349 = vmatpush3.bf16.msra.mxu1 %v2525_v23  ;;  %2328 = vmatprep.subr.bf16.mxu0 %v2526_v24  ;;  %v383_v15 = vor.u32 %v382_v9, %v379_v8  ;;  %v361_v18 = vsel %vm2838_vm6, %v356_v3, %v360_v54  ;;  %v2081_v40 = vcombine.low %v2802_v42, %v2819_v52  ;;  %v2543_v8 = vld [vmem:[%s3240_s1 + $0xe8] sm:$0xff]   ;;  %v2555_v20 = vld [vmem:[%s3240_s1 + $0xd0] sm:$0xff]  }
  0x24   : > { %2350 = vmatprep.subr.bf16.mxu1 %v2527_v25  ;;  %v397_v24 = vor.u32 %v396_v16, %v393_v14  ;;  %v402_v25 = vrot.slane %v400_v17, 7  ;;  %v2544_v9 = vld [vmem:[%s3240_s1 + $0x28] sm:$0xff]   ;;  %v2549_v14 = vld [vmem:[%s3240_s1 + $0xa0] sm:$0xff]   ;;  %v2551_v16 = vld [vmem:[%s3240_s1 + $0xd8] sm:$0xff]  }
  0x25   : > { %v384_v23 = vrot.slane %v383_v15, 2  ;;  %v2545_v10 = vld [vmem:[%s3240_s1 + $0xa8] sm:$0xff]   ;;  %v2550_v15 = vld [vmem:[%s3240_s1 + $0x58] sm:$0xff]  }
  0x26   : > { %2329 = vmatpush3.bf16.msra.mxu0 %v2528_v26  ;;  %v2078_v26 = vcombine.low %v2781_v32, %v2787_v34  ;;  %v398_v35 = vrot.slane %v397_v24, 2  ;;  %v2552_v17 = vld [vmem:[%s3240_s1 + $0x18] sm:$0xff]   ;;  %v2559_v24 = vld [vmem:[%s3240_s1 + $0xc8] sm:$0xff]  }
  0x27   : > { %2351 = vmatpush3.bf16.msra.mxu1 %v2529_v27  ;;  %2330 = vmatprep.subr.bf16.mxu0 %v2530_v28  ;;  %v2848_v27 = vsel %vm2838_vm6, %v370_v19, %v374_v12  ;;  %v475_v28 = vunpack.c.0.s8 %v474_v21  ;;  %v2547_v12 = vld [vmem:[%s3240_s1 + $0xe0] sm:$0xff]   ;;  %v2554_v19 = vld [vmem:[%s3240_s1 + $0x50] sm:$0xff]   ;;  %v2593_v34 = vld [vmem:[%s3240_s1 + $0x288] sm:$0xff]  }
  0x28   : > { %2352 = vmatprep.subr.bf16.mxu1 %v2531_v29  ;;  %v2080_v29 = vcombine.low %v2797_v38, %v2812_v47  ;;  %v469_v36 = vcombine.low %v361_v18, %v2848_v27  ;;  %v470_v32 = vcombine.high %v361_v18, %v2848_v27  ;;  %v2870_v43 = vsel %vm2838_vm6, %v398_v35, %v402_v25  ;;  %v2553_v18 = vld [vmem:[%s3240_s1 + $0x98] sm:$0xff]   ;;  %v2556_v21 = vld [vmem:[%s3240_s1 + $0x10] sm:$0xff]   ;;  %v2560_v25 = vld [vmem:[%s3240_s1 + $0x8] sm:$0xff]  }
  0x29   : > { %v2860_v39 = vsub.s32 %v475_v28, %v477_v22  ;;  %v2557_v22 = vld [vmem:[%s3240_s1 + $0x90] sm:$0xff]   ;;  %v2562_v28 = vld [vmem:[%s3240_s1 + $0x40] sm:$0xff]  }
  0x2a   : > { %2331 = vmatpush3.bf16.msra.mxu0 %v2532_v30  ;;  %v2079_v30 = vcombine.low %v2784_v33, %v2794_v37  ;;  %v2565_v35 = vld [vmem:[%s3240_s1 + $0x80] sm:$0xff]  }
  0x2b   : > { %2353 = vmatpush3.bf16.msra.mxu1 %v2533_v31  ;;  %2360 = vmatprep.subr.bf16.mxu0 %v2534_v45  ;;  %v2856_v31 = vsel %vm2838_vm6, %v384_v23, %v388_v13  ;;  %v479_v45 = vrot.slane %v469_v36, %v2860_v39  ;;  %v486_v49 = vrot.slane %v470_v32, %v2860_v39  ;;  %v2548_v13 = vld [vmem:[%s3240_s1 + $0x20] sm:$0xff]   ;;  %v2558_v23 = vld [vmem:[%s3240_s1 + $0x48] sm:$0xff]   ;;  %v2566_v36 = vld [vmem:[%s3240_s1 + $0x278] sm:$0xff]  }
  0x2c   : > { %2382 = vmatprep.subr.bf16.mxu1 %v2535_v62  ;;  %v1575_v41 = vcombine.low %v2848_v27, %v2856_v31  ;;  %v1576_v33 = vcombine.high %v2848_v27, %v2856_v31  ;;  %v471_v44 = vcombine.low %v2856_v31, %v2870_v43  ;;  %v472_v48 = vcombine.high %v2856_v31, %v2870_v43  ;;  %v2567_v32 = vld [vmem:[%s3240_s1 + $0x2f8] sm:$0xff]   ;;  %v2594_v37 = vld [vmem:[%s3240_s1 + $0x240] sm:$0xff]   ;;  %v2605_v27 = vld [vmem:[%s3240_s1 + $0x3b0] sm:$0xff]  }
  0x2d   : > { %v2879_v50 = vrot.slane %v2078_v26, %v2860_v39  ;;  %v2882_v51 = vrot.slane %v2080_v29, %v2860_v39  ;;  %v2890_v56 = vrot.slane %v2079_v30, %v2860_v39  ;;  %v2893_v58 = vrot.slane %v2081_v40, %v2860_v39  ;;  %v2561_v26 = vld [vmem:[%s3240_s1 + $0x88] sm:$0xff]   ;;  %v2563_v29 = vld [vmem:[%s3240_s1 + $0xc0] sm:$0xff]   ;;  %v2568_v40 = vld [vmem:[%s3240_s1 + $0x238] sm:$0xff]  }
  0x2e   : > { %v493_v53 = vrot.slane %v471_v44, %v2860_v39  ;;  %v500_v54 = vrot.slane %v472_v48, %v2860_v39  ;;  %v2564_v30 = vld [vmem:[%s3240_s1] sm:$0xff]   ;;  %v2569_v48 = vld [vmem:[%s3240_s1 + $0x2b8] sm:$0xff]   ;;  %v3129_v7 = vrot.slane %v1576_v33, %v2860_v39  ;;  %v2606_v31 = vld [vmem:[%s3240_s1 + $0x368] sm:$0xff]  }
  0x2f   : > { %v816_v3 = vcombine.high %v2879_v50, %v2882_v51  ;;  %v818_v4 = vcombine.high %v2890_v56, %v2893_v58  ;;  %v815_v44 = vcombine.low %v2879_v50, %v2882_v51  ;;  %v2572_v50 = vld [vmem:[%s3240_s1 + $0x230] sm:$0xff]  }
  0x30   : > { %v502_v60 = vcombine.high %v479_v45, %v493_v53  ;;  %v504_v61 = vcombine.high %v486_v49, %v500_v54  ;;  %v501_v62 = vcombine.low %v479_v45, %v493_v53  ;;  %v503_v63 = vcombine.low %v486_v49, %v500_v54  ;;  %v2570_v49 = vld [vmem:[%s3240_s1 + $0x270] sm:$0xff]   ;;  %v2574_v54 = vld [vmem:[%s3240_s1 + $0x268] sm:$0xff]  }
  0x31   : > { %v817_v45 = vcombine.low %v2890_v56, %v2893_v58  ;;  %v2571_v53 = vld [vmem:[%s3240_s1 + $0x2f0] sm:$0xff]   ;;  %v2576_v56 = vld [vmem:[%s3240_s1 + $0x228] sm:$0xff]  }
  0x32   : > { %733 = vmatprep.mubr.bf16.mxu0 %v502_v60  ;;  %774 = vmatprep.mubr.bf16.mxu1 %v504_v61  ;;  %v2573_v51 = vld [vmem:[%s3240_s1 + $0x2b0] sm:$0xff]   ;;  %v2577_v58 = vld [vmem:[%s3240_s1 + $0x2a8] sm:$0xff]   ;;  %v2579_v60 = vld [vmem:[%s3240_s1 + $0x2e0] sm:$0xff]  }
  0x33   : > { %734 = vmatmul.mubr.bf16.vlgmr.msra.gmra.mxu0 %v501_v62  ;;  %775 = vmatmul.mubr.bf16.vlgmr.msra.gmra.mxu1 %v503_v63  ;;  %v2580_v61 = vld [vmem:[%s3240_s1 + $0x220] sm:$0xff]   ;;  %v2582_v63 = vld [vmem:[%s3240_s1 + $0x258] sm:$0xff]  }
  0x34   : > { %2361 = vmatpush3.bf16.msra.mxu0 %v2536_v55  ;;  %2383 = vmatpush3.bf16.msra.mxu1 %v2537_v59  ;;  %v2575_v55 = vld [vmem:[%s3240_s1 + $0x2e8] sm:$0xff]   ;;  %v2578_v59 = vld [vmem:[%s3240_s1 + $0x260] sm:$0xff]  }
  0x35   : > { %2362 = vmatprep.subr.bf16.mxu0 %v2538_v0  ;;  %2384 = vmatprep.subr.bf16.mxu1 %v2539_v1  ;;  %v2581_v62 = vld [vmem:[%s3240_s1 + $0x2a0] sm:$0xff]   ;;  %v2583_v0 = vld [vmem:[%s3240_s1 + $0x2d8] sm:$0xff]  }
  0x36   : > { %1047 = vmatprep.mubr.bf16.mxu0 %v816_v3  ;;  %1088 = vmatprep.mubr.bf16.mxu1 %v818_v4  ;;  %v2584_v1 = vld [vmem:[%s3240_s1 + $0x218] sm:$0xff]   ;;  %v2586_v3 = vld [vmem:[%s3240_s1 + $0x250] sm:$0xff]  }
  0x37   : > { %v2587_v4 = vld [vmem:[%s3240_s1 + $0x2d0] sm:$0xff]  }
  0x38   : > { %2363 = vmatpush3.bf16.msra.mxu0 %v2540_v2  ;;  %2385 = vmatpush3.bf16.msra.mxu1 %v2541_v5  ;;  %v2585_v2 = vld [vmem:[%s3240_s1 + $0x298] sm:$0xff]   ;;  %v2588_v5 = vld [vmem:[%s3240_s1 + $0x210] sm:$0xff]  }
  0x39   : > { %2364 = vmatprep.subr.bf16.mxu0 %v2542_v6  ;;  %2386 = vmatprep.subr.bf16.mxu1 %v2543_v8  ;;  %v2589_v6 = vld [vmem:[%s3240_s1 + $0x290] sm:$0xff]   ;;  %v2114_v8 = vld.sshfl [vmem:[%s2772_s6 + $0x40] sm:$0x5f pattern:$0x76325410] }
  0x3c   : > { %2365 = vmatpush3.bf16.msra.mxu0 %v2544_v9  ;;  %2387 = vmatpush3.bf16.msra.mxu1 %v2545_v10  ;;  %v2590_v9 = vld [vmem:[%s3240_s1 + $0x248] sm:$0xff]  }
  0x3d   : > { %2366 = vmatprep.subr.bf16.mxu0 %v2546_v11  ;;  %2388 = vmatprep.subr.bf16.mxu1 %v2547_v12  ;;  %v2591_v10 = vld [vmem:[%s3240_s1 + $0x2c8] sm:$0xff]   ;;  %v2182_v11 = vcombine.low %v2812_v47, %v2114_v8  ;;  %v1189_v12 = vrot.slane %v2180_v46, %v2860_v39 }
  0x3e   : > { %v2592_v47 = vld [vmem:[%s3240_s1 + $0x208] sm:$0xff]  }
  0x3f   : > { %v1203_v38 = vrot.slane %v2182_v11, %v2860_v39  ;;  %v2626_v11 = vld [vmem:[%s3240_s1 + $0x340] sm:$0xff]  }
  0x40   : > { %2367 = vmatpush3.bf16.msra.mxu0 %v2548_v13  ;;  %2389 = vmatpush3.bf16.msra.mxu1 %v2549_v14  ;;  %v2115_v13 = vld.sshfl [vmem:[%s2772_s6 + $0x48] sm:$0x5f pattern:$0x76325410]  ;;  %v1196_v14 = vrot.slane %v2181_v57, %v2860_v39 }
  0x41   : > { %2368 = vmatprep.subr.bf16.mxu0 %v2550_v15  ;;  %2390 = vmatprep.subr.bf16.mxu1 %v2551_v16  ;;  %v1113_v15 = vcombine.low %v2114_v8, %v2115_v13  ;;  %v2183_v16 = vcombine.low %v2819_v52, %v2115_v13 }
  0x43   : > { %v1210_v42 = vrot.slane %v2183_v16, %v2860_v39  ;;  %v1497_v46 = vshrl.u32 %v1113_v15, 16  ;;  %v1500_v57 = vshll.u32 %v1113_v15, 16 }
  0x44   : > { %2369 = vmatpush3.bf16.msra.mxu0 %v2552_v17  ;;  %2391 = vmatpush3.bf16.msra.mxu1 %v2553_v18  ;;  %v1495_v17 = vcombine.high %v2114_v8, %v2115_v13  ;;  %v2595_v18 = vld [vmem:[%s3240_s1 + $0x2c0] sm:$0xff]   ;;  %v2623_v8 = vld [vmem:[%s3240_s1 + $0x3c8] sm:$0xff]  }
  0x45   : > { %2370 = vmatprep.subr.bf16.mxu0 %v2554_v19  ;;  %2392 = vmatprep.subr.bf16.mxu1 %v2555_v20  ;;  %v1212_v19 = vcombine.high %v1189_v12, %v1203_v38  ;;  %v1214_v20 = vcombine.high %v1196_v14, %v1210_v42  ;;  %v2628_v13 = vld [vmem:[%s3240_s1 + $0x300] sm:$0xff]  }
  0x46   : > { %v1506_v52 = vshll.u32 %v1495_v17, 16 }
  0x48   : > { %2371 = vmatpush3.bf16.msra.mxu0 %v2556_v21  ;;  %2393 = vmatpush3.bf16.msra.mxu1 %v2557_v22  ;;  %v1499_v21 = vrot.slane %v1497_v46, 6  ;;  %v1502_v22 = vrot.slane %v1500_v57, 7 }
  0x49   : > { %2372 = vmatprep.subr.bf16.mxu0 %v2558_v23  ;;  %2394 = vmatprep.subr.bf16.mxu1 %v2559_v24  ;;  %v2596_v23 = vld [vmem:[%s3240_s1 + $0x200] sm:$0xff]  }
  0x4a   : > { %v2597_v24 = vld [vmem:[%s3240_s1 + $0x280] sm:$0xff]  }
  0x4c   : > { %2373 = vmatpush3.bf16.msra.mxu0 %v2560_v25  ;;  %2395 = vmatpush3.bf16.msra.mxu1 %v2561_v26  ;;  %v1503_v25 = vor.u32 %v1502_v22, %v1499_v21  ;;  %v1508_v26 = vrot.slane %v1506_v52, 7 }
  0x4d   : > { %2374 = vmatprep.subr.bf16.mxu0 %v2562_v28  ;;  %2396 = vmatprep.subr.bf16.mxu1 %v2563_v29  ;;  %v2598_v28 = vld [vmem:[%s3240_s1 + $0x378] sm:$0xff]  }
  0x4e   : > { %v2599_v29 = vld [vmem:[%s3240_s1 + $0x3f8] sm:$0xff]  }
  0x50   : > { %2375 = vmatpush3.bf16.msra.mxu0 %v2564_v30  ;;  %2397 = vmatpush3.bf16.msra.mxu1 %v2565_v35  ;;  %v1504_v30 = vrot.slane %v1503_v25, 2  ;;  %v2600_v35 = vld [vmem:[%s3240_s1 + $0x338] sm:$0xff]  }
  0x51   : > { %2404 = vmatprep.subr.bf16.mxu0 %v2566_v36  ;;  %2426 = vmatprep.subr.bf16.mxu1 %v2567_v32  ;;  %v1211_v36 = vcombine.low %v1189_v12, %v1203_v38  ;;  %v1213_v32 = vcombine.low %v1196_v14, %v1210_v42  ;;  %v2627_v12 = vld [vmem:[%s3240_s1 + $0x3c0] sm:$0xff]  }
  0x52   : > { %v2629_v14 = vld [vmem:[%s3240_s1 + $0x380] sm:$0xff]  }
  0x53   : > { %1048 = vmatmul.mubr.bf16.vlgmr.msra.gmra.mxu0 %v815_v44  ;;  %1089 = vmatmul.mubr.bf16.vlgmr.msra.gmra.mxu1 %v817_v45  ;;  %v1509_v44 = vsel %vm2838_vm6, %v1504_v30, %v1508_v26  ;;  %v3118_v45 = vrot.slane %v1575_v41, %v2860_v39  ;;  %v2603_v41 = vld [vmem:[%s3240_s1 + $0x3f0] sm:$0xff]  }
  0x54   : > { %2405 = vmatpush3.bf16.msra.mxu0 %v2568_v40  ;;  %2427 = vmatpush3.bf16.msra.mxu1 %v2569_v48  ;;  %v2601_v40 = vld [vmem:[%s3240_s1 + $0x3b8] sm:$0xff]   ;;  %v2602_v48 = vld [vmem:[%s3240_s1 + $0x370] sm:$0xff]  }
  0x55   : > { %2406 = vmatprep.subr.bf16.mxu0 %v2570_v49  ;;  %2428 = vmatprep.subr.bf16.mxu1 %v2571_v53  ;;  %v1577_v49 = vcombine.low %v2870_v43, %v1509_v44  ;;  %v1578_v53 = vcombine.high %v2870_v43, %v1509_v44 }
  0x56   : > { %1443 = vmatprep.mubr.bf16.mxu0 %v1212_v19  ;;  %1484 = vmatprep.mubr.bf16.mxu1 %v1214_v20 }
  0x57   : > { %v3141_v43 = vrot.slane %v1578_v53, %v2860_v39 }
  0x58   : > { %2407 = vmatpush3.bf16.msra.mxu0 %v2572_v50  ;;  %2429 = vmatpush3.bf16.msra.mxu1 %v2573_v51  ;;  %v2604_v50 = vld [vmem:[%s3240_s1 + $0x330] sm:$0xff]   ;;  %v3138_v51 = vrot.slane %v1577_v49, %v2860_v39  ;;  %v2607_v39 = vld [vmem:[%s3240_s1 + $0x3e8] sm:$0xff]  }
  0x59   : > { %2408 = vmatprep.subr.bf16.mxu0 %v2574_v54  ;;  %2430 = vmatprep.subr.bf16.mxu1 %v2575_v55  ;;  %v1610_v54 = vcombine.high %v3129_v7, %v3141_v43  ;;  %v2608_v55 = vld [vmem:[%s3240_s1 + $0x328] sm:$0xff]   ;;  %v1609_v16 = vcombine.low %v3129_v7, %v3141_v43 }
  0x5a   : > { %v1608_v33 = vcombine.high %v3118_v45, %v3138_v51  ;;  %v1607_v15 = vcombine.low %v3118_v45, %v3138_v51 }
  0x5c   : > { %2409 = vmatpush3.bf16.msra.mxu0 %v2576_v56  ;;  %2431 = vmatpush3.bf16.msra.mxu1 %v2577_v58  ;;  %v2609_v56 = vld [vmem:[%s3240_s1 + $0x3a8] sm:$0xff]   ;;  %v2610_v58 = vld [vmem:[%s3240_s1 + $0x360] sm:$0xff]  }
  0x5d   : > { %2410 = vmatprep.subr.bf16.mxu0 %v2578_v59  ;;  %2432 = vmatprep.subr.bf16.mxu1 %v2579_v60  ;;  %v2611_v59 = vld [vmem:[%s3240_s1 + $0x3e0] sm:$0xff]  }
  0x5e   : > { %v2612_v60 = vld [vmem:[%s3240_s1 + $0x320] sm:$0xff]  }
  0x60   : > { %2411 = vmatpush3.bf16.msra.mxu0 %v2580_v61  ;;  %2433 = vmatpush3.bf16.msra.mxu1 %v2581_v62  ;;  %v2613_v61 = vld [vmem:[%s3240_s1 + $0x3a0] sm:$0xff]   ;;  %v2614_v62 = vld [vmem:[%s3240_s1 + $0x358] sm:$0xff]  }
  0x61   : > { %2412 = vmatprep.subr.bf16.mxu0 %v2582_v63  ;;  %2434 = vmatprep.subr.bf16.mxu1 %v2583_v0  ;;  %v2615_v63 = vld [vmem:[%s3240_s1 + $0x3d8] sm:$0xff]  }
  0x62   : > { %v2616_v0 = vld [vmem:[%s3240_s1 + $0x318] sm:$0xff]  }
  0x64   : > { %2413 = vmatpush3.bf16.msra.mxu0 %v2584_v1  ;;  %2435 = vmatpush3.bf16.msra.mxu1 %v2585_v2  ;;  %v2617_v1 = vld [vmem:[%s3240_s1 + $0x398] sm:$0xff]   ;;  %v2618_v2 = vld [vmem:[%s3240_s1 + $0x350] sm:$0xff]  }
  0x65   : > { %2414 = vmatprep.subr.bf16.mxu0 %v2586_v3  ;;  %2436 = vmatprep.subr.bf16.mxu1 %v2587_v4  ;;  %v2619_v3 = vld [vmem:[%s3240_s1 + $0x3d0] sm:$0xff]  }
  0x66   : > { %v2620_v4 = vld [vmem:[%s3240_s1 + $0x310] sm:$0xff]  }
  0x68   : > { %2415 = vmatpush3.bf16.msra.mxu0 %v2588_v5  ;;  %2437 = vmatpush3.bf16.msra.mxu1 %v2589_v6  ;;  %v2621_v5 = vld [vmem:[%s3240_s1 + $0x390] sm:$0xff]   ;;  %v2622_v6 = vld [vmem:[%s3240_s1 + $0x348] sm:$0xff]  }
  0x69   : > { %2416 = vmatprep.subr.bf16.mxu0 %v2590_v9  ;;  %2438 = vmatprep.subr.bf16.mxu1 %v2591_v10  ;;  %v2624_v9 = vld [vmem:[%s3240_s1 + $0x308] sm:$0xff]  }
  0x6a   : > { %v2625_v10 = vld [vmem:[%s3240_s1 + $0x388] sm:$0xff]  }
  0x6c   : > { %2417 = vmatpush3.bf16.msra.mxu0 %v2592_v47  ;;  %2439 = vmatpush3.bf16.msra.mxu1 %v2593_v34 }
  0x6d   : > { %2418 = vmatprep.subr.bf16.mxu0 %v2594_v37  ;;  %2440 = vmatprep.subr.bf16.mxu1 %v2595_v18 }
  0x70   : > { %2419 = vmatpush3.bf16.msra.mxu0 %v2596_v23  ;;  %2441 = vmatpush3.bf16.msra.mxu1 %v2597_v24 }
  0x71   : > { %2448 = vmatprep.subr.bf16.mxu0 %v2598_v28  ;;  %2470 = vmatprep.subr.bf16.mxu1 %v2599_v29 }
  0x73   : > { %1444 = vmatmul.mubr.bf16.vlgmr.msra.gmra.mxu0 %v1211_v36  ;;  %1485 = vmatmul.mubr.bf16.vlgmr.msra.gmra.mxu1 %v1213_v32 }
  0x74   : > { %2449 = vmatpush3.bf16.msra.mxu0 %v2600_v35  ;;  %2471 = vmatpush3.bf16.msra.mxu1 %v2601_v40 }
  0x75   : > { %2450 = vmatprep.subr.bf16.mxu0 %v2602_v48  ;;  %2472 = vmatprep.subr.bf16.mxu1 %v2603_v41 }
  0x76   : > { %1839 = vmatprep.mubr.bf16.mxu0 %v1608_v33  ;;  %1880 = vmatprep.mubr.bf16.mxu1 %v1610_v54 }
  0x78   : > { %2451 = vmatpush3.bf16.msra.mxu0 %v2604_v50  ;;  %2473 = vmatpush3.bf16.msra.mxu1 %v2605_v27 }
  0x79   : > { %2452 = vmatprep.subr.bf16.mxu0 %v2606_v31  ;;  %2474 = vmatprep.subr.bf16.mxu1 %v2607_v39 }
  0x7c   : > { %2453 = vmatpush3.bf16.msra.mxu0 %v2608_v55  ;;  %2475 = vmatpush3.bf16.msra.mxu1 %v2609_v56 }
  0x7d   : > { %2454 = vmatprep.subr.bf16.mxu0 %v2610_v58  ;;  %2476 = vmatprep.subr.bf16.mxu1 %v2611_v59 }
  0x80   : > { %2455 = vmatpush3.bf16.msra.mxu0 %v2612_v60  ;;  %2477 = vmatpush3.bf16.msra.mxu1 %v2613_v61 }
  0x81   : > { %2456 = vmatprep.subr.bf16.mxu0 %v2614_v62  ;;  %2478 = vmatprep.subr.bf16.mxu1 %v2615_v63 }
  0x84   : > { %2457 = vmatpush3.bf16.msra.mxu0 %v2616_v0  ;;  %2479 = vmatpush3.bf16.msra.mxu1 %v2617_v1 }
  0x85   : > { %2458 = vmatprep.subr.bf16.mxu0 %v2618_v2  ;;  %2480 = vmatprep.subr.bf16.mxu1 %v2619_v3 }
  0x88   : > { %2459 = vmatpush3.bf16.msra.mxu0 %v2620_v4  ;;  %2481 = vmatpush3.bf16.msra.mxu1 %v2621_v5  ;;  %v2312_v5 = vld [vmem:[%s3241_s2] ss:$0 sm:$0xff] }
  0x89   : > { %2460 = vmatprep.subr.bf16.mxu0 %v2622_v6  ;;  %2482 = vmatprep.subr.bf16.mxu1 %v2623_v8 }
  0x8c   : > { %2461 = vmatpush3.bf16.msra.mxu0 %v2624_v9  ;;  %2483 = vmatpush3.bf16.msra.mxu1 %v2625_v10 }
  0x8d   : > { %2462 = vmatprep.subr.bf16.mxu0 %v2626_v11  ;;  %2484 = vmatprep.subr.bf16.mxu1 %v2627_v12 }
  0x90   : > { %2463 = vmatpush3.bf16.msra.mxu0 %v2628_v13  ;;  %2485 = vmatpush3.bf16.msra.mxu1 %v2629_v14 }
  0x93   : > { %1840 = vmatmul.mubr.bf16.vlgmr.msra.gmra.mxu0 %v1607_v15  ;;  %1881 = vmatmul.mubr.bf16.vlgmr.msra.gmra.mxu1 %v1609_v16  ;;  %v2313_v16 = vld [vmem:[%s3242_s3] ss:$0 sm:$0xff] }
  0xf3   : > { %v2332_v17 = vpop.f32.mrf.mxu0  ;;  %v2354_v47 = vpop.f32.mrf.mxu1 }
  0xf5   : > { %v2333_v34 = vpop.f32.mrf.mxu0  ;;  %v2355_v38 = vpop.f32.mrf.mxu1 }
  0xf6   : > { %v2334_v30 = vadd.f32 %v2333_v34, %v2332_v17  ;;  %v2356_v35 = vadd.f32 %v2355_v38, %v2354_v47 }
  0xf7   : > { %v2335_v37 = vpop.f32.mrf.mxu0  ;;  %v2357_v42 = vpop.f32.mrf.mxu1 }
  0xf8   : > { %v777_v48 = vadd.f32 %v2356_v35, %v2334_v30 }
  0xf9   : > { %v2336_v46 = vpop.f32.mrf.mxu0  ;;  %v2358_v57 = vpop.f32.mrf.mxu1 }
  0xfa   : > { %v2337_v44 = vadd.f32 %v2336_v46, %v2335_v37  ;;  %v2359_v45 = vadd.f32 %v2358_v57, %v2357_v42 }
  0xfc   : > { %v780_v43 = vadd.f32 %v2359_v45, %v2337_v44 }
 0x113   : > { %v2376_v52 = vpop.f32.mrf.mxu0  ;;  %v2398_v18 = vpop.f32.mrf.mxu1 }
 0x115   : > { %v2377_v19 = vpop.f32.mrf.mxu0  ;;  %v2399_v20 = vpop.f32.mrf.mxu1 }
 0x116   : > { %v2378_v40 = vadd.f32 %v2377_v19, %v2376_v52  ;;  %v2400_v33 = vadd.f32 %v2399_v20, %v2398_v18 }
 0x117   : > { %v2379_v21 = vpop.f32.mrf.mxu0  ;;  %v2401_v22 = vpop.f32.mrf.mxu1 }
 0x118   : > { %v1050_v50 = vadd.f32 %v2378_v40, %v777_v48 }
 0x119   : > { %v2380_v23 = vpop.f32.mrf.mxu0  ;;  %v2402_v24 = vpop.f32.mrf.mxu1 }
 0x11a   : > { %v2381_v51 = vadd.f32 %v2380_v23, %v2379_v21  ;;  %v1091_v59 = vadd.f32 %v2400_v33, %v1050_v50  ;;  %v2403_v1 = vadd.f32 %v2402_v24, %v2401_v22 }
 0x11c   : > { %v1053_v60 = vadd.f32 %v2381_v51, %v780_v43 }
 0x11e   : > { %v1094_v9 = vadd.f32 %v2403_v1, %v1053_v60 }
 0x133   : > { %v2420_v25 = vpop.f32.mrf.mxu0  ;;  %v2442_v26 = vpop.f32.mrf.mxu1 }
 0x135   : > { %v2421_v28 = vpop.f32.mrf.mxu0  ;;  %v2443_v29 = vpop.f32.mrf.mxu1 }
 0x136   : > { %v2422_v49 = vadd.f32 %v2421_v28, %v2420_v25  ;;  %v2444_v53 = vadd.f32 %v2443_v29, %v2442_v26 }
 0x137   : > { %v2423_v36 = vpop.f32.mrf.mxu0  ;;  %v2445_v32 = vpop.f32.mrf.mxu1 }
 0x138   : > { %v1487_v54 = vadd.f32 %v2444_v53, %v2422_v49 }
 0x139   : > { %v2424_v7 = vpop.f32.mrf.mxu0  ;;  %v2446_v41 = vpop.f32.mrf.mxu1 }
 0x13a   : > { %v2425_v39 = vadd.f32 %v2424_v7, %v2423_v36  ;;  %v2447_v55 = vadd.f32 %v2446_v41, %v2445_v32  ;;  %v1493_v2 = vadd.f32 %v1487_v54, %v1091_v59 }
 0x13c   : > { %v1490_v3 = vadd.f32 %v2447_v55, %v2425_v39 }
 0x13e   : > { %v1494_v13 = vadd.f32 %v1490_v3, %v1094_v9 }
 0x153   : > { %v2464_v27 = vpop.f32.mrf.mxu0  ;;  %v2486_v31 = vpop.f32.mrf.mxu1 }
 0x155   : > { %v2465_v56 = vpop.f32.mrf.mxu0  ;;  %v2487_v58 = vpop.f32.mrf.mxu1 }
 0x156   : > { %v2466_v61 = vadd.f32 %v2465_v56, %v2464_v27  ;;  %v2488_v62 = vadd.f32 %v2487_v58, %v2486_v31 }
 0x157   : > { %v2467_v63 = vpop.f32.mrf.mxu0  ;;  %v2489_v0 = vpop.f32.mrf.mxu1 }
 0x158   : > { %v1883_v4 = vadd.f32 %v2488_v62, %v2466_v61 }
 0x159   : > { %v2468_v6 = vpop.f32.mrf.mxu0  ;;  %v2490_v8 = vpop.f32.mrf.mxu1 }
 0x15a   : > { %v1889_v10 = vadd.f32 %v1883_v4, %v1493_v2  ;;  %v2469_v11 = vadd.f32 %v2468_v6, %v2467_v63  ;;  %v2491_v12 = vadd.f32 %v2490_v8, %v2489_v0 }
 0x15c   : > { %v1898_v14 = vmul.f32 %v2312_v5, %v1889_v10  ;;  %v1886_v15 = vadd.f32 %v2491_v12, %v2469_v11 }
 0x15e   : > { %v1890_v17 = vadd.f32 %v1886_v15, %v1494_v13  ;;  %v1907_v47 = vadd.f32 %v2313_v16, %v1898_v14 }
 0x160   : > { %v1899_v34 = vmul.f32 %v2312_v5, %v1890_v17  ;;  %v1909_v37 = vmax.f32 %v1907_v47, 0.0 }
 0x162   : > { %v1908_v38 = vadd.f32 %v2313_v16, %v1899_v34 }
 0x164   : > { %v1910_v42 = vmax.f32 %v1908_v38, 0.0 }
 0x166   : > { %v1911_v46 = vadd.f32 %v1910_v42, %v1909_v37 }
 0x168   : > { %v1912_v57 = vrot.slane %v1911_v46, 4 }
 0x16a   : > { %v1913_v52 = vadd.f32 %v1912_v57, %v1911_v46 }
 0x16c   : > { %v1914_v18 = vrot.slane %v1913_v52, 2 }
 0x16e   : > { %v1915_v19 = vadd.f32 %v1914_v18, %v1913_v52 }
 0x170   : > { %v1916_v20 = vrot.slane %v1915_v19, 1 }
 0x172   : > { %v1917_v21 = vadd.f32 %v1916_v20, %v1915_v19 }
 0x174   : > { %v1919_v22 = vmul.f32 0.0625, %v1917_v21 }
 0x176   : > { %1920 = vst [vmem:[%s193_s23] sm:$0x1] %v1919_v22 }
 0x177 PF: > { %s14_s15 = sadd.s32 1, %s2636_s15  }
 0x178   : > { %p11_p4 = scmp.ge.s32.totalorder %s14_s15, 6  }
 0x17a   :  { %13 = sbr.rel (!%p11_p4) target bundleno = 1 (0x1), region = 69 }

// kernel: cnn_finernetwork_forward.7
= control target key start
LH: loop header
LB: loop body
LE: loop exit
PB: predicated region body
PF: predicated region fallthrough
CT: control target
= control target key end

     0   :  { %vm207_vm0 = vcmask 1041408   ;;  %vm215_vm1 = vcmask 517120   ;;  %vm327_vm2 = vcmask 523264   ;;  %vm599_vm3 = vmmov 0   ;;  %s1027_s1 = inlined_call_operand.vmem [shape: f32[256,192], index: 1, kind: input, shape index: {}]   ;;  %s1028_s0 = inlined_call_operand.vmem [shape: f32[2,256], index: 0, kind: input, shape index: {}]   ;;  %s1029_s5 = inlined_call_operand.vmem [shape: f32[192,32], index: 5, kind: input, shape index: {}]   ;;  %s1030_s2 = inlined_call_operand.vmem [shape: f32[1,192], index: 2, kind: input, shape index: {}]   ;;  %s1031_s3 = inlined_call_operand.vmem [shape: f32[1,192], index: 3, kind: input, shape index: {}]   ;;  %s1032_s4 = inlined_call_operand.vmem [shape: f32[1,192], index: 4, kind: input, shape index: {}]   ;;  %s1033_s9 = inlined_call_operand.vmem [shape: f32[32,2], index: 9, kind: input, shape index: {}]   ;;  %s1034_s6 = inlined_call_operand.vmem [shape: f32[1,32], index: 6, kind: input, shape index: {}]   ;;  %s1035_s7 = inlined_call_operand.vmem [shape: f32[1,32], index: 7, kind: input, shape index: {}]   ;;  %s1036_s8 = inlined_call_operand.vmem [shape: f32[1,32], index: 8, kind: input, shape index: {}]   ;;  %s1037_s12 = inlined_call_operand.<no memory space> [shape: f32[1,1], index: 12, kind: input, shape index: {}]   ;;  %s1038_s10 = inlined_call_operand.vmem [shape: f32[1,2], index: 10, kind: input, shape index: {}]   ;;  %s1039_s11 = inlined_call_operand.vmem [shape: f32[1,2], index: 11, kind: input, shape index: {}]   ;;  %s1040_s13 = inlined_call_operand.vmem [shape: f32[2,1], index: 13, kind: output, shape index: {}]  }
   0x1   :  { %v78_v0 = vld [vmem:[%s1027_s1 + $0xf8] sm:$0xff]  ;;  %v77_v1 = vld [vmem:[%s1027_s1 + $0xf0] sm:$0xff]  ;;  %v76_v2 = vld [vmem:[%s1027_s1 + $0xe8] sm:$0xff]  ;;  %vm403_vm4 = vcmask 254976   ;;  %vm459_vm5 = vcmask 261120   ;;  %vm541_vm6 = vcmask 9216  }
   0x2   :  { %134 = vmatprep.subr.mxu0 %v78_v0  ;;  %v75_v3 = vld [vmem:[%s1027_s1 + $0xe0] sm:$0xff]  ;;  %v74_v4 = vld [vmem:[%s1027_s1 + $0xd8] sm:$0xff]  ;;  %v73_v5 = vld [vmem:[%s1027_s1 + $0xd0] sm:$0xff]  ;;  %vm553_vm7 = vcmask 1024  }
   0x3   :  { %135 = vmatpush1.msra.mxu0 %v77_v1  ;;  %v72_v6 = vld [vmem:[%s1027_s1 + $0xc8] sm:$0xff]  ;;  %v71_v7 = vld [vmem:[%s1027_s1 + $0xc0] sm:$0xff]  ;;  %v70_v8 = vld [vmem:[%s1027_s1 + $0xb8] sm:$0xff] }
   0x4   :  { %136 = vmatprep.subr.mxu0 %v76_v2  ;;  %v69_v9 = vld [vmem:[%s1027_s1 + $0xb0] sm:$0xff]  ;;  %v68_v10 = vld [vmem:[%s1027_s1 + $0xa8] sm:$0xff]  ;;  %v67_v11 = vld [vmem:[%s1027_s1 + $0xa0] sm:$0xff]  ;;  %v598_v2 = vmov 0.0  }
   0x5   :  { %137 = vmatpush1.msra.mxu0 %v75_v3  ;;  %v66_v12 = vld [vmem:[%s1027_s1 + $0x98] sm:$0xff]  ;;  %v65_v13 = vld [vmem:[%s1027_s1 + $0x90] sm:$0xff]  ;;  %v64_v14 = vld [vmem:[%s1027_s1 + $0x88] sm:$0xff]  ;;  %331 = vmatprep.subr.mxu1 %v598_v2 }
   0x6   :  { %138 = vmatprep.subr.mxu0 %v74_v4  ;;  %v63_v15 = vld [vmem:[%s1027_s1 + $0x80] sm:$0xff]  ;;  %v62_v16 = vld [vmem:[%s1027_s1 + $0x78] sm:$0xff]  ;;  %v61_v17 = vld [vmem:[%s1027_s1 + $0x70] sm:$0xff] }
   0x7   :  { %139 = vmatpush1.msra.mxu0 %v73_v5  ;;  %v60_v18 = vld [vmem:[%s1027_s1 + $0x68] sm:$0xff]  ;;  %v59_v19 = vld [vmem:[%s1027_s1 + $0x60] sm:$0xff]  ;;  %v58_v20 = vld [vmem:[%s1027_s1 + $0x58] sm:$0xff] }
   0x8   :  { %140 = vmatprep.subr.mxu0 %v72_v6  ;;  %v57_v21 = vld [vmem:[%s1027_s1 + $0x50] sm:$0xff]  ;;  %v56_v22 = vld [vmem:[%s1027_s1 + $0x48] sm:$0xff]  ;;  %v55_v23 = vld [vmem:[%s1027_s1 + $0x40] sm:$0xff] }
   0x9   :  { %141 = vmatpush1.msra.mxu0 %v71_v7  ;;  %v745_v24 = vld.sshfl [vmem:[%s1028_s0] sm:$0x33 pattern:$0x76325410]  ;;  %v54_v25 = vld [vmem:[%s1027_s1 + $0x38] sm:$0xff]  ;;  %v53_v27 = vld [vmem:[%s1027_s1 + $0x30] sm:$0xff] }
   0xa   :  { %142 = vmatprep.subr.mxu0 %v70_v8  ;;  %v131_v26 = vcombine.high %v745_v24, %v745_v24  ;;  %v52_v28 = vld [vmem:[%s1027_s1 + $0x28] sm:$0xff]  ;;  %v51_v29 = vld [vmem:[%s1027_s1 + $0x20] sm:$0xff]  ;;  %v50_v30 = vld [vmem:[%s1027_s1 + $0x18] sm:$0xff] }
   0xb   :  { %143 = vmatpush1.msra.mxu0 %v69_v9  ;;  %v49_v31 = vld [vmem:[%s1027_s1 + $0x10] sm:$0xff]  ;;  %v48_v32 = vld [vmem:[%s1027_s1 + $0x8] sm:$0xff]  ;;  %v47_v33 = vld [vmem:[%s1027_s1] sm:$0xff] }
   0xc   :  { %144 = vmatprep.subr.mxu0 %v68_v10  ;;  %198 = vmatprep.mubr.f32.mxu0 %v131_v26  ;;  %v110_v34 = vld [vmem:[%s1027_s1 + $0x1f8] sm:$0xff]  ;;  %v109_v35 = vld [vmem:[%s1027_s1 + $0x1f0] sm:$0xff]  ;;  %v108_v36 = vld [vmem:[%s1027_s1 + $0x1e8] sm:$0xff] }
   0xd   :  { %145 = vmatpush1.msra.mxu0 %v67_v11  ;;  %v107_v37 = vld [vmem:[%s1027_s1 + $0x1e0] sm:$0xff]  ;;  %v106_v38 = vld [vmem:[%s1027_s1 + $0x1d8] sm:$0xff]  ;;  %v105_v39 = vld [vmem:[%s1027_s1 + $0x1d0] sm:$0xff] }
   0xe   :  { %146 = vmatprep.subr.mxu0 %v66_v12  ;;  %v104_v40 = vld [vmem:[%s1027_s1 + $0x1c8] sm:$0xff]  ;;  %v103_v41 = vld [vmem:[%s1027_s1 + $0x1c0] sm:$0xff]  ;;  %v102_v42 = vld [vmem:[%s1027_s1 + $0x1b8] sm:$0xff] }
   0xf   :  { %147 = vmatpush1.msra.mxu0 %v65_v13  ;;  %v101_v43 = vld [vmem:[%s1027_s1 + $0x1b0] sm:$0xff]  ;;  %v100_v44 = vld [vmem:[%s1027_s1 + $0x1a8] sm:$0xff]  ;;  %v99_v45 = vld [vmem:[%s1027_s1 + $0x1a0] sm:$0xff] }
  0x10   :  { %148 = vmatprep.subr.mxu0 %v64_v14  ;;  %v98_v46 = vld [vmem:[%s1027_s1 + $0x198] sm:$0xff]  ;;  %v97_v47 = vld [vmem:[%s1027_s1 + $0x190] sm:$0xff]  ;;  %v96_v48 = vld [vmem:[%s1027_s1 + $0x188] sm:$0xff] }
  0x11   :  { %149 = vmatpush1.msra.mxu0 %v63_v15  ;;  %v95_v49 = vld [vmem:[%s1027_s1 + $0x180] sm:$0xff]  ;;  %v94_v50 = vld [vmem:[%s1027_s1 + $0x178] sm:$0xff]  ;;  %v93_v51 = vld [vmem:[%s1027_s1 + $0x170] sm:$0xff] }
  0x12   :  { %150 = vmatprep.subr.mxu0 %v62_v16  ;;  %v92_v52 = vld [vmem:[%s1027_s1 + $0x168] sm:$0xff]  ;;  %v91_v53 = vld [vmem:[%s1027_s1 + $0x160] sm:$0xff]  ;;  %v90_v54 = vld [vmem:[%s1027_s1 + $0x158] sm:$0xff] }
  0x13   :  { %151 = vmatpush1.msra.mxu0 %v61_v17  ;;  %v89_v55 = vld [vmem:[%s1027_s1 + $0x150] sm:$0xff]  ;;  %v88_v56 = vld [vmem:[%s1027_s1 + $0x148] sm:$0xff]  ;;  %v87_v57 = vld [vmem:[%s1027_s1 + $0x140] sm:$0xff] }
  0x14   :  { %152 = vmatprep.subr.mxu0 %v60_v18  ;;  %v86_v58 = vld [vmem:[%s1027_s1 + $0x138] sm:$0xff]  ;;  %v85_v59 = vld [vmem:[%s1027_s1 + $0x130] sm:$0xff]  ;;  %v84_v60 = vld [vmem:[%s1027_s1 + $0x128] sm:$0xff] }
  0x15   :  { %153 = vmatpush1.msra.mxu0 %v59_v19  ;;  %v83_v61 = vld [vmem:[%s1027_s1 + $0x120] sm:$0xff]  ;;  %v82_v62 = vld [vmem:[%s1027_s1 + $0x118] sm:$0xff]  ;;  %v81_v63 = vld [vmem:[%s1027_s1 + $0x110] sm:$0xff] }
  0x16   :  { %154 = vmatprep.subr.mxu0 %v58_v20  ;;  %v80_v0 = vld [vmem:[%s1027_s1 + $0x108] sm:$0xff]  ;;  %v79_v1 = vld [vmem:[%s1027_s1 + $0x100] sm:$0xff]  ;;  %v311_v3 = vld [vmem:[%s1029_s5 + $0x78] sm:$0xff] }
  0x17   :  { %155 = vmatpush1.msra.mxu0 %v57_v21  ;;  %332 = vmatpush1.msra.mxu1 %v311_v3  ;;  %v310_v4 = vld [vmem:[%s1029_s5 + $0x70] sm:$0xff]  ;;  %v309_v5 = vld [vmem:[%s1029_s5 + $0x68] sm:$0xff]  ;;  %v308_v6 = vld [vmem:[%s1029_s5 + $0x60] sm:$0xff] }
  0x18   :  { %156 = vmatprep.subr.mxu0 %v56_v22  ;;  %333 = vmatprep.subr.mxu1 %v598_v2  ;;  %v307_v7 = vld [vmem:[%s1029_s5 + $0x58] sm:$0xff]  ;;  %v306_v8 = vld [vmem:[%s1029_s5 + $0x50] sm:$0xff]  ;;  %v305_v9 = vld [vmem:[%s1029_s5 + $0x48] sm:$0xff] }
  0x19   :  { %157 = vmatpush1.msra.mxu0 %v55_v23  ;;  %334 = vmatpush1.msra.mxu1 %v310_v4  ;;  %v304_v10 = vld [vmem:[%s1029_s5 + $0x40] sm:$0xff]  ;;  %v303_v11 = vld [vmem:[%s1029_s5 + $0x38] sm:$0xff]  ;;  %v302_v12 = vld [vmem:[%s1029_s5 + $0x30] sm:$0xff] }
  0x1a   :  { %158 = vmatprep.subr.mxu0 %v54_v25  ;;  %335 = vmatprep.subr.mxu1 %v598_v2  ;;  %v301_v13 = vld [vmem:[%s1029_s5 + $0x28] sm:$0xff]  ;;  %v300_v14 = vld [vmem:[%s1029_s5 + $0x20] sm:$0xff]  ;;  %v299_v15 = vld [vmem:[%s1029_s5 + $0x18] sm:$0xff] }
  0x1b   :  { %159 = vmatpush1.msra.mxu0 %v53_v27  ;;  %336 = vmatpush1.msra.mxu1 %v309_v5  ;;  %v298_v16 = vld [vmem:[%s1029_s5 + $0x10] sm:$0xff]  ;;  %v297_v17 = vld [vmem:[%s1029_s5 + $0x8] sm:$0xff]  ;;  %v296_v18 = vld [vmem:[%s1029_s5] sm:$0xff]  ;;  %v113_v27 = vlaneseq }
  0x1c   :  { %160 = vmatprep.subr.mxu0 %v52_v28  ;;  %337 = vmatprep.subr.mxu1 %v598_v2  ;;  %v319_v19 = vld [vmem:[%s1029_s5 + $0xb8] sm:$0xff]  ;;  %v318_v20 = vld [vmem:[%s1029_s5 + $0xb0] sm:$0xff]  ;;  %v317_v21 = vld [vmem:[%s1029_s5 + $0xa8] sm:$0xff] }
  0x1d   :  { %161 = vmatpush1.msra.mxu0 %v51_v29  ;;  %338 = vmatpush1.msra.mxu1 %v308_v6  ;;  %v316_v22 = vld [vmem:[%s1029_s5 + $0xa0] sm:$0xff]  ;;  %v315_v23 = vld [vmem:[%s1029_s5 + $0x98] sm:$0xff]  ;;  %v313_v25 = vld [vmem:[%s1029_s5 + $0x88] sm:$0xff]  ;;  %v114_v28 = vshrl.u32 %v113_v27, 7 }
  0x1e   :  { %162 = vmatprep.subr.mxu0 %v50_v30  ;;  %339 = vmatprep.subr.mxu1 %v598_v2  ;;  %v312_v26 = vld [vmem:[%s1029_s5 + $0x80] sm:$0xff] }
  0x1f   :  { %163 = vmatpush1.msra.mxu0 %v49_v31  ;;  %340 = vmatpush1.msra.mxu1 %v307_v7  ;;  %v967_v29 = vsub.s32 0, %v114_v28  ;;  %v111_v30 = vld [vmem:[%s1030_s2] sm:$0x3]  ;;  %v972_v31 = vsub.s32 1, %v114_v28 }
  0x20   :  { %164 = vmatprep.subr.mxu0 %v48_v32  ;;  %341 = vmatprep.subr.mxu1 %v598_v2 }
  0x21   :  { %165 = vmatpush1.msra.mxu0 %v47_v33  ;;  %342 = vmatpush1.msra.mxu1 %v306_v8  ;;  %v116_v32 = vrot.slane %v111_v30, %v967_v29  ;;  %v120_v33 = vrot.slane %v111_v30, %v972_v31 }
  0x22   :  { %166 = vmatprep.subr.mxu0 %v110_v34  ;;  %343 = vmatprep.subr.mxu1 %v598_v2 }
  0x23   :  { %167 = vmatpush2.msra.mxu0 %v109_v35  ;;  %344 = vmatpush1.msra.mxu1 %v305_v9 }
  0x24   :  { %168 = vmatprep.subr.mxu0 %v108_v36  ;;  %345 = vmatprep.subr.mxu1 %v598_v2 }
  0x25   :  { %169 = vmatpush2.msra.mxu0 %v107_v37  ;;  %346 = vmatpush1.msra.mxu1 %v304_v10 }
  0x26   :  { %170 = vmatprep.subr.mxu0 %v106_v38  ;;  %347 = vmatprep.subr.mxu1 %v598_v2 }
  0x27   :  { %171 = vmatpush2.msra.mxu0 %v105_v39  ;;  %348 = vmatpush1.msra.mxu1 %v303_v11 }
  0x28   :  { %172 = vmatprep.subr.mxu0 %v104_v40  ;;  %349 = vmatprep.subr.mxu1 %v598_v2 }
  0x29   :  { %173 = vmatpush2.msra.mxu0 %v103_v41  ;;  %350 = vmatpush1.msra.mxu1 %v302_v12 }
  0x2a   :  { %174 = vmatprep.subr.mxu0 %v102_v42  ;;  %351 = vmatprep.subr.mxu1 %v598_v2 }
  0x2b   :  { %175 = vmatpush2.msra.mxu0 %v101_v43  ;;  %352 = vmatpush1.msra.mxu1 %v301_v13  ;;  %v205_v13 = vld [vmem:[%s1031_s3] sm:$0x3] }
  0x2c   :  { %176 = vmatprep.subr.mxu0 %v100_v44  ;;  %353 = vmatprep.subr.mxu1 %v598_v2 }
  0x2d   :  { %177 = vmatpush2.msra.mxu0 %v99_v45  ;;  %354 = vmatpush1.msra.mxu1 %v300_v14  ;;  %v206_v14 = vld [vmem:[%s1032_s4] sm:$0x3] }
  0x2e   :  { %178 = vmatprep.subr.mxu0 %v98_v46  ;;  %355 = vmatprep.subr.mxu1 %v598_v2 }
  0x2f   :  { %179 = vmatpush2.msra.mxu0 %v97_v47  ;;  %356 = vmatpush1.msra.mxu1 %v299_v15  ;;  %v256_v15 = vrot.slane %v205_v13, %v967_v29 }
  0x30   :  { %180 = vmatprep.subr.mxu0 %v96_v48  ;;  %357 = vmatprep.subr.mxu1 %v598_v2 }
  0x31   :  { %181 = vmatpush2.msra.mxu0 %v95_v49  ;;  %358 = vmatpush1.msra.mxu1 %v298_v16 }
  0x32   :  { %182 = vmatprep.subr.mxu0 %v94_v50  ;;  %359 = vmatprep.subr.mxu1 %v598_v2 }
  0x33   :  { %183 = vmatpush2.msra.mxu0 %v93_v51  ;;  %360 = vmatpush1.msra.mxu1 %v297_v17 }
  0x34   :  { %184 = vmatprep.subr.mxu0 %v92_v52  ;;  %361 = vmatprep.subr.mxu1 %v598_v2 }
  0x35   :  { %185 = vmatpush2.msra.mxu0 %v91_v53  ;;  %362 = vmatpush1.msra.mxu1 %v296_v18  ;;  %v269_v18 = vrot.slane %v206_v14, %v967_v29 }
  0x36   :  { %186 = vmatprep.subr.mxu0 %v90_v54  ;;  %379 = vmatprep.subr.mxu1 %v598_v2 }
  0x37   :  { %187 = vmatpush2.msra.mxu0 %v89_v55  ;;  %380 = vmatpush2.msra.mxu1 %v319_v19  ;;  %v260_v19 = vrot.slane %v205_v13, %v972_v31 }
  0x38   :  { %188 = vmatprep.subr.mxu0 %v88_v56  ;;  %381 = vmatprep.subr.mxu1 %v598_v2 }
  0x39   :  { %189 = vmatpush2.msra.mxu0 %v87_v57  ;;  %382 = vmatpush2.msra.mxu1 %v318_v20 }
  0x3a   :  { %190 = vmatprep.subr.mxu0 %v86_v58  ;;  %383 = vmatprep.subr.mxu1 %v598_v2 }
  0x3b   :  { %191 = vmatpush2.msra.mxu0 %v85_v59  ;;  %384 = vmatpush2.msra.mxu1 %v317_v21 }
  0x3c   :  { %192 = vmatprep.subr.mxu0 %v84_v60  ;;  %385 = vmatprep.subr.mxu1 %v598_v2 }
  0x3d   :  { %193 = vmatpush2.msra.mxu0 %v83_v61  ;;  %386 = vmatpush2.msra.mxu1 %v316_v22 }
  0x3e   :  { %194 = vmatprep.subr.mxu0 %v82_v62  ;;  %387 = vmatprep.subr.mxu1 %v598_v2 }
  0x3f   :  { %195 = vmatpush2.msra.mxu0 %v81_v63  ;;  %388 = vmatpush2.msra.mxu1 %v315_v23  ;;  %v273_v23 = vrot.slane %v206_v14, %v972_v31 }
  0x40   :  { %196 = vmatprep.subr.mxu0 %v80_v0  ;;  %389 = vmatprep.subr.mxu1 %v598_v2 }
  0x41   :  { %197 = vmatpush2.msra.mxu0 %v79_v1 }
  0x42   :  { %199 = vmatmul.mubr.f32.vlgmr.msra.gmra.mxu0 %v745_v24  ;;  %v314_v24 = vld [vmem:[%s1029_s5 + $0x90] sm:$0xff] }
  0x43   :  { %390 = vmatpush2.msra.mxu1 %v314_v24 }
  0x44   :  { %391 = vmatprep.subr.mxu1 %v598_v2 }
  0x45   :  { %392 = vmatpush2.msra.mxu1 %v313_v25 }
  0x46   :  { %393 = vmatprep.subr.mxu1 %v598_v2 }
  0x47   :  { %394 = vmatpush2.msra.mxu1 %v312_v26 }
  0x48   :  { %573 = vmatprep.subr.mxu1 %v598_v2 }
 0x102   :  { %v200_v34 = vpop.f32.mrf.mxu0 }
 0x103   :  { %v201_v35 = vadd.f32 %v200_v34, %v116_v32 }
 0x104   :  { %v202_v36 = vpop.f32.mrf.mxu0 }
 0x105   :  { %v208_v37 = vsel %vm207_vm0, %v201_v35, 0.0  ;;  %v203_v38 = vadd.f32 %v202_v36, %v120_v33 }
 0x106   :  { %v209_v39 = vrot.slane %v208_v37, 4 }
 0x107   :  { %v216_v40 = vsel %vm215_vm1, %v203_v38, 0.0 }
 0x108   :  { %v210_v41 = vadd.f32 %v209_v39, %v208_v37  ;;  %v217_v42 = vrot.slane %v216_v40, 4 }
 0x10a   :  { %v211_v43 = vrot.slane %v210_v41, 2  ;;  %v218_v44 = vadd.f32 %v217_v42, %v216_v40 }
 0x10c   :  { %v212_v45 = vadd.f32 %v211_v43, %v210_v41  ;;  %v219_v46 = vrot.slane %v218_v44, 2 }
 0x10e   :  { %v213_v47 = vrot.slane %v212_v45, 1  ;;  %v220_v48 = vadd.f32 %v219_v46, %v218_v44  ;;  %v450_v46 = vld [vmem:[%s1033_s9 + $0x10] sm:$0xff] }
 0x110   :  { %v214_v49 = vadd.f32 %v213_v47, %v212_v45  ;;  %v221_v50 = vrot.slane %v220_v48, 1  ;;  %v451_v45 = vld [vmem:[%s1033_s9 + $0x18] sm:$0xff]  ;;  %v449_v47 = vld [vmem:[%s1033_s9 + $0x8] sm:$0xff] }
 0x112   :  { %v224_v51 = vmul.f32 0.5, %v214_v49  ;;  %v222_v52 = vadd.f32 %v221_v50, %v220_v48  ;;  %v448_v48 = vld [vmem:[%s1033_s9] sm:$0xff] }
 0x113   :  { %v560_v49 = vld [vmem:[%s1034_s6] ss:$0 sm:$0xff] }
 0x114   :  { %v226_v53 = vsub.f32 %v201_v35, %v224_v51  ;;  %v225_v54 = vmul.f32 0.5, %v222_v52 }
 0x116   :  { %v228_v55 = vmul.f32 %v226_v53, %v226_v53  ;;  %v227_v56 = vsub.f32 %v203_v38, %v225_v54 }
 0x118   :  { %v230_v57 = vsel %vm207_vm0, %v228_v55, 0.0  ;;  %v229_v58 = vmul.f32 %v227_v56, %v227_v56 }
 0x119   :  { %v231_v59 = vrot.slane %v230_v57, 4 }
 0x11a   :  { %v237_v60 = vsel %vm215_vm1, %v229_v58, 0.0 }
 0x11b   :  { %v232_v61 = vadd.f32 %v231_v59, %v230_v57  ;;  %v238_v62 = vrot.slane %v237_v60, 4 }
 0x11d   :  { %v233_v63 = vrot.slane %v232_v61, 2  ;;  %v239_v0 = vadd.f32 %v238_v62, %v237_v60 }
 0x11f   :  { %v234_v1 = vadd.f32 %v233_v63, %v232_v61  ;;  %v240_v3 = vrot.slane %v239_v0, 2 }
 0x121   :  { %v235_v4 = vrot.slane %v234_v1, 1  ;;  %v241_v5 = vadd.f32 %v240_v3, %v239_v0 }
 0x123   :  { %v236_v6 = vadd.f32 %v235_v4, %v234_v1  ;;  %v242_v7 = vrot.slane %v241_v5, 1 }
 0x125   :  { %v244_v8 = vmul.f32 0.5, %v236_v6  ;;  %v243_v9 = vadd.f32 %v242_v7, %v241_v5 }
 0x127   :  { %v246_v10 = vadd.f32 1e-05, %v244_v8  ;;  %v245_v11 = vmul.f32 0.5, %v243_v9  ;;  %v562_v9 = vld [vmem:[%s1035_s7] ss:$0 sm:$0xff] }
 0x129   :  { %586 = vrsqrt.f32 %v246_v10  ;;  %v247_v12 = vadd.f32 1e-05, %v245_v11  ;;  %v563_v11 = vld [vmem:[%s1036_s8] ss:$0 sm:$0xff] }
 0x12b   :  { %588 = vrsqrt.f32 %v247_v12 }
 0x136   :  { %v587_v16 = vpop.eup %586 }
 0x137   :  { %v250_v17 = vmul.f32 %v587_v16, %v226_v53 }
 0x138   :  { %v589_v20 = vpop.eup %588 }
 0x139   :  { %v263_v21 = vmul.f32 %v256_v15, %v250_v17  ;;  %v251_v22 = vmul.f32 %v589_v20, %v227_v56 }
 0x13b   :  { %v276_v24 = vadd.f32 %v269_v18, %v263_v21  ;;  %v264_v25 = vmul.f32 %v260_v19, %v251_v22 }
 0x13d   :  { %v277_v26 = vadd.f32 %v273_v23, %v264_v25  ;;  %v280_v27 = vmul.f32 0.044715, %v276_v24  ;;  %v278_v42 = vmul.f32 0.5, %v276_v24  ;;  %v18_v23 = vstv %s1037_s12 }
 0x13e   :  { %19 = vst [vmem:[#allocation2] sm:$0x1] %v18_v23 }
 0x13f   :  { %v281_v28 = vmul.f32 0.044715, %v277_v26  ;;  %v282_v30 = vmul.f32 %v280_v27, %v276_v24  ;;  %v279_v41 = vmul.f32 0.5, %v277_v26 }
 0x141   :  { %v283_v32 = vmul.f32 %v281_v28, %v277_v26  ;;  %v284_v33 = vmul.f32 %v282_v30, %v276_v24 }
 0x143   :  { %v285_v34 = vmul.f32 %v283_v32, %v277_v26  ;;  %v286_v35 = vadd.f32 %v284_v33, %v276_v24  ;;  %v564_v24 = vld [vmem:[%s1038_s10] ss:$0 sm:$0xff] }
 0x145   :  { %v287_v36 = vadd.f32 %v285_v34, %v277_v26  ;;  %v288_v37 = vmul.f32 0.7978846, %v286_v35  ;;  %v566_v26 = vld [vmem:[%s1039_s11] ss:$0 sm:$0xff] }
 0x146   :  { %v567_v33 = vld [vmem:[#allocation2] ss:$0 sm:$0xff] }
 0x147   :  { %v289_v29 = vmul.f32 0.7978846, %v287_v36  ;;  %590 = vtanh.f32 %v288_v37 }
 0x149   :  { %592 = vtanh.f32 %v289_v29 }
 0x154   :  { %v591_v38 = vpop.eup %590 }
 0x155   :  { %v292_v40 = vadd.f32 1.0, %v591_v38 }
 0x156   :  { %v593_v39 = vpop.eup %592 }
 0x157   :  { %v293_v31 = vadd.f32 1.0, %v593_v39  ;;  %v294_v44 = vmul.f32 %v292_v40, %v278_v42 }
 0x159   :  { %v295_v43 = vmul.f32 %v293_v31, %v279_v41 }
 0x15b   :  { %561 = vmatprep.mubr.msk.f32.mxu1 %vm327_vm2, %v295_v43 }
 0x15c   :  { %396 = vmatmul.mubr.f32.vlgmr.msra.gmra.mxu1 %v294_v44 }
 0x15d   :  { %581 = vmatprep.mubr.msk.f32.mxu1 %vm599_vm3, %v598_v2  ;;  %574 = vmatpush3.msra.mxu1 %v451_v45 }
 0x15e   :  { %575 = vmatprep.subr.mxu1 %v598_v2 }
 0x15f   :  { %576 = vmatpush3.msra.mxu1 %v450_v46 }
 0x160   :  { %577 = vmatprep.subr.mxu1 %v598_v2 }
 0x161   :  { %578 = vmatpush3.msra.mxu1 %v449_v47 }
 0x162   :  { %579 = vmatprep.subr.mxu1 %v598_v2 }
 0x163   :  { %580 = vmatpush3.msra.mxu1 %v448_v48 }
 0x21c   :  { %v397_v50 = vpop.f32.mrf.mxu1 }
 0x21d   :  { %v398_v51 = vadd.f32 %v560_v49, %v397_v50 }
 0x21e   :  { %v399_v52 = vpop.f32.mrf.mxu1 }
 0x21f   :  { %v404_v53 = vsel %vm403_vm4, %v398_v51, 0.0 }
 0x220   :  { %v405_v54 = vrot.slane %v404_v53, 4 }
 0x222   :  { %v406_v55 = vadd.f32 %v405_v54, %v404_v53 }
 0x224   :  { %v407_v56 = vrot.slane %v406_v55, 2 }
 0x226   :  { %v408_v57 = vadd.f32 %v407_v56, %v406_v55 }
 0x228   :  { %v409_v58 = vrot.slane %v408_v57, 1 }
 0x22a   :  { %v410_v59 = vadd.f32 %v409_v58, %v408_v57 }
 0x22c   :  { %v411_v60 = vmul.f32 0.5, %v410_v59 }
 0x22e   :  { %v412_v61 = vsub.f32 %v398_v51, %v411_v60 }
 0x230   :  { %v413_v62 = vmul.f32 %v412_v61, %v412_v61 }
 0x232   :  { %v414_v2 = vsel %vm403_vm4, %v413_v62, 0.0 }
 0x233   :  { %v415_v63 = vrot.slane %v414_v2, 4 }
 0x235   :  { %v416_v0 = vadd.f32 %v415_v63, %v414_v2 }
 0x237   :  { %v417_v1 = vrot.slane %v416_v0, 2 }
 0x239   :  { %v418_v3 = vadd.f32 %v417_v1, %v416_v0 }
 0x23b   :  { %v419_v4 = vrot.slane %v418_v3, 1 }
 0x23d   :  { %v420_v5 = vadd.f32 %v419_v4, %v418_v3 }
 0x23f   :  { %v421_v6 = vmul.f32 0.5, %v420_v5 }
 0x241   :  { %v422_v7 = vadd.f32 1e-05, %v421_v6 }
 0x243   :  { %594 = vrsqrt.f32 %v422_v7 }
 0x250   :  { %v595_v8 = vpop.eup %594 }
 0x251   :  { %v424_v10 = vmul.f32 %v595_v8, %v412_v61 }
 0x253   :  { %v431_v12 = vmul.f32 %v562_v9, %v424_v10 }
 0x255   :  { %v438_v13 = vadd.f32 %v563_v11, %v431_v12 }
 0x257   :  { %v440_v14 = vmul.f32 0.044715, %v438_v13  ;;  %v439_v20 = vmul.f32 0.5, %v438_v13 }
 0x259   :  { %v441_v15 = vmul.f32 %v440_v14, %v438_v13 }
 0x25b   :  { %v442_v16 = vmul.f32 %v441_v15, %v438_v13 }
 0x25d   :  { %v443_v17 = vadd.f32 %v442_v16, %v438_v13 }
 0x25f   :  { %v444_v18 = vmul.f32 0.7978846, %v443_v17 }
 0x261   :  { %596 = vtanh.f32 %v444_v18 }
 0x26e   :  { %v597_v19 = vpop.eup %596 }
 0x26f   :  { %v446_v21 = vadd.f32 1.0, %v597_v19 }
 0x271   :  { %v447_v22 = vmul.f32 %v446_v21, %v439_v20 }
 0x273   :  { %582 = vmatmul.mubr.msk.f32.vlgmr.msra.gmra.mxu1 %vm459_vm5, %v447_v22 }
 0x333   :  { %v529_v25 = vpop.f32.mrf.mxu1 }
 0x334   :  { %v530_v27 = vadd.f32 %v564_v24, %v529_v25 }
 0x335   :  { %v583_v28 = vpop.f32.mrf.mxu1 }
 0x336   :  { %v540_v30 = vmul.f32 %v566_v26, %v530_v27 }
 0x338   :  { %v542_v32 = vsel %vm541_vm6, %v540_v30, 0.0 }
 0x339   :  { %543 = vadd.xlane.f32.xlu0 %v542_v32 }
 0x3c2   :  { %v544_v34 = vpop.xlane.xlu0 %543 }
 0x3c3   :  { %v552_v35 = vadd.f32 %v567_v33, %v544_v34 }
 0x3c5   :  { %554 = vst.msk [vmem:[%s1040_s13] sm:$0x3] %vm553_vm7, %v552_v35 }

</bundles_post_ra>
